<compile_context>
chip_gen: v7x
topology: tpu7x:2x2x1
jax: 0.10.0
libtpu: 0.0.40
codegen_flags: <defaults>
</compile_context>

<pallas_src>
import jax
import jax.numpy as jnp
from jax.experimental import pallas as pl
from jax.experimental.pallas import tpu as pltpu

K = 3            # args.krnl_size
PAD = 1          # args.padding
EPS = 1e-5       # nn.BatchNorm2d default eps
LANE = 128       # TPU lane width (channel padding target)
STATS_ROWS = 8   # sublane-aligned rows for the per-tile partial-stats output
VMEM_LIMIT = 48 * 1024 * 1024  # explicit scoped-VMEM budget (fits v5e/v6e/v7x)


# ---------------------------------------------------------------------------
# In-kernel helpers
# ---------------------------------------------------------------------------

def _conv3x3_im2col(xpad, w_ref):
    """3x3 'same' conv of an already spatially padded (Hp, Wp, Ci) bf16 tile.

    Per ky, the K x-taps are concatenated on the channel (lane) axis and fed to
    a single (H*W, K*Ci) x (K*Ci, Co) MXU matmul with f32 accumulation, so the
    contraction depth is K*Ci instead of Ci and only 3 matmuls are issued.
    Returns an (H*W, Co) float32 accumulator (bounded to the tile).
    """
    Hp, Wp, Ci = xpad.shape
    H, W = Hp - 2 * PAD, Wp - 2 * PAD
    Co = w_ref.shape[-1]
    acc = jnp.zeros((H * W, Co), jnp.float32)
    for ky in range(K):
        rows = xpad[ky:ky + H]                                  # (H, Wp, Ci)
        patch = jnp.concatenate(
            [rows[:, kx:kx + W, :] for kx in range(K)], axis=-1)  # (H, W, K*Ci)
        acc = acc + jnp.dot(patch.reshape(H * W, K * Ci), w_ref[ky],
                            preferred_element_type=jnp.float32)
    return acc


def _pad_hw(a):
    """Zero-pad the two spatial dims of (H, W, C) by PAD, built as a value
    (single lane-dense materialization; no scratch zero-fill + interior
    overwrite, no misaligned partial stores)."""
    H, W, C = a.shape
    zw = jnp.zeros((H, PAD, C), a.dtype)
    a = jnp.concatenate([zw, a, zw], axis=1)                    # (H, W+2P, C)
    zh = jnp.zeros((PAD, W + 2 * PAD, C), a.dtype)
    return jnp.concatenate([zh, a, zh], axis=0)                 # (H+2P, W+2P, C)


def _write_partial_stats(st_ref, acc):
    """Per-tile per-channel sum and sum-of-squares (f32) for global BN."""
    co = acc.shape[-1]
    s = jnp.sum(acc, axis=0, keepdims=True)                     # (1, Co)
    sq = jnp.sum(acc * acc, axis=0, keepdims=True)              # (1, Co)
    st_ref[0] = jnp.concatenate(
        [s, sq, jnp.zeros((STATS_ROWS - 2, co), jnp.float32)], axis=0)


# ---------------------------------------------------------------------------
# Kernels
# ---------------------------------------------------------------------------

def _conv_bias_stats_kernel(x_ref, w_ref, b_ref, y_ref, st_ref):
    """Pass 1: conv1 + bias on one image tile; emit partial BN1 stats."""
    _, H, W, Co = y_ref.shape
    acc = _conv3x3_im2col(x_ref[0], w_ref) + b_ref[0]           # (H*W, Co) f32
    y_ref[0] = acc.reshape(H, W, Co)
    _write_partial_stats(st_ref, acc)


def _bn_relu_conv_stats_kernel(y1_ref, sc_ref, sh_ref, w_ref, b_ref,
                               y2_ref, st_ref):
    """Pass 2: fused BN1+ReLU (global scale/shift) -> conv2 + bias; BN2 stats."""
    _, H, W, Co = y2_ref.shape
    a = jnp.maximum(y1_ref[0] * sc_ref[0] + sh_ref[0], 0.0)     # f32, fused BN+ReLU
    xpad = _pad_hw(a.astype(jnp.bfloat16))                      # bf16 MXU input
    acc = _conv3x3_im2col(xpad, w_ref) + b_ref[0]
    y2_ref[0] = acc.reshape(H, W, Co)
    _write_partial_stats(st_ref, acc)


def _bn_relu_kernel(y_ref, sc_ref, sh_ref, o_ref):
    """Pass 3: fused BN2 + ReLU, lane-dense output."""
    o_ref[0] = jnp.maximum(y_ref[0] * sc_ref[0] + sh_ref[0], 0.0)


# ---------------------------------------------------------------------------
# Wrapper-side helpers
# ---------------------------------------------------------------------------

def _round_up(x, m):
    return (x + m - 1) // m * m


def _prep_conv_weight(w, ci_p, co_p):
    """PyTorch (Co, Ci, Kh, Kw) -> (Kh, Kw*Ci_p, Co_p) bf16, channel-padded so
    the contraction index is (kx, ci) matching the im2col patch layout."""
    wt = jnp.transpose(w, (2, 3, 1, 0))                          # (ky, kx, ci, co)
    wt = jnp.pad(wt, ((0, 0), (0, 0),
                      (0, ci_p - wt.shape[2]), (0, co_p - wt.shape[3])))
    return wt.reshape(K, K * ci_p, co_p).astype(jnp.bfloat16)


def _pad_vec(v, c_p):
    return jnp.pad(v.astype(jnp.float32), (0, c_p - v.shape[0])).reshape(1, c_p)


def _bn_fold(stats, gamma, beta, count):
    """Global training-mode BN stats from per-tile partials; fold gamma/beta
    into one per-channel (scale, shift).  All in f32; var clamped at 0 to guard
    the E[x^2]-mean^2 cancellation."""
    s = jnp.sum(stats[:, 0, :], axis=0)
    sq = jnp.sum(stats[:, 1, :], axis=0)
    mean = s / count
    var = jnp.maximum(sq / count - mean * mean, 0.0)             # biased var
    scale = gamma[0] * jax.lax.rsqrt(var + EPS)
    shift = beta[0] - mean * scale
    return scale.reshape(1, -1), shift.reshape(1, -1)


def _img_spec(shape):
    """One image (leading-axis block of 1) per grid step."""
    nd = len(shape)

    def idx(n):
        return (n,) + (0,) * (nd - 1)

    return pl.BlockSpec((1,) + tuple(shape[1:]), idx)


def _rep_spec(shape):
    """Whole array, same (resident) block every grid step (weights, vectors)."""
    nd = len(shape)

    def idx(n):
        return (0,) * nd

    return pl.BlockSpec(tuple(shape), idx)


# ---------------------------------------------------------------------------
# Public forward
# ---------------------------------------------------------------------------

def double_conv(x_nchw, params):
    """PyTorch-semantics DoubleConv forward. x_nchw: (N, Cin, H, W) float32."""
    N, Cin, H, W = x_nchw.shape
    Cout = params["w1"].shape[0]
    Cin_p = _round_up(Cin, LANE)
    Cout_p = _round_up(Cout, LANE)

    # Boundary glue (fused by XLA into one pass each way): NCHW->NHWC, pad
    # channels to the 128-lane width, spatial halo pad, bf16 cast for the MXU.
    # NOTE: for a truly tiny first-layer Cin the channel pad of x could be
    # skipped (small contraction instead); kept here for uniform lane density.
    x = jnp.transpose(x_nchw, (0, 2, 3, 1))
    xp = jnp.pad(x, ((0, 0), (PAD, PAD), (PAD, PAD),
                     (0, Cin_p - Cin))).astype(jnp.bfloat16)

    w1 = _prep_conv_weight(params["w1"], Cin_p, Cout_p)
    w2 = _prep_conv_weight(params["w2"], Cout_p, Cout_p)
    b1, b2 = _pad_vec(params["b1"], Cout_p), _pad_vec(params["b2"], Cout_p)
    g1, be1 = _pad_vec(params["g1"], Cout_p), _pad_vec(params["be1"], Cout_p)
    g2, be2 = _pad_vec(params["g2"], Cout_p), _pad_vec(params["be2"], Cout_p)

    cp = pltpu.CompilerParams(dimension_semantics=("parallel",),
                              vmem_limit_bytes=VMEM_LIMIT)
    act_shape = jax.ShapeDtypeStruct((N, H, W, Cout_p), jnp.float32)
    st_shape = jax.ShapeDtypeStruct((N, STATS_ROWS, Cout_p), jnp.float32)

    # Pass 1: conv1 + bias (per-image tiles) + partial BN1 stats.
    y1, st1 = pl.pallas_call(
        _conv_bias_stats_kernel,
        grid=(N,),
        in_specs=[_img_spec(xp.shape), _rep_spec(w1.shape), _rep_spec(b1.shape)],
        out_specs=(_img_spec(act_shape.shape), _img_spec(st_shape.shape)),
        out_shape=(act_shape, st_shape),
        compiler_params=cp,
    )(xp, w1, b1)

    scale1, shift1 = _bn_fold(st1, g1, be1, N * H * W)

    # Pass 2: fused BN1+ReLU -> conv2 + bias + partial BN2 stats.
    y2, st2 = pl.pallas_call(
        _bn_relu_conv_stats_kernel,
        grid=(N,),
        in_specs=[_img_spec(y1.shape), _rep_spec(scale1.shape),
                  _rep_spec(shift1.shape), _rep_spec(w2.shape),
                  _rep_spec(b2.shape)],
        out_specs=(_img_spec(act_shape.shape), _img_spec(st_shape.shape)),
        out_shape=(act_shape, st_shape),
        compiler_params=cp,
    )(y1, scale1, shift1, w2, b2)

    scale2, shift2 = _bn_fold(st2, g2, be2, N * H * W)

    # Pass 3: fused BN2 + ReLU (elementwise), lane-dense output.
    out = pl.pallas_call(
        _bn_relu_kernel,
        grid=(N,),
        in_specs=[_img_spec(y2.shape), _rep_spec(scale2.shape),
                  _rep_spec(shift2.shape)],
        out_specs=_img_spec(act_shape.shape),
        out_shape=act_shape,
        compiler_params=cp,
    )(y2, scale2, shift2)

    # Back to PyTorch NCHW; drop the channel padding.
    return jnp.transpose(out[..., :Cout], (0, 3, 1, 2))


# ---------------------------------------------------------------------------
# Pure-JAX reference (for correctness checking)
# ---------------------------------------------------------------------------

def _ref_double_conv(x, params, matmul_dtype=jnp.float32):
    def conv(x, w, b):
        y = jax.lax.conv_general_dilated(
            x.astype(matmul_dtype), w.astype(matmul_dtype), (1, 1),
            ((PAD, PAD), (PAD, PAD)),
            dimension_numbers=("NCHW", "OIHW", "NCHW"),
            preferred_element_type=jnp.float32)
        return y + b[None, :, None, None]

    def bn_relu(y, g, be):
        mean = jnp.mean(y, axis=(0, 2, 3), keepdims=True)
        var = jnp.mean((y - mean) ** 2, axis=(0, 2, 3), keepdims=True)
        yn = (y - mean) / jnp.sqrt(var + EPS)
        return jnp.maximum(yn * g[None, :, None, None]
                           + be[None, :, None, None], 0.0)

    y = bn_relu(conv(x, params["w1"], params["b1"]), params["g1"], params["be1"])
    y = bn_relu(conv(y, params["w2"], params["b2"]), params["g2"], params["be2"])
    return y


if __name__ == "__main__":
    key = jax.random.PRNGKey(0)
    N, Cin, Cout, H, W = 2, 4, 8, 16, 16
    ks = jax.random.split(key, 6)

    x = jax.random.normal(ks[0], (N, Cin, H, W), jnp.float32)
    params = dict(
        w1=jax.random.normal(ks[1], (Cout, Cin, K, K), jnp.float32) * 0.1,
        b1=jax.random.normal(ks[2], (Cout,), jnp.float32) * 0.1,
        g1=jnp.ones((Cout,), jnp.float32),    # BN default gamma=1
        be1=jnp.zeros((Cout,), jnp.float32),  # BN default beta=0
        w2=jax.random.normal(ks[3], (Cout, Cout, K, K), jnp.float32) * 0.1,
        b2=jax.random.normal(ks[4], (Cout,), jnp.float32) * 0.1,
        g2=jnp.ones((Cout,), jnp.float32),
        be2=jnp.zeros((Cout,), jnp.float32),
    )

    out = jax.jit(double_conv)(x, params)
    jax.block_until_ready(out)
    assert out.shape == (N, Cout, H, W)

    # Tight check vs. a reference that quantizes matmul inputs to bf16 the same
    # way the kernel does (f32 everywhere else), plus a loose sanity check vs.
    # the pure-f32 reference.
    ref_bf16 = _ref_double_conv(x, params, matmul_dtype=jnp.bfloat16)
    ref_f32 = _ref_double_conv(x, params, matmul_dtype=jnp.float32)
    assert jnp.allclose(out, ref_bf16, atol=3e-3, rtol=3e-3), \
        float(jnp.max(jnp.abs(out - ref_bf16)))
    assert jnp.allclose(out, ref_f32, atol=5e-2, rtol=5e-2), \
        float(jnp.max(jnp.abs(out - ref_f32)))

    print("KERNEL_OK")
</pallas_src>

<mosaic_0001>
module attributes {stable_mosaic.version = 11 : i64} {
  func.func @_conv_bias_stats_kernel(%arg0: i32, %arg1: memref<1x18x18x128xbf16, #tpu.memory_space<vmem>>, %arg2: memref<3x384x128xbf16, #tpu.memory_space<vmem>>, %arg3: memref<1x128xf32, #tpu.memory_space<vmem>>, %arg4: memref<1x16x16x128xf32, #tpu.memory_space<vmem>>, %arg5: memref<1x8x128xf32, #tpu.memory_space<vmem>>) attributes {dimension_semantics = [#tpu.dimension_semantics<parallel>], iteration_bounds = array<i64: 2>, scalar_prefetch = 0 : i64, scratch_operands = 0 : i64, tpu.core_type = #tpu.core_type<tc>, window_params = [{transform_indices = @transform_0, window_bounds = array<i64: 1, 18, 18, 128>}, {pipeline_mode = #tpu.pipeline_mode<synchronous>, transform_indices = @transform_1, window_bounds = array<i64: 3, 384, 128>}, {pipeline_mode = #tpu.pipeline_mode<synchronous>, transform_indices = @transform_2, window_bounds = array<i64: 1, 128>}, {transform_indices = @transform_3, window_bounds = array<i64: 1, 16, 16, 128>}, {transform_indices = @transform_4, window_bounds = array<i64: 1, 8, 128>}]} {
    %c0 = arith.constant 0 : index
    %c0_0 = arith.constant 0 : index
    %c0_1 = arith.constant 0 : index
    %c0_2 = arith.constant 0 : index
    %0 = vector.load %arg1[%c0, %c0_0, %c0_1, %c0_2] : memref<1x18x18x128xbf16, #tpu.memory_space<vmem>>, vector<1x18x18x128xbf16>
    %1 = vector.shape_cast %0 : vector<1x18x18x128xbf16> to vector<18x18x128xbf16>
    %cst = arith.constant 0.000000e+00 : f32
    %2 = vector.broadcast %cst : f32 to vector<256x128xf32>
    %3 = vector.extract_strided_slice %1 {offsets = [0, 0, 0], sizes = [16, 18, 128], strides = [1, 1, 1]} : vector<18x18x128xbf16> to vector<16x18x128xbf16>
    %4 = vector.extract_strided_slice %3 {offsets = [0, 0, 0], sizes = [16, 16, 128], strides = [1, 1, 1]} : vector<16x18x128xbf16> to vector<16x16x128xbf16>
    %5 = vector.extract_strided_slice %3 {offsets = [0, 1, 0], sizes = [16, 16, 128], strides = [1, 1, 1]} : vector<16x18x128xbf16> to vector<16x16x128xbf16>
    %6 = vector.extract_strided_slice %3 {offsets = [0, 2, 0], sizes = [16, 16, 128], strides = [1, 1, 1]} : vector<16x18x128xbf16> to vector<16x16x128xbf16>
    %7 = tpu.concatenate %4, %5, %6 in 2 : vector<16x16x128xbf16>, vector<16x16x128xbf16>, vector<16x16x128xbf16> -> vector<16x16x384xbf16>
    %8 = vector.shape_cast %7 : vector<16x16x384xbf16> to vector<256x384xbf16>
    %c0_3 = arith.constant 0 : index
    %c0_4 = arith.constant 0 : index
    %c0_5 = arith.constant 0 : index
    %9 = vector.load %arg2[%c0_3, %c0_4, %c0_5] : memref<3x384x128xbf16, #tpu.memory_space<vmem>>, vector<1x384x128xbf16>
    %10 = vector.shape_cast %9 : vector<1x384x128xbf16> to vector<384x128xbf16>
    %cst_6 = arith.constant dense<0.000000e+00> : vector<256x128xf32>
    %11 = tpu.matmul %8, %10, %cst_6 {dimension_numbers = #tpu.dot_dimension_numbers<[1], [0], [0], [1], [0, 0, 1, 1], [], []>} : vector<256x384xbf16>, vector<384x128xbf16>, vector<256x128xf32> -> vector<256x128xf32>
    %12 = arith.addf %2, %11 : vector<256x128xf32>
    %13 = vector.extract_strided_slice %1 {offsets = [1, 0, 0], sizes = [16, 18, 128], strides = [1, 1, 1]} : vector<18x18x128xbf16> to vector<16x18x128xbf16>
    %14 = vector.extract_strided_slice %13 {offsets = [0, 0, 0], sizes = [16, 16, 128], strides = [1, 1, 1]} : vector<16x18x128xbf16> to vector<16x16x128xbf16>
    %15 = vector.extract_strided_slice %13 {offsets = [0, 1, 0], sizes = [16, 16, 128], strides = [1, 1, 1]} : vector<16x18x128xbf16> to vector<16x16x128xbf16>
    %16 = vector.extract_strided_slice %13 {offsets = [0, 2, 0], sizes = [16, 16, 128], strides = [1, 1, 1]} : vector<16x18x128xbf16> to vector<16x16x128xbf16>
    %17 = tpu.concatenate %14, %15, %16 in 2 : vector<16x16x128xbf16>, vector<16x16x128xbf16>, vector<16x16x128xbf16> -> vector<16x16x384xbf16>
    %18 = vector.shape_cast %17 : vector<16x16x384xbf16> to vector<256x384xbf16>
    %c1 = arith.constant 1 : index
    %c0_7 = arith.constant 0 : index
    %c0_8 = arith.constant 0 : index
    %19 = vector.load %arg2[%c1, %c0_7, %c0_8] : memref<3x384x128xbf16, #tpu.memory_space<vmem>>, vector<1x384x128xbf16>
    %20 = vector.shape_cast %19 : vector<1x384x128xbf16> to vector<384x128xbf16>
    %cst_9 = arith.constant dense<0.000000e+00> : vector<256x128xf32>
    %21 = tpu.matmul %18, %20, %cst_9 {dimension_numbers = #tpu.dot_dimension_numbers<[1], [0], [0], [1], [0, 0, 1, 1], [], []>} : vector<256x384xbf16>, vector<384x128xbf16>, vector<256x128xf32> -> vector<256x128xf32>
    %22 = arith.addf %12, %21 : vector<256x128xf32>
    %23 = vector.extract_strided_slice %1 {offsets = [2, 0, 0], sizes = [16, 18, 128], strides = [1, 1, 1]} : vector<18x18x128xbf16> to vector<16x18x128xbf16>
    %24 = vector.extract_strided_slice %23 {offsets = [0, 0, 0], sizes = [16, 16, 128], strides = [1, 1, 1]} : vector<16x18x128xbf16> to vector<16x16x128xbf16>
    %25 = vector.extract_strided_slice %23 {offsets = [0, 1, 0], sizes = [16, 16, 128], strides = [1, 1, 1]} : vector<16x18x128xbf16> to vector<16x16x128xbf16>
    %26 = vector.extract_strided_slice %23 {offsets = [0, 2, 0], sizes = [16, 16, 128], strides = [1, 1, 1]} : vector<16x18x128xbf16> to vector<16x16x128xbf16>
    %27 = tpu.concatenate %24, %25, %26 in 2 : vector<16x16x128xbf16>, vector<16x16x128xbf16>, vector<16x16x128xbf16> -> vector<16x16x384xbf16>
    %28 = vector.shape_cast %27 : vector<16x16x384xbf16> to vector<256x384xbf16>
    %c2 = arith.constant 2 : index
    %c0_10 = arith.constant 0 : index
    %c0_11 = arith.constant 0 : index
    %29 = vector.load %arg2[%c2, %c0_10, %c0_11] : memref<3x384x128xbf16, #tpu.memory_space<vmem>>, vector<1x384x128xbf16>
    %30 = vector.shape_cast %29 : vector<1x384x128xbf16> to vector<384x128xbf16>
    %cst_12 = arith.constant dense<0.000000e+00> : vector<256x128xf32>
    %31 = tpu.matmul %28, %30, %cst_12 {dimension_numbers = #tpu.dot_dimension_numbers<[1], [0], [0], [1], [0, 0, 1, 1], [], []>} : vector<256x384xbf16>, vector<384x128xbf16>, vector<256x128xf32> -> vector<256x128xf32>
    %32 = arith.addf %22, %31 : vector<256x128xf32>
    %c0_13 = arith.constant 0 : index
    %c0_14 = arith.constant 0 : index
    %33 = vector.load %arg3[%c0_13, %c0_14] : memref<1x128xf32, #tpu.memory_space<vmem>>, vector<1x128xf32>
    %34 = vector.shape_cast %33 : vector<1x128xf32> to vector<128xf32>
    %35 = vector.shape_cast %34 : vector<128xf32> to vector<1x128xf32>
    %36 = vector.broadcast %35 : vector<1x128xf32> to vector<256x128xf32>
    %37 = arith.addf %32, %36 : vector<256x128xf32>
    %38 = vector.shape_cast %37 : vector<256x128xf32> to vector<16x16x128xf32>
    %c0_15 = arith.constant 0 : index
    %c0_16 = arith.constant 0 : index
    %c0_17 = arith.constant 0 : index
    %c0_18 = arith.constant 0 : index
    %39 = vector.load %arg4[%c0_15, %c0_16, %c0_17, %c0_18] : memref<1x16x16x128xf32, #tpu.memory_space<vmem>>, vector<1x16x16x128xf32>
    %40 = vector.shape_cast %39 : vector<1x16x16x128xf32> to vector<16x16x128xf32>
    %41 = vector.shape_cast %38 : vector<16x16x128xf32> to vector<1x16x16x128xf32>
    tpu.vector_store %arg4[%c0_15, %c0_16, %c0_17, %c0_18], %41 {strides = array<i32>} : memref<1x16x16x128xf32, #tpu.memory_space<vmem>>, vector<1x16x16x128xf32>,
    %cst_19 = arith.constant dense<0.000000e+00> : vector<128xf32>
    %42 = vector.multi_reduction <add>, %37, %cst_19 [0] : vector<256x128xf32> to vector<128xf32>
    %43 = vector.shape_cast %42 : vector<128xf32> to vector<1x128xf32>
    %44 = arith.mulf %37, %37 : vector<256x128xf32>
    %cst_20 = arith.constant dense<0.000000e+00> : vector<128xf32>
    %45 = vector.multi_reduction <add>, %44, %cst_20 [0] : vector<256x128xf32> to vector<128xf32>
    %46 = vector.shape_cast %45 : vector<128xf32> to vector<1x128xf32>
    %cst_21 = arith.constant 0.000000e+00 : f32
    %47 = vector.broadcast %cst_21 : f32 to vector<6x128xf32>
    %48 = tpu.concatenate %43, %46, %47 in 0 : vector<1x128xf32>, vector<1x128xf32>, vector<6x128xf32> -> vector<8x128xf32>
    %c0_22 = arith.constant 0 : index
    %c0_23 = arith.constant 0 : index
    %c0_24 = arith.constant 0 : index
    %49 = vector.load %arg5[%c0_22, %c0_23, %c0_24] : memref<1x8x128xf32, #tpu.memory_space<vmem>>, vector<1x8x128xf32>
    %50 = vector.shape_cast %49 : vector<1x8x128xf32> to vector<8x128xf32>
    %51 = vector.shape_cast %48 : vector<8x128xf32> to vector<1x8x128xf32>
    tpu.vector_store %arg5[%c0_22, %c0_23, %c0_24], %51 {strides = array<i32>} : memref<1x8x128xf32, #tpu.memory_space<vmem>>, vector<1x8x128xf32>,
    return
  }
  func.func @transform_0(%arg0: i32) -> (i32, i32, i32, i32) {
    %c0_i32 = arith.constant 0 : i32
    %c0_i32_0 = arith.constant 0 : i32
    %c0_i32_1 = arith.constant 0 : i32
    %c0_i32_2 = arith.constant 0 : i32
    return %arg0, %c0_i32, %c0_i32_0, %c0_i32_1 : i32, i32, i32, i32
  }
  func.func @transform_1(%arg0: i32) -> (i32, i32, i32) {
    %c0_i32 = arith.constant 0 : i32
    %c0_i32_0 = arith.constant 0 : i32
    %c0_i32_1 = arith.constant 0 : i32
    %c0_i32_2 = arith.constant 0 : i32
    return %c0_i32, %c0_i32_0, %c0_i32_1 : i32, i32, i32
  }
  func.func @transform_2(%arg0: i32) -> (i32, i32) {
    %c0_i32 = arith.constant 0 : i32
    %c0_i32_0 = arith.constant 0 : i32
    %c0_i32_1 = arith.constant 0 : i32
    return %c0_i32, %c0_i32_0 : i32, i32
  }
  func.func @transform_3(%arg0: i32) -> (i32, i32, i32, i32) {
    %c0_i32 = arith.constant 0 : i32
    %c0_i32_0 = arith.constant 0 : i32
    %c0_i32_1 = arith.constant 0 : i32
    %c0_i32_2 = arith.constant 0 : i32
    return %arg0, %c0_i32, %c0_i32_0, %c0_i32_1 : i32, i32, i32, i32
  }
  func.func @transform_4(%arg0: i32) -> (i32, i32, i32) {
    %c0_i32 = arith.constant 0 : i32
    %c0_i32_0 = arith.constant 0 : i32
    %c0_i32_1 = arith.constant 0 : i32
    return %arg0, %c0_i32, %c0_i32_0 : i32, i32, i32
  }
}

module attributes {stable_mosaic.version = 11 : i64} {
  func.func @_bn_relu_conv_stats_kernel(%arg0: i32, %arg1: memref<1x16x16x128xf32, #tpu.memory_space<vmem>>, %arg2: memref<1x128xf32, #tpu.memory_space<vmem>>, %arg3: memref<1x128xf32, #tpu.memory_space<vmem>>, %arg4: memref<3x384x128xbf16, #tpu.memory_space<vmem>>, %arg5: memref<1x128xf32, #tpu.memory_space<vmem>>, %arg6: memref<1x16x16x128xf32, #tpu.memory_space<vmem>>, %arg7: memref<1x8x128xf32, #tpu.memory_space<vmem>>) attributes {dimension_semantics = [#tpu.dimension_semantics<parallel>], iteration_bounds = array<i64: 2>, scalar_prefetch = 0 : i64, scratch_operands = 0 : i64, tpu.core_type = #tpu.core_type<tc>, window_params = [{transform_indices = @transform_0, window_bounds = array<i64: 1, 16, 16, 128>}, {pipeline_mode = #tpu.pipeline_mode<synchronous>, transform_indices = @transform_1, window_bounds = array<i64: 1, 128>}, {pipeline_mode = #tpu.pipeline_mode<synchronous>, transform_indices = @transform_2, window_bounds = array<i64: 1, 128>}, {pipeline_mode = #tpu.pipeline_mode<synchronous>, transform_indices = @transform_3, window_bounds = array<i64: 3, 384, 128>}, {pipeline_mode = #tpu.pipeline_mode<synchronous>, transform_indices = @transform_4, window_bounds = array<i64: 1, 128>}, {transform_indices = @transform_5, window_bounds = array<i64: 1, 16, 16, 128>}, {transform_indices = @transform_6, window_bounds = array<i64: 1, 8, 128>}]} {
    %c0 = arith.constant 0 : index
    %c0_0 = arith.constant 0 : index
    %c0_1 = arith.constant 0 : index
    %c0_2 = arith.constant 0 : index
    %0 = vector.load %arg1[%c0, %c0_0, %c0_1, %c0_2] : memref<1x16x16x128xf32, #tpu.memory_space<vmem>>, vector<1x16x16x128xf32>
    %1 = vector.shape_cast %0 : vector<1x16x16x128xf32> to vector<16x16x128xf32>
    %c0_3 = arith.constant 0 : index
    %c0_4 = arith.constant 0 : index
    %2 = vector.load %arg2[%c0_3, %c0_4] : memref<1x128xf32, #tpu.memory_space<vmem>>, vector<1x128xf32>
    %3 = vector.shape_cast %2 : vector<1x128xf32> to vector<128xf32>
    %4 = vector.shape_cast %3 : vector<128xf32> to vector<1x1x128xf32>
    %5 = vector.broadcast %4 : vector<1x1x128xf32> to vector<16x16x128xf32>
    %6 = arith.mulf %1, %5 : vector<16x16x128xf32>
    %c0_5 = arith.constant 0 : index
    %c0_6 = arith.constant 0 : index
    %7 = vector.load %arg3[%c0_5, %c0_6] : memref<1x128xf32, #tpu.memory_space<vmem>>, vector<1x128xf32>
    %8 = vector.shape_cast %7 : vector<1x128xf32> to vector<128xf32>
    %9 = vector.shape_cast %8 : vector<128xf32> to vector<1x1x128xf32>
    %10 = vector.broadcast %9 : vector<1x1x128xf32> to vector<16x16x128xf32>
    %11 = arith.addf %6, %10 : vector<16x16x128xf32>
    %cst = arith.constant 0.000000e+00 : f32
    %12 = vector.broadcast %cst : f32 to vector<16x16x128xf32>
    %13 = arith.maximumf %11, %12 : vector<16x16x128xf32>
    %14 = arith.truncf %13 : vector<16x16x128xf32> to vector<16x16x128xbf16>
    %cst_7 = arith.constant 0.000000e+00 : bf16
    %15 = vector.broadcast %cst_7 : bf16 to vector<16x1x128xbf16>
    %16 = tpu.concatenate %15, %14, %15 in 1 : vector<16x1x128xbf16>, vector<16x16x128xbf16>, vector<16x1x128xbf16> -> vector<16x18x128xbf16>
    %cst_8 = arith.constant 0.000000e+00 : bf16
    %17 = vector.broadcast %cst_8 : bf16 to vector<1x18x128xbf16>
    %18 = tpu.concatenate %17, %16, %17 in 0 : vector<1x18x128xbf16>, vector<16x18x128xbf16>, vector<1x18x128xbf16> -> vector<18x18x128xbf16>
    %cst_9 = arith.constant 0.000000e+00 : f32
    %19 = vector.broadcast %cst_9 : f32 to vector<256x128xf32>
    %20 = vector.extract_strided_slice %18 {offsets = [0, 0, 0], sizes = [16, 18, 128], strides = [1, 1, 1]} : vector<18x18x128xbf16> to vector<16x18x128xbf16>
    %21 = vector.extract_strided_slice %20 {offsets = [0, 0, 0], sizes = [16, 16, 128], strides = [1, 1, 1]} : vector<16x18x128xbf16> to vector<16x16x128xbf16>
    %22 = vector.extract_strided_slice %20 {offsets = [0, 1, 0], sizes = [16, 16, 128], strides = [1, 1, 1]} : vector<16x18x128xbf16> to vector<16x16x128xbf16>
    %23 = vector.extract_strided_slice %20 {offsets = [0, 2, 0], sizes = [16, 16, 128], strides = [1, 1, 1]} : vector<16x18x128xbf16> to vector<16x16x128xbf16>
    %24 = tpu.concatenate %21, %22, %23 in 2 : vector<16x16x128xbf16>, vector<16x16x128xbf16>, vector<16x16x128xbf16> -> vector<16x16x384xbf16>
    %25 = vector.shape_cast %24 : vector<16x16x384xbf16> to vector<256x384xbf16>
    %c0_10 = arith.constant 0 : index
    %c0_11 = arith.constant 0 : index
    %c0_12 = arith.constant 0 : index
    %26 = vector.load %arg4[%c0_10, %c0_11, %c0_12] : memref<3x384x128xbf16, #tpu.memory_space<vmem>>, vector<1x384x128xbf16>
    %27 = vector.shape_cast %26 : vector<1x384x128xbf16> to vector<384x128xbf16>
    %cst_13 = arith.constant dense<0.000000e+00> : vector<256x128xf32>
    %28 = tpu.matmul %25, %27, %cst_13 {dimension_numbers = #tpu.dot_dimension_numbers<[1], [0], [0], [1], [0, 0, 1, 1], [], []>} : vector<256x384xbf16>, vector<384x128xbf16>, vector<256x128xf32> -> vector<256x128xf32>
    %29 = arith.addf %19, %28 : vector<256x128xf32>
    %30 = vector.extract_strided_slice %18 {offsets = [1, 0, 0], sizes = [16, 18, 128], strides = [1, 1, 1]} : vector<18x18x128xbf16> to vector<16x18x128xbf16>
    %31 = vector.extract_strided_slice %30 {offsets = [0, 0, 0], sizes = [16, 16, 128], strides = [1, 1, 1]} : vector<16x18x128xbf16> to vector<16x16x128xbf16>
    %32 = vector.extract_strided_slice %30 {offsets = [0, 1, 0], sizes = [16, 16, 128], strides = [1, 1, 1]} : vector<16x18x128xbf16> to vector<16x16x128xbf16>
    %33 = vector.extract_strided_slice %30 {offsets = [0, 2, 0], sizes = [16, 16, 128], strides = [1, 1, 1]} : vector<16x18x128xbf16> to vector<16x16x128xbf16>
    %34 = tpu.concatenate %31, %32, %33 in 2 : vector<16x16x128xbf16>, vector<16x16x128xbf16>, vector<16x16x128xbf16> -> vector<16x16x384xbf16>
    %35 = vector.shape_cast %34 : vector<16x16x384xbf16> to vector<256x384xbf16>
    %c1 = arith.constant 1 : index
    %c0_14 = arith.constant 0 : index
    %c0_15 = arith.constant 0 : index
    %36 = vector.load %arg4[%c1, %c0_14, %c0_15] : memref<3x384x128xbf16, #tpu.memory_space<vmem>>, vector<1x384x128xbf16>
    %37 = vector.shape_cast %36 : vector<1x384x128xbf16> to vector<384x128xbf16>
    %cst_16 = arith.constant dense<0.000000e+00> : vector<256x128xf32>
    %38 = tpu.matmul %35, %37, %cst_16 {dimension_numbers = #tpu.dot_dimension_numbers<[1], [0], [0], [1], [0, 0, 1, 1], [], []>} : vector<256x384xbf16>, vector<384x128xbf16>, vector<256x128xf32> -> vector<256x128xf32>
    %39 = arith.addf %29, %38 : vector<256x128xf32>
    %40 = vector.extract_strided_slice %18 {offsets = [2, 0, 0], sizes = [16, 18, 128], strides = [1, 1, 1]} : vector<18x18x128xbf16> to vector<16x18x128xbf16>
    %41 = vector.extract_strided_slice %40 {offsets = [0, 0, 0], sizes = [16, 16, 128], strides = [1, 1, 1]} : vector<16x18x128xbf16> to vector<16x16x128xbf16>
    %42 = vector.extract_strided_slice %40 {offsets = [0, 1, 0], sizes = [16, 16, 128], strides = [1, 1, 1]} : vector<16x18x128xbf16> to vector<16x16x128xbf16>
    %43 = vector.extract_strided_slice %40 {offsets = [0, 2, 0], sizes = [16, 16, 128], strides = [1, 1, 1]} : vector<16x18x128xbf16> to vector<16x16x128xbf16>
    %44 = tpu.concatenate %41, %42, %43 in 2 : vector<16x16x128xbf16>, vector<16x16x128xbf16>, vector<16x16x128xbf16> -> vector<16x16x384xbf16>
    %45 = vector.shape_cast %44 : vector<16x16x384xbf16> to vector<256x384xbf16>
    %c2 = arith.constant 2 : index
    %c0_17 = arith.constant 0 : index
    %c0_18 = arith.constant 0 : index
    %46 = vector.load %arg4[%c2, %c0_17, %c0_18] : memref<3x384x128xbf16, #tpu.memory_space<vmem>>, vector<1x384x128xbf16>
    %47 = vector.shape_cast %46 : vector<1x384x128xbf16> to vector<384x128xbf16>
    %cst_19 = arith.constant dense<0.000000e+00> : vector<256x128xf32>
    %48 = tpu.matmul %45, %47, %cst_19 {dimension_numbers = #tpu.dot_dimension_numbers<[1], [0], [0], [1], [0, 0, 1, 1], [], []>} : vector<256x384xbf16>, vector<384x128xbf16>, vector<256x128xf32> -> vector<256x128xf32>
    %49 = arith.addf %39, %48 : vector<256x128xf32>
    %c0_20 = arith.constant 0 : index
    %c0_21 = arith.constant 0 : index
    %50 = vector.load %arg5[%c0_20, %c0_21] : memref<1x128xf32, #tpu.memory_space<vmem>>, vector<1x128xf32>
    %51 = vector.shape_cast %50 : vector<1x128xf32> to vector<128xf32>
    %52 = vector.shape_cast %51 : vector<128xf32> to vector<1x128xf32>
    %53 = vector.broadcast %52 : vector<1x128xf32> to vector<256x128xf32>
    %54 = arith.addf %49, %53 : vector<256x128xf32>
    %55 = vector.shape_cast %54 : vector<256x128xf32> to vector<16x16x128xf32>
    %c0_22 = arith.constant 0 : index
    %c0_23 = arith.constant 0 : index
    %c0_24 = arith.constant 0 : index
    %c0_25 = arith.constant 0 : index
    %56 = vector.load %arg6[%c0_22, %c0_23, %c0_24, %c0_25] : memref<1x16x16x128xf32, #tpu.memory_space<vmem>>, vector<1x16x16x128xf32>
    %57 = vector.shape_cast %56 : vector<1x16x16x128xf32> to vector<16x16x128xf32>
    %58 = vector.shape_cast %55 : vector<16x16x128xf32> to vector<1x16x16x128xf32>
    tpu.vector_store %arg6[%c0_22, %c0_23, %c0_24, %c0_25], %58 {strides = array<i32>} : memref<1x16x16x128xf32, #tpu.memory_space<vmem>>, vector<1x16x16x128xf32>,
    %cst_26 = arith.constant dense<0.000000e+00> : vector<128xf32>
    %59 = vector.multi_reduction <add>, %54, %cst_26 [0] : vector<256x128xf32> to vector<128xf32>
    %60 = vector.shape_cast %59 : vector<128xf32> to vector<1x128xf32>
    %61 = arith.mulf %54, %54 : vector<256x128xf32>
    %cst_27 = arith.constant dense<0.000000e+00> : vector<128xf32>
    %62 = vector.multi_reduction <add>, %61, %cst_27 [0] : vector<256x128xf32> to vector<128xf32>
    %63 = vector.shape_cast %62 : vector<128xf32> to vector<1x128xf32>
    %cst_28 = arith.constant 0.000000e+00 : f32
    %64 = vector.broadcast %cst_28 : f32 to vector<6x128xf32>
    %65 = tpu.concatenate %60, %63, %64 in 0 : vector<1x128xf32>, vector<1x128xf32>, vector<6x128xf32> -> vector<8x128xf32>
    %c0_29 = arith.constant 0 : index
    %c0_30 = arith.constant 0 : index
    %c0_31 = arith.constant 0 : index
    %66 = vector.load %arg7[%c0_29, %c0_30, %c0_31] : memref<1x8x128xf32, #tpu.memory_space<vmem>>, vector<1x8x128xf32>
    %67 = vector.shape_cast %66 : vector<1x8x128xf32> to vector<8x128xf32>
    %68 = vector.shape_cast %65 : vector<8x128xf32> to vector<1x8x128xf32>
    tpu.vector_store %arg7[%c0_29, %c0_30, %c0_31], %68 {strides = array<i32>} : memref<1x8x128xf32, #tpu.memory_space<vmem>>, vector<1x8x128xf32>,
    return
  }
  func.func @transform_0(%arg0: i32) -> (i32, i32, i32, i32) {
    %c0_i32 = arith.constant 0 : i32
    %c0_i32_0 = arith.constant 0 : i32
    %c0_i32_1 = arith.constant 0 : i32
    %c0_i32_2 = arith.constant 0 : i32
    return %arg0, %c0_i32, %c0_i32_0, %c0_i32_1 : i32, i32, i32, i32
  }
  func.func @transform_1(%arg0: i32) -> (i32, i32) {
    %c0_i32 = arith.constant 0 : i32
    %c0_i32_0 = arith.constant 0 : i32
    %c0_i32_1 = arith.constant 0 : i32
    return %c0_i32, %c0_i32_0 : i32, i32
  }
  func.func @transform_2(%arg0: i32) -> (i32, i32) {
    %c0_i32 = arith.constant 0 : i32
    %c0_i32_0 = arith.constant 0 : i32
    %c0_i32_1 = arith.constant 0 : i32
    return %c0_i32, %c0_i32_0 : i32, i32
  }
  func.func @transform_3(%arg0: i32) -> (i32, i32, i32) {
    %c0_i32 = arith.constant 0 : i32
    %c0_i32_0 = arith.constant 0 : i32
    %c0_i32_1 = arith.constant 0 : i32
    %c0_i32_2 = arith.constant 0 : i32
    return %c0_i32, %c0_i32_0, %c0_i32_1 : i32, i32, i32
  }
  func.func @transform_4(%arg0: i32) -> (i32, i32) {
    %c0_i32 = arith.constant 0 : i32
    %c0_i32_0 = arith.constant 0 : i32
    %c0_i32_1 = arith.constant 0 : i32
    return %c0_i32, %c0_i32_0 : i32, i32
  }
  func.func @transform_5(%arg0: i32) -> (i32, i32, i32, i32) {
    %c0_i32 = arith.constant 0 : i32
    %c0_i32_0 = arith.constant 0 : i32
    %c0_i32_1 = arith.constant 0 : i32
    %c0_i32_2 = arith.constant 0 : i32
    return %arg0, %c0_i32, %c0_i32_0, %c0_i32_1 : i32, i32, i32, i32
  }
  func.func @transform_6(%arg0: i32) -> (i32, i32, i32) {
    %c0_i32 = arith.constant 0 : i32
    %c0_i32_0 = arith.constant 0 : i32
    %c0_i32_1 = arith.constant 0 : i32
    return %arg0, %c0_i32, %c0_i32_0 : i32, i32, i32
  }
}

module attributes {stable_mosaic.version = 11 : i64} {
  func.func @_bn_relu_kernel(%arg0: i32, %arg1: memref<1x16x16x128xf32, #tpu.memory_space<vmem>>, %arg2: memref<1x128xf32, #tpu.memory_space<vmem>>, %arg3: memref<1x128xf32, #tpu.memory_space<vmem>>, %arg4: memref<1x16x16x128xf32, #tpu.memory_space<vmem>>) attributes {dimension_semantics = [#tpu.dimension_semantics<parallel>], iteration_bounds = array<i64: 2>, scalar_prefetch = 0 : i64, scratch_operands = 0 : i64, tpu.core_type = #tpu.core_type<tc>, window_params = [{transform_indices = @transform_0, window_bounds = array<i64: 1, 16, 16, 128>}, {pipeline_mode = #tpu.pipeline_mode<synchronous>, transform_indices = @transform_1, window_bounds = array<i64: 1, 128>}, {pipeline_mode = #tpu.pipeline_mode<synchronous>, transform_indices = @transform_2, window_bounds = array<i64: 1, 128>}, {transform_indices = @transform_3, window_bounds = array<i64: 1, 16, 16, 128>}]} {
    %c0 = arith.constant 0 : index
    %c0_0 = arith.constant 0 : index
    %c0_1 = arith.constant 0 : index
    %c0_2 = arith.constant 0 : index
    %0 = vector.load %arg1[%c0, %c0_0, %c0_1, %c0_2] : memref<1x16x16x128xf32, #tpu.memory_space<vmem>>, vector<1x16x16x128xf32>
    %1 = vector.shape_cast %0 : vector<1x16x16x128xf32> to vector<16x16x128xf32>
    %c0_3 = arith.constant 0 : index
    %c0_4 = arith.constant 0 : index
    %2 = vector.load %arg2[%c0_3, %c0_4] : memref<1x128xf32, #tpu.memory_space<vmem>>, vector<1x128xf32>
    %3 = vector.shape_cast %2 : vector<1x128xf32> to vector<128xf32>
    %4 = vector.shape_cast %3 : vector<128xf32> to vector<1x1x128xf32>
    %5 = vector.broadcast %4 : vector<1x1x128xf32> to vector<16x16x128xf32>
    %6 = arith.mulf %1, %5 : vector<16x16x128xf32>
    %c0_5 = arith.constant 0 : index
    %c0_6 = arith.constant 0 : index
    %7 = vector.load %arg3[%c0_5, %c0_6] : memref<1x128xf32, #tpu.memory_space<vmem>>, vector<1x128xf32>
    %8 = vector.shape_cast %7 : vector<1x128xf32> to vector<128xf32>
    %9 = vector.shape_cast %8 : vector<128xf32> to vector<1x1x128xf32>
    %10 = vector.broadcast %9 : vector<1x1x128xf32> to vector<16x16x128xf32>
    %11 = arith.addf %6, %10 : vector<16x16x128xf32>
    %cst = arith.constant 0.000000e+00 : f32
    %12 = vector.broadcast %cst : f32 to vector<16x16x128xf32>
    %13 = arith.maximumf %11, %12 : vector<16x16x128xf32>
    %c0_7 = arith.constant 0 : index
    %c0_8 = arith.constant 0 : index
    %c0_9 = arith.constant 0 : index
    %c0_10 = arith.constant 0 : index
    %14 = vector.load %arg4[%c0_7, %c0_8, %c0_9, %c0_10] : memref<1x16x16x128xf32, #tpu.memory_space<vmem>>, vector<1x16x16x128xf32>
    %15 = vector.shape_cast %14 : vector<1x16x16x128xf32> to vector<16x16x128xf32>
    %16 = vector.shape_cast %13 : vector<16x16x128xf32> to vector<1x16x16x128xf32>
    tpu.vector_store %arg4[%c0_7, %c0_8, %c0_9, %c0_10], %16 {strides = array<i32>} : memref<1x16x16x128xf32, #tpu.memory_space<vmem>>, vector<1x16x16x128xf32>,
    return
  }
  func.func @transform_0(%arg0: i32) -> (i32, i32, i32, i32) {
    %c0_i32 = arith.constant 0 : i32
    %c0_i32_0 = arith.constant 0 : i32
    %c0_i32_1 = arith.constant 0 : i32
    %c0_i32_2 = arith.constant 0 : i32
    return %arg0, %c0_i32, %c0_i32_0, %c0_i32_1 : i32, i32, i32, i32
  }
  func.func @transform_1(%arg0: i32) -> (i32, i32) {
    %c0_i32 = arith.constant 0 : i32
    %c0_i32_0 = arith.constant 0 : i32
    %c0_i32_1 = arith.constant 0 : i32
    return %c0_i32, %c0_i32_0 : i32, i32
  }
  func.func @transform_2(%arg0: i32) -> (i32, i32) {
    %c0_i32 = arith.constant 0 : i32
    %c0_i32_0 = arith.constant 0 : i32
    %c0_i32_1 = arith.constant 0 : i32
    return %c0_i32, %c0_i32_0 : i32, i32
  }
  func.func @transform_3(%arg0: i32) -> (i32, i32, i32, i32) {
    %c0_i32 = arith.constant 0 : i32
    %c0_i32_0 = arith.constant 0 : i32
    %c0_i32_1 = arith.constant 0 : i32
    %c0_i32_2 = arith.constant 0 : i32
    return %arg0, %c0_i32, %c0_i32_0, %c0_i32_1 : i32, i32, i32, i32
  }
}

</mosaic_0001>

<bundles_post_ra>
// kernel: double_conv.5
= control target key start
LH: loop header
LB: loop body
LE: loop exit
PB: predicated region body
PF: predicated region fallthrough
CT: control target
= control target key end

     0   :  { %s451_s12 = smov 0   ;;  %s610_s0 = inlined_call_operand.vmem [shape: f32[2,16,16,128], index: 0, kind: input, shape index: {}]   ;;  %s611_s1 = inlined_call_operand.vmem [shape: f32[1,128], index: 1, kind: input, shape index: {}]   ;;  %s612_s2 = inlined_call_operand.vmem [shape: f32[1,128], index: 2, kind: input, shape index: {}]   ;;  %s613_s3 = inlined_call_operand.vmem [shape: f32[2,16,16,128], index: 3, kind: output, shape index: {}]  }
   0x1 LB: > { %s400_s13 = sadd.s32 4294967295, %s429_s12   ;;  %p404_p0 = scmp.ge.s32.totalorder %s429_s12, 1  ;;  %s429_s12 = sphi %s451_s12, %s13_s12  }
   0x2   : > { %p137_p1 = scmp.lt.s32.totalorder %s429_s12, 3 }
   0x4   : > { %p138_p2 = pnand %p404_p0, %p137_p1 }
   0x5   : > { %p161_p3 = scmp.lt.s32.totalorder (!%p138_p2), %s400_s13, 1  ;;  %v462_v0 = vld [vmem:[%s611_s1] ss:$0 sm:$0xff] (!%p138_p2) }
   0x6   : > { %141 = sbr.rel (%p138_p2) target bundleno = 46 (0x2e), region = 32  ;;  %v472_v1 = vld [vmem:[%s612_s2] ss:$0 sm:$0xff] (!%p138_p2) }
   0xd   : > { %s615_s13 = smov (!%p161_p3, %s400_s13), 1 }
   0xe   : > { %s413_s14 = sshll.u32 %s615_s13, 8 }
   0xf   : > { %s467_s19 = scalar_lea.vmem %s610_s0, %s413_s14  ;;  %s495_s24 = scalar_lea.vmem %s613_s3, %s413_s14 }
  0x10   : > { %v171_v2 = vld [vmem:[%s467_s19] sm:$0xff]  ;;  %v172_v3 = vld [vmem:[%s467_s19 + $0x8] sm:$0xff]  ;;  %v173_v4 = vld [vmem:[%s467_s19 + $0x10] sm:$0xff] }
  0x11   : > { %v210_v5 = vmul.f32 %v462_v0, %v171_v2  ;;  %v211_v6 = vmul.f32 %v462_v0, %v172_v3  ;;  %v212_v7 = vmul.f32 %v462_v0, %v173_v4  ;;  %v174_v8 = vld [vmem:[%s467_s19 + $0x18] sm:$0xff]  ;;  %v175_v9 = vld [vmem:[%s467_s19 + $0x20] sm:$0xff]  ;;  %v176_v10 = vld [vmem:[%s467_s19 + $0x28] sm:$0xff] }
  0x12   : > { %v213_v11 = vmul.f32 %v462_v0, %v174_v8  ;;  %v214_v12 = vmul.f32 %v462_v0, %v175_v9  ;;  %v215_v13 = vmul.f32 %v462_v0, %v176_v10  ;;  %v177_v14 = vld [vmem:[%s467_s19 + $0x30] sm:$0xff]  ;;  %v178_v15 = vld [vmem:[%s467_s19 + $0x38] sm:$0xff]  ;;  %v179_v24 = vld [vmem:[%s467_s19 + $0x40] sm:$0xff] }
  0x13   : > { %v249_v16 = vadd.f32 %v472_v1, %v210_v5  ;;  %v250_v17 = vadd.f32 %v472_v1, %v211_v6  ;;  %v251_v18 = vadd.f32 %v472_v1, %v212_v7  ;;  %v216_v19 = vmul.f32 %v462_v0, %v177_v14  ;;  %v180_v25 = vld [vmem:[%s467_s19 + $0x48] sm:$0xff]  ;;  %v181_v26 = vld [vmem:[%s467_s19 + $0x50] sm:$0xff]  ;;  %v182_v31 = vld [vmem:[%s467_s19 + $0x58] sm:$0xff] }
  0x14   : > { %v252_v20 = vadd.f32 %v472_v1, %v213_v11  ;;  %v253_v21 = vadd.f32 %v472_v1, %v214_v12  ;;  %v254_v22 = vadd.f32 %v472_v1, %v215_v13  ;;  %v217_v23 = vmul.f32 %v462_v0, %v178_v15  ;;  %v183_v32 = vld [vmem:[%s467_s19 + $0x60] sm:$0xff]  ;;  %v184_v33 = vld [vmem:[%s467_s19 + $0x68] sm:$0xff]  ;;  %v185_v38 = vld [vmem:[%s467_s19 + $0x70] sm:$0xff] }
  0x15   : > { %v281_v27 = vmax.f32 %v249_v16, 0.0  ;;  %v282_v28 = vmax.f32 %v250_v17, 0.0  ;;  %v283_v29 = vmax.f32 %v251_v18, 0.0  ;;  %v255_v30 = vadd.f32 %v472_v1, %v216_v19  ;;  %v186_v43 = vld [vmem:[%s467_s19 + $0x78] sm:$0xff]  ;;  %v187_v56 = vld [vmem:[%s467_s19 + $0x80] sm:$0xff]  ;;  %v188_v57 = vld [vmem:[%s467_s19 + $0x88] sm:$0xff] }
  0x16   : > { %v284_v34 = vmax.f32 %v252_v20, 0.0  ;;  %v285_v35 = vmax.f32 %v253_v21, 0.0  ;;  %v286_v36 = vmax.f32 %v254_v22, 0.0  ;;  %v256_v37 = vadd.f32 %v472_v1, %v217_v23  ;;  %v189_v58 = vld [vmem:[%s467_s19 + $0x90] sm:$0xff]  ;;  %v190_v63 = vld [vmem:[%s467_s19 + $0x98] sm:$0xff]  ;;  %v191_v2 = vld [vmem:[%s467_s19 + $0xa0] sm:$0xff] }
  0x17   : > { %313 = vst [vmem:[%s495_s24] sm:$0xff] %v281_v27  ;;  %314 = vst [vmem:[%s495_s24 + $0x8] sm:$0xff] %v282_v28  ;;  %v287_v39 = vmax.f32 %v255_v30, 0.0  ;;  %v218_v40 = vmul.f32 %v462_v0, %v179_v24  ;;  %v219_v41 = vmul.f32 %v462_v0, %v180_v25  ;;  %v220_v42 = vmul.f32 %v462_v0, %v181_v26  ;;  %v192_v3 = vld [vmem:[%s467_s19 + $0xa8] sm:$0xff]  ;;  %v193_v8 = vld [vmem:[%s467_s19 + $0xb0] sm:$0xff] }
  0x18   : > { %315 = vst [vmem:[%s495_s24 + $0x10] sm:$0xff] %v283_v29  ;;  %316 = vst [vmem:[%s495_s24 + $0x18] sm:$0xff] %v284_v34  ;;  %v288_v44 = vmax.f32 %v256_v37, 0.0  ;;  %v221_v45 = vmul.f32 %v462_v0, %v182_v31  ;;  %v222_v46 = vmul.f32 %v462_v0, %v183_v32  ;;  %v223_v47 = vmul.f32 %v462_v0, %v184_v33  ;;  %v194_v13 = vld [vmem:[%s467_s19 + $0xb8] sm:$0xff]  ;;  %v195_v26 = vld [vmem:[%s467_s19 + $0xc0] sm:$0xff] }
  0x19   : > { %317 = vst [vmem:[%s495_s24 + $0x20] sm:$0xff] %v285_v35  ;;  %318 = vst [vmem:[%s495_s24 + $0x28] sm:$0xff] %v286_v36  ;;  %v257_v48 = vadd.f32 %v472_v1, %v218_v40  ;;  %v258_v49 = vadd.f32 %v472_v1, %v219_v41  ;;  %v259_v50 = vadd.f32 %v472_v1, %v220_v42  ;;  %v196_v27 = vld [vmem:[%s467_s19 + $0xc8] sm:$0xff]  ;;  %v197_v28 = vld [vmem:[%s467_s19 + $0xd0] sm:$0xff] }
  0x1a   : > { %319 = vst [vmem:[%s495_s24 + $0x30] sm:$0xff] %v287_v39  ;;  %v224_v51 = vmul.f32 %v462_v0, %v185_v38  ;;  %320 = vst [vmem:[%s495_s24 + $0x38] sm:$0xff] %v288_v44  ;;  %v260_v52 = vadd.f32 %v472_v1, %v221_v45  ;;  %v261_v53 = vadd.f32 %v472_v1, %v222_v46  ;;  %v198_v33 = vld [vmem:[%s467_s19 + $0xd8] sm:$0xff]  ;;  %v199_v34 = vld [vmem:[%s467_s19 + $0xe0] sm:$0xff] }
  0x1b   : > { %v262_v54 = vadd.f32 %v472_v1, %v223_v47  ;;  %v225_v55 = vmul.f32 %v462_v0, %v186_v43  ;;  %v289_v59 = vmax.f32 %v257_v48, 0.0  ;;  %v290_v60 = vmax.f32 %v258_v49, 0.0  ;;  %v200_v35 = vld [vmem:[%s467_s19 + $0xe8] sm:$0xff]  ;;  %v201_v40 = vld [vmem:[%s467_s19 + $0xf0] sm:$0xff]  ;;  %v202_v45 = vld [vmem:[%s467_s19 + $0xf8] sm:$0xff] }
  0x1c   : > { %v291_v61 = vmax.f32 %v259_v50, 0.0  ;;  %v263_v62 = vadd.f32 %v472_v1, %v224_v51  ;;  %v292_v4 = vmax.f32 %v260_v52, 0.0  ;;  %v293_v5 = vmax.f32 %v261_v53, 0.0 }
  0x1d   : > { %v294_v6 = vmax.f32 %v262_v54, 0.0  ;;  %v264_v7 = vadd.f32 %v472_v1, %v225_v55  ;;  %321 = vst [vmem:[%s495_s24 + $0x40] sm:$0xff] %v289_v59  ;;  %322 = vst [vmem:[%s495_s24 + $0x48] sm:$0xff] %v290_v60  ;;  %v226_v10 = vmul.f32 %v462_v0, %v187_v56  ;;  %v227_v11 = vmul.f32 %v462_v0, %v188_v57 }
  0x1e   : > { %323 = vst [vmem:[%s495_s24 + $0x50] sm:$0xff] %v291_v61  ;;  %v295_v9 = vmax.f32 %v263_v62, 0.0  ;;  %v228_v12 = vmul.f32 %v462_v0, %v189_v58  ;;  %324 = vst [vmem:[%s495_s24 + $0x58] sm:$0xff] %v292_v4  ;;  %v229_v15 = vmul.f32 %v462_v0, %v190_v63  ;;  %v230_v16 = vmul.f32 %v462_v0, %v191_v2 }
  0x1f   : > { %325 = vst [vmem:[%s495_s24 + $0x60] sm:$0xff] %v293_v5  ;;  %326 = vst [vmem:[%s495_s24 + $0x68] sm:$0xff] %v294_v6  ;;  %v296_v14 = vmax.f32 %v264_v7, 0.0  ;;  %v231_v17 = vmul.f32 %v462_v0, %v192_v3  ;;  %v265_v18 = vadd.f32 %v472_v1, %v226_v10  ;;  %v266_v19 = vadd.f32 %v472_v1, %v227_v11 }
  0x20   : > { %327 = vst [vmem:[%s495_s24 + $0x70] sm:$0xff] %v295_v9  ;;  %v267_v20 = vadd.f32 %v472_v1, %v228_v12  ;;  %v232_v21 = vmul.f32 %v462_v0, %v193_v8  ;;  %v268_v22 = vadd.f32 %v472_v1, %v229_v15  ;;  %v269_v23 = vadd.f32 %v472_v1, %v230_v16 }
  0x21   : > { %328 = vst [vmem:[%s495_s24 + $0x78] sm:$0xff] %v296_v14  ;;  %v270_v24 = vadd.f32 %v472_v1, %v231_v17  ;;  %v233_v25 = vmul.f32 %v462_v0, %v194_v13  ;;  %v297_v29 = vmax.f32 %v265_v18, 0.0  ;;  %v298_v30 = vmax.f32 %v266_v19, 0.0 }
  0x22   : > { %v299_v31 = vmax.f32 %v267_v20, 0.0  ;;  %v271_v32 = vadd.f32 %v472_v1, %v232_v21  ;;  %v300_v36 = vmax.f32 %v268_v22, 0.0  ;;  %v301_v37 = vmax.f32 %v269_v23, 0.0 }
  0x23   : > { %v302_v38 = vmax.f32 %v270_v24, 0.0  ;;  %v272_v39 = vadd.f32 %v472_v1, %v233_v25  ;;  %329 = vst [vmem:[%s495_s24 + $0x80] sm:$0xff] %v297_v29  ;;  %330 = vst [vmem:[%s495_s24 + $0x88] sm:$0xff] %v298_v30  ;;  %v234_v42 = vmul.f32 %v462_v0, %v195_v26  ;;  %v235_v43 = vmul.f32 %v462_v0, %v196_v27 }
  0x24   : > { %331 = vst [vmem:[%s495_s24 + $0x90] sm:$0xff] %v299_v31  ;;  %v303_v41 = vmax.f32 %v271_v32, 0.0  ;;  %v236_v44 = vmul.f32 %v462_v0, %v197_v28  ;;  %332 = vst [vmem:[%s495_s24 + $0x98] sm:$0xff] %v300_v36  ;;  %v237_v47 = vmul.f32 %v462_v0, %v198_v33  ;;  %v238_v48 = vmul.f32 %v462_v0, %v199_v34 }
  0x25   : > { %333 = vst [vmem:[%s495_s24 + $0xa0] sm:$0xff] %v301_v37  ;;  %334 = vst [vmem:[%s495_s24 + $0xa8] sm:$0xff] %v302_v38  ;;  %v304_v46 = vmax.f32 %v272_v39, 0.0  ;;  %v239_v49 = vmul.f32 %v462_v0, %v200_v35  ;;  %v273_v50 = vadd.f32 %v472_v1, %v234_v42  ;;  %v274_v51 = vadd.f32 %v472_v1, %v235_v43 }
  0x26   : > { %335 = vst [vmem:[%s495_s24 + $0xb0] sm:$0xff] %v303_v41  ;;  %v275_v52 = vadd.f32 %v472_v1, %v236_v44  ;;  %v240_v53 = vmul.f32 %v462_v0, %v201_v40  ;;  %v276_v54 = vadd.f32 %v472_v1, %v237_v47  ;;  %v277_v55 = vadd.f32 %v472_v1, %v238_v48 }
  0x27   : > { %336 = vst [vmem:[%s495_s24 + $0xb8] sm:$0xff] %v304_v46  ;;  %v278_v56 = vadd.f32 %v472_v1, %v239_v49  ;;  %v241_v57 = vmul.f32 %v462_v0, %v202_v45  ;;  %v305_v58 = vmax.f32 %v273_v50, 0.0  ;;  %v306_v59 = vmax.f32 %v274_v51, 0.0 }
  0x28   : > { %v307_v60 = vmax.f32 %v275_v52, 0.0  ;;  %v279_v61 = vadd.f32 %v472_v1, %v240_v53  ;;  %v308_v62 = vmax.f32 %v276_v54, 0.0  ;;  %v309_v63 = vmax.f32 %v277_v55, 0.0 }
  0x29   : > { %v310_v2 = vmax.f32 %v278_v56, 0.0  ;;  %v280_v3 = vadd.f32 %v472_v1, %v241_v57  ;;  %337 = vst [vmem:[%s495_s24 + $0xc0] sm:$0xff] %v305_v58  ;;  %338 = vst [vmem:[%s495_s24 + $0xc8] sm:$0xff] %v306_v59 }
  0x2a   : > { %339 = vst [vmem:[%s495_s24 + $0xd0] sm:$0xff] %v307_v60  ;;  %v311_v4 = vmax.f32 %v279_v61, 0.0  ;;  %340 = vst [vmem:[%s495_s24 + $0xd8] sm:$0xff] %v308_v62 }
  0x2b   : > { %341 = vst [vmem:[%s495_s24 + $0xe0] sm:$0xff] %v309_v63  ;;  %342 = vst [vmem:[%s495_s24 + $0xe8] sm:$0xff] %v310_v2  ;;  %v312_v0 = vmax.f32 %v280_v3, 0.0 }
  0x2c   : > { %343 = vst [vmem:[%s495_s24 + $0xf0] sm:$0xff] %v311_v4 }
  0x2d   : > { %344 = vst [vmem:[%s495_s24 + $0xf8] sm:$0xff] %v312_v0 }
  0x2e PF: > { %s13_s12 = sadd.s32 1, %s429_s12  }
  0x2f   : > { %p10_p4 = scmp.ge.s32.totalorder %s13_s12, 4  }
  0x31   :  { %12 = sbr.rel (!%p10_p4) target bundleno = 1 (0x1), region = 62 }

// kernel: double_conv.4
= control target key start
LH: loop header
LB: loop body
LE: loop exit
PB: predicated region body
PF: predicated region fallthrough
CT: control target
= control target key end

     0   :  { %s3802_s21 = smov 0   ;;  %s5016_s0 = inlined_call_operand.vmem [shape: f32[2,16,16,128], index: 0, kind: input, shape index: {}]   ;;  %s5017_s1 = inlined_call_operand.vmem [shape: f32[1,128], index: 1, kind: input, shape index: {}]   ;;  %s5018_s2 = inlined_call_operand.vmem [shape: f32[1,128], index: 2, kind: input, shape index: {}]   ;;  %s5019_s3 = inlined_call_operand.vmem [shape: bf16[3,384,128], index: 3, kind: input, shape index: {}]   ;;  %s5020_s4 = inlined_call_operand.vmem [shape: f32[1,128], index: 4, kind: input, shape index: {}]   ;;  %s5021_s5 = inlined_call_operand.vmem [shape: f32[2,16,16,128], index: 5, kind: output, shape index: {0}]   ;;  %s5022_s6 = inlined_call_operand.vmem [shape: f32[2,8,128], index: 6, kind: output, shape index: {1}]  }
   0x1 LB: > { %s2764_s22 = sadd.s32 4294967295, %s3764_s21   ;;  %p2768_p0 = scmp.ge.s32.totalorder %s3764_s21, 1  ;;  %s3764_s21 = sphi %s3802_s21, %s17_s21  }
   0x2   : > { %p215_p1 = scmp.lt.s32.totalorder %s3764_s21, 3 }
   0x4   : > { %p216_p2 = pnand %p2768_p0, %p215_p1 }
   0x6   : > { %219 = sbr.rel (%p216_p2) target bundleno = 587 (0x24b), region = 40 }
   0xd   : > { %v3686_v0 = vld [vmem:[%s5019_s3 + $0x100] sm:$0xff]   ;;  %v3689_v3 = vld [vmem:[%s5019_s3 + $0x108] sm:$0xff]   ;;  %v3692_v6 = vld [vmem:[%s5019_s3 + $0x110] sm:$0xff]   ;;  %p249_p3 = scmp.lt.s32.totalorder %s2764_s22, 1  ;;  %vm566_vm0 = vcmask 1040384   ;;  %vm837_vm2 = vcmask 1046528  }
   0xe   : > { %v3816_v1 = vld [vmem:[%s5019_s3 + $0x140] sm:$0xff]   ;;  %2949 = vmatprep.subr.bf16.mxu0 %v3686_v0  ;;  %v3829_v4 = vld [vmem:[%s5019_s3 + $0x148] sm:$0xff]   ;;  %v3841_v7 = vld [vmem:[%s5019_s3 + $0x150] sm:$0xff]   ;;  %vm567_vm1 = vsmask.f32 256  ;;  %vm2675_vm5 = vcmask 1041408  }
   0xf   : > { %v3688_v2 = vld [vmem:[%s5019_s3 + $0xc0] sm:$0xff]   ;;  %3501 = vmatprep.subr.bf16.mxu1 %v3816_v1  ;;  %v3691_v5 = vld [vmem:[%s5019_s3 + $0xc8] sm:$0xff]   ;;  %v3694_v8 = vld [vmem:[%s5019_s3 + $0xd0] sm:$0xff]   ;;  %s5031_s22 = smov (!%p249_p3, %s2764_s22), 1  ;;  %vm601_vm3 = vsmask.f32 7424 }
  0x10   : > { %2950 = vmatpush3.bf16.msra.mxu0 %v3688_v2  ;;  %3509 = vmatpush3.bf16.msra.mxu1 %v3816_v1  ;;  %v3695_v9 = vld [vmem:[%s5019_s3 + $0x118] sm:$0xff]   ;;  %v3698_v12 = vld [vmem:[%s5019_s3 + $0x120] sm:$0xff]   ;;  %v3701_v15 = vld [vmem:[%s5019_s3 + $0x128] sm:$0xff]   ;;  %s2947_s11 = sshll.u32 %s5031_s22, 8 }
  0x11   : > { %2951 = vmatprep.subr.bf16.mxu0 %v3689_v3  ;;  %3502 = vmatprep.subr.bf16.mxu1 %v3829_v4  ;;  %v3854_v10 = vld [vmem:[%s5019_s3 + $0x158] sm:$0xff]   ;;  %v3869_v13 = vld [vmem:[%s5019_s3 + $0x160] sm:$0xff]   ;;  %v3886_v16 = vld [vmem:[%s5019_s3 + $0x168] sm:$0xff]   ;;  %s3907_s20 = scalar_lea.vmem %s5016_s0, %s2947_s11  ;;  %s4888_s7 = scalar_lea.vmem %s5021_s5, %s2947_s11 }
  0x12   : > { %v3697_v11 = vld [vmem:[%s5019_s3 + $0xd8] sm:$0xff]   ;;  %v3700_v14 = vld [vmem:[%s5019_s3 + $0xe0] sm:$0xff]   ;;  %v3703_v17 = vld [vmem:[%s5019_s3 + $0xe8] sm:$0xff]   ;;  %s2773_s11 = sshll.u32 %s5031_s22, 3 }
  0x13   : > { %v3704_v18 = vld [vmem:[%s5019_s3 + $0x130] sm:$0xff]   ;;  %v3707_v21 = vld [vmem:[%s5019_s3 + $0x138] sm:$0xff]   ;;  %v264_v22 = vld [vmem:[%s3907_s20] sm:$0xff]  ;;  %s262_s10 = scalar_lea.vmem %s5022_s6, %s2773_s11 }
  0x14   : > { %2952 = vmatpush3.bf16.msra.mxu0 %v3691_v5  ;;  %3510 = vmatpush3.bf16.msra.mxu1 %v3829_v4  ;;  %v3900_v19 = vld [vmem:[%s5019_s3 + $0x170] sm:$0xff]   ;;  %v265_v23 = vld [vmem:[%s3907_s20 + $0x8] sm:$0xff]  ;;  %v3921_v24 = vld [vmem:[%s5017_s1] ss:$0 sm:$0xff] }
  0x15   : > { %2953 = vmatprep.subr.bf16.mxu0 %v3692_v6  ;;  %3503 = vmatprep.subr.bf16.mxu1 %v3841_v7  ;;  %v3706_v20 = vld [vmem:[%s5019_s3 + $0xf0] sm:$0xff]   ;;  %v3927_v25 = vld [vmem:[%s5019_s3 + $0x178] sm:$0xff]   ;;  %v303_v26 = vmul.f32 %v3921_v24, %v264_v22  ;;  %v304_v27 = vmul.f32 %v3921_v24, %v265_v23  ;;  %v3934_v28 = vld [vmem:[%s5018_s2] ss:$0 sm:$0xff] }
  0x16   : > { %v280_v29 = vld [vmem:[%s3907_s20 + $0x80] sm:$0xff]  ;;  %v281_v30 = vld [vmem:[%s3907_s20 + $0x88] sm:$0xff]  ;;  %v282_v32 = vld [vmem:[%s3907_s20 + $0x90] sm:$0xff] }
  0x17   : > { %v319_v31 = vmul.f32 %v3921_v24, %v280_v29  ;;  %v283_v33 = vld [vmem:[%s3907_s20 + $0x98] sm:$0xff]  ;;  %v342_v35 = vadd.f32 %v3934_v28, %v303_v26  ;;  %v343_v36 = vadd.f32 %v3934_v28, %v304_v27  ;;  %v320_v37 = vmul.f32 %v3921_v24, %v281_v30  ;;  %v3710_v41 = vld [vmem:[%s5019_s3 + $0x40] sm:$0xff]   ;;  %v266_v51 = vld [vmem:[%s3907_s20 + $0x10] sm:$0xff] }
  0x18   : > { %2954 = vmatpush3.bf16.msra.mxu0 %v3694_v8  ;;  %3511 = vmatpush3.bf16.msra.mxu1 %v3841_v7  ;;  %v3709_v34 = vld [vmem:[%s5019_s3 + $0xf8] sm:$0xff]   ;;  %v321_v38 = vmul.f32 %v3921_v24, %v282_v32  ;;  %v322_v40 = vmul.f32 %v3921_v24, %v283_v33  ;;  %v305_v54 = vmul.f32 %v3921_v24, %v266_v51  ;;  %v284_v56 = vld [vmem:[%s3907_s20 + $0xa0] sm:$0xff]  ;;  %v285_v57 = vld [vmem:[%s3907_s20 + $0xa8] sm:$0xff] }
  0x19   : > { %2955 = vmatprep.subr.bf16.mxu0 %v3695_v9  ;;  %3504 = vmatprep.subr.bf16.mxu1 %v3854_v10  ;;  %v358_v39 = vadd.f32 %v3934_v28, %v319_v31  ;;  %v374_v42 = vmax.f32 %v342_v35, 0.0  ;;  %v375_v43 = vmax.f32 %v343_v36, 0.0  ;;  %v359_v44 = vadd.f32 %v3934_v28, %v320_v37  ;;  %v267_v52 = vld [vmem:[%s3907_s20 + $0x18] sm:$0xff]  ;;  %vm3973_vm4 = vmand %vm566_vm0, %vm567_vm1  ;;  %v286_v37 = vld [vmem:[%s3907_s20 + $0xb0] sm:$0xff] }
  0x1a   : > { %v360_v45 = vadd.f32 %v3934_v28, %v321_v38  ;;  %v361_v47 = vadd.f32 %v3934_v28, %v322_v40  ;;  %v306_v55 = vmul.f32 %v3921_v24, %v267_v52  ;;  %v323_v61 = vmul.f32 %v3921_v24, %v284_v56 }
  0x1b   : > { %v390_v46 = vmax.f32 %v358_v39, 0.0  ;;  %v406_v48 = vpack.c.bf16 %v375_v43, %v374_v42  ;;  %v391_v49 = vmax.f32 %v359_v44, 0.0  ;;  %v344_v63 = vadd.f32 %v3934_v28, %v305_v54  ;;  %v287_v42 = vld [vmem:[%s3907_s20 + $0xb8] sm:$0xff] }
  0x1c   : > { %2956 = vmatpush3.bf16.msra.mxu0 %v3697_v11  ;;  %3512 = vmatpush3.bf16.msra.mxu1 %v3854_v10  ;;  %v392_v50 = vmax.f32 %v360_v45, 0.0  ;;  %v393_v53 = vmax.f32 %v361_v47, 0.0  ;;  %v345_v0 = vadd.f32 %v3934_v28, %v306_v55  ;;  %v324_v2 = vmul.f32 %v3921_v24, %v285_v57  ;;  %v3712_v55 = vld [vmem:[%s5019_s3 + $0x48] sm:$0xff]  }
  0x1d   : > { %2957 = vmatprep.subr.bf16.mxu0 %v3698_v12  ;;  %3505 = vmatprep.subr.bf16.mxu1 %v3869_v13  ;;  %v423_v58 = vshrl.u32 %v406_v48, 16  ;;  %v426_v59 = vshll.u32 %v406_v48, 16  ;;  %v414_v60 = vpack.c.bf16 %v391_v49, %v390_v46  ;;  %v362_v8 = vadd.f32 %v3934_v28, %v323_v61  ;;  %v3711_v46 = vld [vmem:[%s5019_s3] sm:$0xff]  }
  0x1e   : > { %v415_v62 = vpack.c.bf16 %v393_v53, %v392_v50  ;;  %v325_v51 = vmul.f32 %v3921_v24, %v286_v37  ;;  %v326_v56 = vmul.f32 %v3921_v24, %v287_v42  ;;  %v268_v61 = vld [vmem:[%s3907_s20 + $0x20] sm:$0xff] }
  0x1f   : > { %v425_v3 = vrot.slane %v423_v58, 7  ;;  %v479_v5 = vshrl.u32 %v414_v60, 16  ;;  %v482_v6 = vshll.u32 %v414_v60, 16  ;;  %v394_v27 = vmax.f32 %v362_v8, 0.0 }
  0x20   : > { %2958 = vmatpush3.bf16.msra.mxu0 %v3700_v14  ;;  %3513 = vmatpush3.bf16.msra.mxu1 %v3869_v13  ;;  %v486_v11 = vshrl.u32 %v415_v62, 16  ;;  %v489_v12 = vshll.u32 %v415_v62, 16  ;;  %v376_v14 = vmax.f32 %v344_v63, 0.0  ;;  %v365_v8 = vadd.f32 %v3934_v28, %v326_v56 }
  0x21   : > { %2959 = vmatprep.subr.bf16.mxu0 %v3701_v15  ;;  %3506 = vmatprep.subr.bf16.mxu1 %v3886_v16  ;;  %v377_v15 = vmax.f32 %v345_v0, 0.0 }
  0x22   : > { %v488_v23 = vrot.slane %v486_v11, 7  ;;  %v269_v11 = vld [vmem:[%s3907_s20 + $0x28] sm:$0xff] }
  0x23   : > { %v407_v26 = vpack.c.bf16 %v377_v15, %v376_v14 }
  0x24   : > { %2960 = vmatpush3.bf16.msra.mxu0 %v3703_v17  ;;  %3514 = vmatpush3.bf16.msra.mxu1 %v3886_v16  ;;  %v428_v17 = vor.u32 %v426_v59, %v425_v3  ;;  %v491_v39 = vor.u32 %v489_v12, %v488_v23  ;;  %v4001_v40 = vsel %vm3973_vm4, %v488_v23, 0 }
  0x25   : > { %2961 = vmatprep.subr.bf16.mxu0 %v3704_v18  ;;  %3507 = vmatprep.subr.bf16.mxu1 %v3900_v19  ;;  %v3979_v18 = vsel %vm3973_vm4, %v425_v3, 0  ;;  %v868_v45 = vrot.slane %v4001_v40, 1  ;;  %v433_v47 = vshll.u32 %v407_v26, 16 }
  0x26   : > { %v618_v22 = vshll.u32 %v3979_v18, 16  ;;  %v3985_v29 = vsel %vm3973_vm4, 0, %v428_v17  ;;  %v4011_v48 = vsel %vm3973_vm4, 0, %v491_v39  ;;  %v3714_v17 = vld [vmem:[%s5019_s3 + $0x50] sm:$0xff]  }
  0x27   : > { %v611_v33 = vshrl.u32 %v3985_v29, 16  ;;  %v867_v54 = vrot.slane %v4011_v48, 1 }
  0x28   : > { %2962 = vmatpush3.bf16.msra.mxu0 %v3706_v20  ;;  %3515 = vmatpush3.bf16.msra.mxu1 %v3900_v19  ;;  %v481_v20 = vrot.slane %v479_v5, 7  ;;  %v620_v35 = vrot.slane %v618_v22, 1  ;;  %v289_v22 = vld [vmem:[%s3907_s20 + $0xc8] sm:$0xff] }
  0x29   : > { %2963 = vmatprep.subr.bf16.mxu0 %v3707_v21  ;;  %3508 = vmatprep.subr.bf16.mxu1 %v3927_v25  ;;  %v363_v21 = vadd.f32 %v3934_v28, %v324_v2  ;;  %v4032_v63 = vsel %vm837_vm2, %v867_v54, %v868_v45  ;;  %v3713_v2 = vld [vmem:[%s5019_s3 + $0x8] sm:$0xff]   ;;  %v328_v42 = vmul.f32 %v3921_v24, %v289_v22  ;;  %v3718_v22 = vld [vmem:[%s5019_s3 + $0x60] sm:$0xff]  }
  0x2a   : > { %v484_v30 = vor.u32 %v482_v6, %v481_v20  ;;  %v3989_v31 = vsel %vm3973_vm4, %v481_v20, 0  ;;  %v364_v6 = vadd.f32 %v3934_v28, %v325_v51  ;;  %v307_v20 = vmul.f32 %v3921_v24, %v268_v61  ;;  %v3716_v51 = vld [vmem:[%s5019_s3 + $0x58] sm:$0xff]  }
  0x2b   : > { %v395_v32 = vmax.f32 %v363_v21, 0.0  ;;  %v865_v36 = vrot.slane %v3989_v31, 1  ;;  %v288_v21 = vld [vmem:[%s3907_s20 + $0xc0] sm:$0xff]  ;;  %v367_v54 = vadd.f32 %v3934_v28, %v328_v42 }
  0x2c   : > { %2964 = vmatpush3.bf16.msra.mxu0 %v3709_v34  ;;  %3516 = vmatpush3.bf16.msra.mxu1 %v3927_v25  ;;  %v613_v34 = vshll.u32 %v3985_v29, 16  ;;  %v3997_v38 = vsel %vm3973_vm4, 0, %v484_v30  ;;  %v397_v30 = vmax.f32 %v365_v8, 0.0 }
  0x2d   : > { %3357 = vmatprep.subr.bf16.mxu0 %v3816_v1  ;;  %3085 = vmatprep.subr.bf16.mxu1 %v3710_v41  ;;  %v430_v41 = vshrl.u32 %v407_v26, 16  ;;  %v864_v44 = vrot.slane %v3997_v38, 1  ;;  %v416_v50 = vpack.c.bf16 %v395_v32, %v394_v27  ;;  %v396_v27 = vmax.f32 %v364_v6, 0.0  ;;  %v290_v32 = vld [vmem:[%s3907_s20 + $0xd0] sm:$0xff] }
  0x2e   : > { %v615_v43 = vrot.slane %v613_v34, 1 }
  0x2f   : > { %v432_v49 = vrot.slane %v430_v41, 7  ;;  %v4015_v53 = vsel %vm837_vm2, %v864_v44, %v865_v36  ;;  %v493_v59 = vshrl.u32 %v416_v50, 16  ;;  %v496_v60 = vshll.u32 %v416_v50, 16 }
  0x30   : > { %v616_v52 = vor.u32 %v615_v43, %v611_v33  ;;  %3389 = vmatprep.mubr.bf16.mxu1 %v4015_v53  ;;  %v308_v36 = vmul.f32 %v3921_v24, %v269_v11  ;;  %v417_v39 = vpack.c.bf16 %v397_v30, %v396_v27  ;;  %v327_v41 = vmul.f32 %v3921_v24, %v288_v21  ;;  %v291_v43 = vld [vmem:[%s3907_s20 + $0xd8] sm:$0xff] }
  0x31   : > { %v435_v57 = vor.u32 %v433_v47, %v432_v49  ;;  %v4025_v58 = vsel %vm3973_vm4, %v432_v49, 0  ;;  %3390 = vmatmul.mubr.bf16.vlgmr.msra.gmra.mrb[0].mxu1 %v4032_v63  ;;  %v495_v5 = vrot.slane %v493_v59, 7 }
  0x32   : > { %v4029_v62 = vsel %vm601_vm3, %v616_v52, %v620_v35  ;;  %v630_v0 = vshll.u32 %v4025_v58, 16  ;;  %3086 = vmatpush3.bf16.msra.mxu1 %v3711_v46  ;;  %v3715_v35 = vld [vmem:[%s5019_s3 + $0x10] sm:$0xff]   ;;  %v347_v46 = vadd.f32 %v3934_v28, %v308_v36  ;;  %v500_v49 = vshrl.u32 %v417_v39, 16  ;;  %v293_v36 = vld [vmem:[%s3907_s20 + $0xe8] sm:$0xff] }
  0x33   : > { %1193 = vmatprep.mubr.bf16.mxu0 %v4029_v62  ;;  %v4042_v3 = vsel %vm3973_vm4, 0, %v435_v57  ;;  %3087 = vmatprep.subr.bf16.mxu1 %v3712_v55  ;;  %v498_v23 = vor.u32 %v496_v60, %v495_v5  ;;  %v4059_v26 = vsel %vm3973_vm4, %v495_v5, 0  ;;  %v503_v50 = vshll.u32 %v417_v39, 16  ;;  %v270_v55 = vld [vmem:[%s3907_s20 + $0x30] sm:$0xff]  ;;  %v3717_v5 = vld [vmem:[%s5019_s3 + $0x18] sm:$0xff]  }
  0x34   : > { %1194 = vmatmul.mubr.bf16.vlgmr.msra.gmra.mrb[0].mxu0 %v3985_v29  ;;  %v623_v12 = vshrl.u32 %v4042_v3, 16  ;;  %v625_v14 = vshll.u32 %v4042_v3, 16  ;;  %v632_v15 = vrot.slane %v630_v0, 1  ;;  %v871_v34 = vrot.slane %v4059_v26, 1 }
  0x35   : > { %3358 = vmatpush3.bf16.msra.mxu0 %v3816_v1  ;;  %v346_v1 = vadd.f32 %v3934_v28, %v307_v20  ;;  %v4071_v37 = vsel %vm3973_vm4, 0, %v498_v23  ;;  %v366_v52 = vadd.f32 %v3934_v28, %v327_v41  ;;  %v379_v59 = vmax.f32 %v347_v46, 0.0  ;;  %v271_v23 = vld [vmem:[%s3907_s20 + $0x38] sm:$0xff] }
  0x36   : > { %v627_v33 = vrot.slane %v625_v14, 1  ;;  %3359 = vmatprep.subr.bf16.mxu0 %v3829_v4  ;;  %3088 = vmatpush3.bf16.msra.mxu1 %v3713_v2  ;;  %v870_v45 = vrot.slane %v4071_v37, 1  ;;  %v329_v60 = vmul.f32 %v3921_v24, %v290_v32  ;;  %v502_v61 = vrot.slane %v500_v49, 7  ;;  %v3720_v49 = vld [vmem:[%s5019_s3 + $0x68] sm:$0xff]  }
  0x37   : > { %v378_v47 = vmax.f32 %v346_v1, 0.0  ;;  %3089 = vmatprep.subr.bf16.mxu1 %v3714_v17  ;;  %v398_v0 = vmax.f32 %v366_v52, 0.0  ;;  %v399_v2 = vmax.f32 %v367_v54, 0.0  ;;  %v309_v11 = vmul.f32 %v3921_v24, %v270_v55 }
  0x38   : > { %v628_v44 = vor.u32 %v627_v33, %v623_v12  ;;  %v4089_v57 = vsel %vm837_vm2, %v870_v45, %v871_v34  ;;  %v368_v8 = vadd.f32 %v3934_v28, %v329_v60  ;;  %v5023_v12 = vmov 0   ;;  %v3719_v34 = vld [vmem:[%s5019_s3 + $0x20] sm:$0xff]  }
  0x39   : > { %3360 = vmatpush3.bf16.msra.mxu0 %v3829_v4  ;;  %3393 = vmatprep.mubr.bf16.mxu1 %v4089_v57  ;;  %v330_v4 = vmul.f32 %v3921_v24, %v291_v43  ;;  %v408_v6 = vpack.c.bf16 %v379_v59, %v378_v47  ;;  %v4103_v14 = vrot.slane %v5023_v12, 1  ;;  %v4107_v17 = vsel %vm3973_vm4, %v502_v61, 0  ;;  %v3721_v59 = vld [vmem:[%s5019_s3 + $0x28] sm:$0xff]  }
  0x3a   : > { %v4086_v56 = vsel %vm601_vm3, %v628_v44, %v632_v15  ;;  %3361 = vmatprep.subr.bf16.mxu0 %v3841_v7  ;;  %3090 = vmatpush3.bf16.msra.mxu1 %v3715_v35  ;;  %v505_v15 = vor.u32 %v503_v50, %v502_v61  ;;  %v418_v20 = vpack.c.bf16 %v399_v2, %v398_v0  ;;  %v874_v27 = vrot.slane %v4107_v17, 1  ;;  %v292_v35 = vld [vmem:[%s3907_s20 + $0xe0] sm:$0xff]  ;;  %v294_v61 = vld [vmem:[%s3907_s20 + $0xf0] sm:$0xff]  ;;  %v295_v0 = vld [vmem:[%s3907_s20 + $0xf8] sm:$0xff] }
  0x3b   : > { %1201 = vmatprep.mubr.bf16.mxu0 %v4086_v56  ;;  %3091 = vmatprep.subr.bf16.mxu1 %v3716_v51  ;;  %v369_v21 = vadd.f32 %v3934_v28, %v330_v4  ;;  %v437_v30 = vshrl.u32 %v408_v6, 16  ;;  %v440_v32 = vshll.u32 %v408_v6, 16  ;;  %v400_v33 = vmax.f32 %v368_v8, 0.0  ;;  %v3722_v6 = vld [vmem:[%s5019_s3 + $0x70] sm:$0xff]  }
  0x3c   : > { %1202 = vmatmul.mubr.bf16.gmra.mrb[4].mxu0 %v4042_v3  ;;  %v4124_v1 = vsel %vm3973_vm4, 0, %v505_v15  ;;  %v507_v39 = vshrl.u32 %v418_v20, 16  ;;  %v510_v41 = vshll.u32 %v418_v20, 16  ;;  %v310_v44 = vmul.f32 %v3921_v24, %v271_v23 }
  0x3d   : > { %3362 = vmatpush3.bf16.msra.mxu0 %v3841_v7  ;;  %v401_v7 = vmax.f32 %v369_v21, 0.0  ;;  %v873_v42 = vrot.slane %v4124_v1, 1  ;;  %v439_v43 = vrot.slane %v437_v30, 7  ;;  %v348_v45 = vadd.f32 %v3934_v28, %v309_v11 }
  0x3e   : > { %3363 = vmatprep.subr.bf16.mxu0 %v3854_v10  ;;  %3092 = vmatpush3.bf16.msra.mxu1 %v3717_v5  ;;  %v509_v46 = vrot.slane %v507_v39, 7  ;;  %v331_v50 = vmul.f32 %v3921_v24, %v292_v35  ;;  %v332_v51 = vmul.f32 %v3921_v24, %v293_v36  ;;  %v349_v60 = vadd.f32 %v3934_v28, %v310_v44  ;;  %v3723_v35 = vld [vmem:[%s5019_s3 + $0x30] sm:$0xff]  }
  0x3f   : > { %v419_v47 = vpack.c.bf16 %v401_v7, %v400_v33  ;;  %3093 = vmatprep.subr.bf16.mxu1 %v3718_v22  ;;  %v4136_v52 = vsel %vm837_vm2, %v873_v42, %v874_v27  ;;  %v442_v54 = vor.u32 %v440_v32, %v439_v43  ;;  %v4140_v55 = vsel %vm3973_vm4, %v439_v43, 0  ;;  %v3724_v7 = vld [vmem:[%s5019_s3 + $0x78] sm:$0xff]  }
  0x40   : > { %3394 = vmatmul.mubr.bf16.gmra.mrb[4].mxu1 %v4136_v52  ;;  %v512_v2 = vor.u32 %v510_v41, %v509_v46  ;;  %v4153_v4 = vsel %vm3973_vm4, %v509_v46, 0  ;;  %v380_v20 = vmax.f32 %v348_v45, 0.0  ;;  %v381_v33 = vmax.f32 %v349_v60, 0.0  ;;  %v272_v46 = vld [vmem:[%s3907_s20 + $0x40] sm:$0xff] }
  0x41   : > { %3364 = vmatpush3.bf16.msra.mxu0 %v3854_v10  ;;  %v642_v10 = vshll.u32 %v4140_v55, 16  ;;  %v514_v5 = vshrl.u32 %v419_v47, 16  ;;  %v4160_v8 = vsel %vm3973_vm4, 0, %v442_v54  ;;  %v877_v11 = vrot.slane %v4153_v4, 1  ;;  %v273_v54 = vld [vmem:[%s3907_s20 + $0x48] sm:$0xff] }
  0x42   : > { %3365 = vmatprep.subr.bf16.mxu0 %v3869_v13  ;;  %v517_v15 = vshll.u32 %v419_v47, 16  ;;  %3094 = vmatpush3.bf16.msra.mxu1 %v3719_v34  ;;  %v635_v21 = vshrl.u32 %v4160_v8, 16  ;;  %v637_v22 = vshll.u32 %v4160_v8, 16  ;;  %v4167_v27 = vsel %vm3973_vm4, 0, %v512_v2 }
  0x43   : > { %v644_v23 = vrot.slane %v642_v10, 1  ;;  %3095 = vmatprep.subr.bf16.mxu1 %v3720_v49  ;;  %v876_v30 = vrot.slane %v4167_v27, 1  ;;  %v516_v32 = vrot.slane %v514_v5, 7  ;;  %v370_v34 = vadd.f32 %v3934_v28, %v331_v50  ;;  %v3725_v10 = vld [vmem:[%s5019_s3 + $0x38] sm:$0xff]  }
  0x44   : > { %v639_v36 = vrot.slane %v637_v22, 1  ;;  %v371_v39 = vadd.f32 %v3934_v28, %v332_v51  ;;  %v333_v41 = vmul.f32 %v3921_v24, %v294_v61  ;;  %v409_v45 = vpack.c.bf16 %v381_v33, %v380_v20  ;;  %v274_v20 = vld [vmem:[%s3907_s20 + $0x50] sm:$0xff] }
  0x45   : > { %3366 = vmatpush3.bf16.msra.mxu0 %v3869_v13  ;;  %v334_v13 = vmul.f32 %v3921_v24, %v295_v0  ;;  %v4183_v42 = vsel %vm837_vm2, %v876_v30, %v877_v11  ;;  %v519_v43 = vor.u32 %v517_v15, %v516_v32  ;;  %v4187_v44 = vsel %vm3973_vm4, %v516_v32, 0  ;;  %v4210_v15 = vld [vmem:[%s5019_s3 + $0x80] sm:$0xff]  }
  0x46   : > { %3367 = vmatprep.subr.bf16.mxu0 %v3886_v16  ;;  %3096 = vmatpush3.bf16.msra.mxu1 %v3721_v59  ;;  %v640_v47 = vor.u32 %v639_v36, %v635_v21  ;;  %v880_v49 = vrot.slane %v4187_v44, 1  ;;  %v402_v50 = vmax.f32 %v370_v34, 0.0  ;;  %v403_v51 = vmax.f32 %v371_v39, 0.0  ;;  %v275_v36 = vld [vmem:[%s3907_s20 + $0x58] sm:$0xff] }
  0x47   : > { %3397 = vmatprep.mubr.bf16.mxu1 %v4183_v42  ;;  %3097 = vmatprep.subr.bf16.mxu1 %v3722_v6  ;;  %v4195_v60 = vsel %vm3973_vm4, 0, %v519_v43  ;;  %v444_v61 = vshrl.u32 %v409_v45, 16  ;;  %v447_v0 = vshll.u32 %v409_v45, 16  ;;  %v372_v59 = vadd.f32 %v3934_v28, %v333_v41  ;;  %v3733_v43 = vld [vmem:[%s5019_s3 + $0x1c0] sm:$0xff]  }
  0x48   : > { %v4203_v2 = vsel %vm601_vm3, %v640_v47, %v644_v23  ;;  %v879_v5 = vrot.slane %v4195_v60, 1  ;;  %v420_v6 = vpack.c.bf16 %v403_v51, %v402_v50  ;;  %v373_v11 = vadd.f32 %v3934_v28, %v334_v13 }
  0x49   : > { %3368 = vmatpush3.bf16.msra.mxu0 %v3886_v16  ;;  %1209 = vmatprep.mubr.bf16.mxu0 %v4203_v2  ;;  %v446_v16 = vrot.slane %v444_v61, 7  ;;  %v404_v21 = vmax.f32 %v372_v59, 0.0  ;;  %v311_v22 = vmul.f32 %v3921_v24, %v272_v46  ;;  %v312_v23 = vmul.f32 %v3921_v24, %v273_v54 }
  0x4a   : > { %3369 = vmatprep.subr.bf16.mxu0 %v3900_v19  ;;  %3098 = vmatpush3.bf16.msra.mxu1 %v3723_v35  ;;  %v4219_v30 = vsel %vm837_vm2, %v879_v5, %v880_v49  ;;  %v521_v32 = vshrl.u32 %v420_v6, 16  ;;  %v524_v33 = vshll.u32 %v420_v6, 16  ;;  %v405_v34 = vmax.f32 %v373_v11, 0.0 }
  0x4b   : > { %1210 = vmatmul.mubr.bf16.gmra.mrb[8].mxu0 %v4160_v8  ;;  %3099 = vmatprep.subr.bf16.mxu1 %v3724_v7  ;;  %v449_v39 = vor.u32 %v447_v0, %v446_v16  ;;  %v4225_v35 = vsel %vm3973_vm4, %v446_v16, 0  ;;  %v350_v41 = vadd.f32 %v3934_v28, %v311_v22  ;;  %v351_v13 = vadd.f32 %v3934_v28, %v312_v23 }
  0x4c   : > { %3398 = vmatmul.mubr.bf16.gmra.mrb[8].mxu1 %v4219_v30  ;;  %v654_v7 = vshll.u32 %v4225_v35, 16  ;;  %v523_v45 = vrot.slane %v521_v32, 7  ;;  %v421_v46 = vpack.c.bf16 %v405_v34, %v404_v21  ;;  %v313_v47 = vmul.f32 %v3921_v24, %v274_v20  ;;  %v276_v20 = vld [vmem:[%s3907_s20 + $0x60] sm:$0xff] }
  0x4d   : > { %3370 = vmatpush3.bf16.msra.mxu0 %v3900_v19  ;;  %v4238_v49 = vsel %vm3973_vm4, 0, %v449_v39  ;;  %v382_v50 = vmax.f32 %v350_v41, 0.0  ;;  %v383_v19 = vmax.f32 %v351_v13, 0.0  ;;  %v314_v51 = vmul.f32 %v3921_v24, %v275_v36  ;;  %v277_v39 = vld [vmem:[%s3907_s20 + $0x68] sm:$0xff] }
  0x4e   : > { %3371 = vmatprep.subr.bf16.mxu0 %v3927_v25  ;;  %3100 = vmatpush3.bf16.msra.mxu1 %v3725_v10  ;;  %v647_v54 = vshrl.u32 %v4238_v49, 16  ;;  %v649_v61 = vshll.u32 %v4238_v49, 16  ;;  %v656_v0 = vrot.slane %v654_v7, 1  ;;  %v526_v59 = vor.u32 %v524_v33, %v523_v45 }
  0x4f   : > { %3405 = vmatprep.subr.bf16.mxu1 %v4210_v15  ;;  %v4246_v5 = vsel %vm3973_vm4, %v523_v45, 0  ;;  %v528_v6 = vshrl.u32 %v421_v46, 16  ;;  %v531_v11 = vshll.u32 %v421_v46, 16  ;;  %v410_v10 = vpack.c.bf16 %v383_v19, %v382_v50  ;;  %v278_v45 = vld [vmem:[%s3907_s20 + $0x70] sm:$0xff]  ;;  %v279_v46 = vld [vmem:[%s3907_s20 + $0x78] sm:$0xff] }
  0x50   : > { %v651_v16 = vrot.slane %v649_v61, 1  ;;  %v4252_v21 = vsel %vm3973_vm4, 0, %v526_v59  ;;  %v883_v22 = vrot.slane %v4246_v5, 1  ;;  %v352_v23 = vadd.f32 %v3934_v28, %v313_v47 }
  0x51   : > { %3372 = vmatpush3.bf16.msra.mxu0 %v3927_v25  ;;  %v882_v32 = vrot.slane %v4252_v21, 1  ;;  %v530_v33 = vrot.slane %v528_v6, 7  ;;  %v451_v34 = vshrl.u32 %v410_v10, 16  ;;  %v454_v36 = vshll.u32 %v410_v10, 16 }
  0x52   : > { %3221 = vmatprep.subr.bf16.mxu0 %v3733_v43  ;;  %v652_v41 = vor.u32 %v651_v16, %v647_v54  ;;  %v353_v25 = vadd.f32 %v3934_v28, %v314_v51  ;;  %v384_v13 = vmax.f32 %v352_v23, 0.0  ;;  %v315_v7 = vmul.f32 %v3921_v24, %v276_v20 }
  0x53   : > { %v4263_v50 = vsel %vm837_vm2, %v882_v32, %v883_v22  ;;  %v533_v19 = vor.u32 %v531_v11, %v530_v33  ;;  %v4267_v43 = vsel %vm3973_vm4, %v530_v33, 0  ;;  %v453_v47 = vrot.slane %v451_v34, 7 }
  0x54   : > { %v4270_v61 = vsel %vm601_vm3, %v652_v41, %v656_v0  ;;  %3401 = vmatprep.mubr.bf16.mxu1 %v4263_v50  ;;  %v965_v51 = vrot.slane %v4267_v43, 1  ;;  %v385_v54 = vmax.f32 %v353_v25, 0.0  ;;  %v316_v59 = vmul.f32 %v3921_v24, %v277_v39 }
  0x55   : > { %1217 = vmatprep.mubr.bf16.mxu0 %v4270_v61  ;;  %v4278_v6 = vsel %vm3973_vm4, 0, %v533_v19  ;;  %v456_v11 = vor.u32 %v454_v36, %v453_v47  ;;  %v4282_v10 = vsel %vm3973_vm4, %v453_v47, 0  ;;  %v354_v0 = vadd.f32 %v3934_v28, %v315_v7 }
  0x56   : > { %1218 = vmatmul.mubr.bf16.gmra.mrb[12].mxu0 %v4238_v49  ;;  %v964_v20 = vrot.slane %v4278_v6, 1  ;;  %v666_v16 = vshll.u32 %v4282_v10, 16  ;;  %v411_v22 = vpack.c.bf16 %v385_v54, %v384_v13  ;;  %v355_v23 = vadd.f32 %v3934_v28, %v316_v59 }
  0x57   : > { %v4291_v32 = vsel %vm3973_vm4, 0, %v456_v11  ;;  %v386_v33 = vmax.f32 %v354_v0, 0.0  ;;  %v317_v34 = vmul.f32 %v3921_v24, %v278_v45  ;;  %v318_v36 = vmul.f32 %v3921_v24, %v279_v46 }
  0x58   : > { %v4296_v39 = vsel %vm837_vm2, %v964_v20, %v965_v51  ;;  %v659_v41 = vshrl.u32 %v4291_v32, 16  ;;  %v661_v25 = vshll.u32 %v4291_v32, 16  ;;  %v458_v13 = vshrl.u32 %v411_v22, 16 }
  0x59   : > { %3402 = vmatmul.mubr.bf16.gmra.mrb[12].mxu1 %v4296_v39  ;;  %v461_v7 = vshll.u32 %v411_v22, 16  ;;  %v387_v19 = vmax.f32 %v355_v23, 0.0  ;;  %v356_v47 = vadd.f32 %v3934_v28, %v317_v34  ;;  %v668_v59 = vrot.slane %v666_v16, 1 }
  0x5a   : > { %v663_v54 = vrot.slane %v661_v25, 1  ;;  %1659 = vmatprep.mubr.bf16.mxu1 %v4103_v14  ;;  %v357_v24 = vadd.f32 %v3934_v28, %v318_v36  ;;  %v460_v45 = vrot.slane %v458_v13, 7  ;;  %v3727_v36 = vld [vmem:[%s5019_s3 + $0x88] sm:$0xff]  }
  0x5b   : > { %v412_v46 = vpack.c.bf16 %v387_v19, %v386_v33  ;;  %v388_v51 = vmax.f32 %v356_v47, 0.0  ;;  %v5027_v19 = vmov 0  }
  0x5c   : > { %v664_v11 = vor.u32 %v663_v54, %v659_v41  ;;  %v389_v0 = vmax.f32 %v357_v24, 0.0  ;;  %v463_v20 = vor.u32 %v461_v7, %v460_v45  ;;  %v4306_v12 = vsel %vm3973_vm4, %v460_v45, 0 }
  0x5d   : > { %v465_v22 = vshrl.u32 %v412_v46, 16  ;;  %v468_v23 = vshll.u32 %v412_v46, 16  ;;  %v678_v16 = vshll.u32 %v4306_v12, 16 }
  0x5e   : > { %v4309_v34 = vsel %vm601_vm3, %v664_v11, %v668_v59  ;;  %v413_v25 = vpack.c.bf16 %v389_v0, %v388_v51  ;;  %v4315_v28 = vsel %vm3973_vm4, 0, %v463_v20  ;;  %v3728_v0 = vld [vmem:[%s5019_s3 + $0x90] sm:$0xff]  }
  0x5f   : > { %1225 = vmatprep.mubr.bf16.mxu0 %v4309_v34  ;;  %v467_v33 = vrot.slane %v465_v22, 7  ;;  %v671_v41 = vshrl.u32 %v4315_v28, 16  ;;  %v673_v13 = vshll.u32 %v4315_v28, 16  ;;  %v680_v45 = vrot.slane %v678_v16, 1 }
  0x60   : > { %1226 = vmatmul.mubr.bf16.gmra.mrb[16].mxu0 %v4291_v32  ;;  %v472_v7 = vshrl.u32 %v413_v25, 16  ;;  %v475_v59 = vshll.u32 %v413_v25, 16 }
  0x61   : > { %1660 = vmatmul.mubr.bf16.vlgmr.msra.gmra.mrb[16].mxu1 %v5027_v19  ;;  %v470_v47 = vor.u32 %v468_v23, %v467_v33  ;;  %v4326_v54 = vsel %vm3973_vm4, %v467_v33, 0  ;;  %v675_v24 = vrot.slane %v673_v13, 1 }
  0x62   : > { %3406 = vmatpush3.bf16.msra.mxu1 %v4210_v15  ;;  %1667 = vmatprep.mubr.bf16.mxu1 %v4029_v62  ;;  %v690_v46 = vshll.u32 %v4326_v54, 16  ;;  %v474_v51 = vrot.slane %v472_v7, 7  ;;  %v3729_v7 = vld [vmem:[%s5019_s3 + $0x98] sm:$0xff]  }
  0x63   : > { %v4333_v11 = vsel %vm3973_vm4, 0, %v470_v47  ;;  %3407 = vmatprep.subr.bf16.mxu1 %v3727_v36  ;;  %v676_v20 = vor.u32 %v675_v24, %v671_v41 }
  0x64   : > { %v683_v22 = vshrl.u32 %v4333_v11, 16  ;;  %v685_v15 = vshll.u32 %v4333_v11, 16  ;;  %v477_v23 = vor.u32 %v475_v59, %v474_v51  ;;  %v4342_v62 = vsel %vm3973_vm4, %v474_v51, 0  ;;  %v3730_v51 = vld [vmem:[%s5019_s3 + $0xa0] sm:$0xff]  }
  0x65   : > { %v4345_v16 = vsel %vm601_vm3, %v676_v20, %v680_v45  ;;  %v692_v33 = vrot.slane %v690_v46, 1  ;;  %v702_v13 = vshll.u32 %v4342_v62, 16  ;;  %v709_v46 = vshll.u32 %v3997_v38, 16 }
  0x66   : > { %v687_v25 = vrot.slane %v685_v15, 1  ;;  %3408 = vmatpush3.bf16.msra.mxu1 %v3727_v36  ;;  %1233 = vmatprep.mubr.bf16.mxu0 %v4345_v16  ;;  %v4351_v41 = vsel %vm3973_vm4, 0, %v477_v23  ;;  %v707_v15 = vshrl.u32 %v3997_v38, 16 }
  0x67   : > { %3409 = vmatprep.subr.bf16.mxu1 %v3728_v0  ;;  %v695_v59 = vshrl.u32 %v4351_v41, 16  ;;  %v697_v36 = vshll.u32 %v4351_v41, 16  ;;  %v704_v45 = vrot.slane %v702_v13, 1  ;;  %v711_v23 = vrot.slane %v709_v46, 1 }
  0x68   : > { %1234 = vmatmul.mubr.bf16.gmra.mrb[20].mxu0 %v4315_v28  ;;  %v688_v47 = vor.u32 %v687_v25, %v683_v22  ;;  %v714_v25 = vshll.u32 %v3989_v31, 16  ;;  %v3732_v31 = vld [vmem:[%s5019_s3 + $0xb0] sm:$0xff]  }
  0x69   : > { %1668 = vmatmul.mubr.bf16.gmra.mrb[20].mxu1 %v3985_v29  ;;  %v699_v9 = vrot.slane %v697_v36, 1 }
  0x6a   : > { %v4361_v24 = vsel %vm601_vm3, %v688_v47, %v692_v33  ;;  %1675 = vmatprep.mubr.bf16.mxu1 %v4086_v56  ;;  %3410 = vmatpush3.bf16.msra.mxu1 %v3728_v0  ;;  %v3731_v0 = vld [vmem:[%s5019_s3 + $0xa8] sm:$0xff]   ;;  %v712_v33 = vor.u32 %v711_v23, %v707_v15  ;;  %v716_v13 = vrot.slane %v714_v25, 1  ;;  %v721_v47 = vshll.u32 %v4011_v48, 16 }
  0x6b   : > { %1241 = vmatprep.mubr.bf16.mxu0 %v4361_v24  ;;  %3411 = vmatprep.subr.bf16.mxu1 %v3729_v7  ;;  %v700_v20 = vor.u32 %v699_v9, %v695_v59  ;;  %v719_v59 = vshrl.u32 %v4011_v48, 16  ;;  %v726_v9 = vshll.u32 %v4001_v40, 16  ;;  %v4401_v40 = vld [vmem:[%s5019_s3 + $0x200] sm:$0xff]   ;;  %v731_v23 = vshrl.u32 %v4071_v37, 16 }
  0x6c   : > { %v723_v36 = vrot.slane %v721_v47, 1  ;;  %v745_v47 = vshll.u32 %v4124_v1, 16 }
  0x6d   : > { %v4370_v22 = vsel %vm601_vm3, %v700_v20, %v704_v45  ;;  %v3741_v45 = vld [vmem:[%s5019_s3 + $0xb8] sm:$0xff]   ;;  %v733_v20 = vshll.u32 %v4071_v37, 16 }
  0x6e   : > { %3412 = vmatpush3.bf16.msra.mxu1 %v3729_v7  ;;  %v4386_v7 = vsel %vm601_vm3, %v712_v33, %v716_v13  ;;  %v724_v46 = vor.u32 %v723_v36, %v719_v59  ;;  %v747_v59 = vrot.slane %v745_v47, 1  ;;  %v750_v36 = vshll.u32 %v4107_v17, 16 }
  0x6f   : > { %3413 = vmatprep.subr.bf16.mxu1 %v3730_v51  ;;  %v735_v25 = vrot.slane %v733_v20, 1  ;;  %v755_v20 = vshrl.u32 %v4167_v27, 16  ;;  %v762_v17 = vshll.u32 %v4153_v4, 16  ;;  %v767_v47 = vshrl.u32 %v4195_v60, 16 }
  0x70   : > { %1242 = vmatmul.mubr.bf16.gmra.mrb[24].mxu0 %v4333_v11  ;;  %v774_v4 = vshll.u32 %v4187_v44, 16  ;;  %v786_v44 = vshll.u32 %v4246_v5, 16  ;;  %v957_v5 = vshll.u32 %v4267_v43, 16  ;;  %v840_v43 = vrot.slane %v3985_v29, 1 }
  0x71   : > { %1676 = vmatmul.mubr.bf16.gmra.mrb[24].mxu1 %v4042_v3  ;;  %1249 = vmatprep.mubr.bf16.mxu0 %v4370_v22  ;;  %v736_v33 = vor.u32 %v735_v25, %v731_v23  ;;  %v847_v29 = vrot.slane %v4140_v55, 1  ;;  %v3736_v55 = vld [vmem:[%s5019_s3 + $0x188] sm:$0xff]  }
  0x72   : > { %1683 = vmatprep.mubr.bf16.mxu1 %v4203_v2  ;;  %3414 = vmatpush3.bf16.msra.mxu1 %v3730_v51  ;;  %v728_v51 = vrot.slane %v726_v9, 1 }
  0x73   : > { %3415 = vmatprep.subr.bf16.mxu1 %v3731_v0 }
  0x74   : > { %v4404_v15 = vsel %vm601_vm3, %v724_v46, %v728_v51  ;;  %v757_v46 = vshll.u32 %v4167_v27, 16 }
  0x76   : > { %3416 = vmatpush3.bf16.msra.mxu1 %v3731_v0  ;;  %v738_v0 = vshll.u32 %v4059_v26, 16  ;;  %v743_v26 = vshrl.u32 %v4124_v1, 16  ;;  %v759_v23 = vrot.slane %v757_v46, 1  ;;  %v779_v46 = vshrl.u32 %v4252_v21, 16 }
  0x77   : > { %3417 = vmatprep.subr.bf16.mxu1 %v3732_v31 }
  0x78   : > { %1250 = vmatmul.mubr.bf16.gmra.mrb[28].mxu0 %v4351_v41  ;;  %v740_v13 = vrot.slane %v738_v0, 1  ;;  %v748_v9 = vor.u32 %v747_v59, %v743_v26  ;;  %v760_v25 = vor.u32 %v759_v23, %v755_v20  ;;  %v764_v0 = vrot.slane %v762_v17, 1 }
  0x79   : > { %1684 = vmatmul.mubr.bf16.gmra.mrb[28].mxu1 %v4160_v8  ;;  %1257 = vmatprep.mubr.bf16.mxu0 %v4386_v7  ;;  %v788_v17 = vrot.slane %v786_v44, 1  ;;  %v846_v44 = vrot.slane %v4160_v8, 1 }
  0x7a   : > { %1691 = vmatprep.mubr.bf16.mxu1 %v4270_v61  ;;  %3418 = vmatpush3.bf16.msra.mxu1 %v3732_v31  ;;  %v4415_v31 = vsel %vm601_vm3, %v736_v33, %v740_v13  ;;  %v769_v33 = vshll.u32 %v4195_v60, 16  ;;  %v4435_v13 = vsel %vm601_vm3, %v760_v25, %v764_v0  ;;  %v952_v25 = vshll.u32 %v4278_v6, 16 }
  0x7b   : > { %3419 = vmatprep.subr.bf16.mxu1 %v3741_v45 }
  0x7c   : > { %v771_v26 = vrot.slane %v769_v33, 1  ;;  %v950_v33 = vshrl.u32 %v4278_v6, 16 }
  0x7e   : > { %3420 = vmatpush3.bf16.msra.mxu1 %v3741_v45  ;;  %v752_v45 = vrot.slane %v750_v36, 1  ;;  %v772_v59 = vor.u32 %v771_v26, %v767_v47  ;;  %v776_v36 = vrot.slane %v774_v4, 1  ;;  %v954_v47 = vrot.slane %v952_v25, 1 }
  0x7f   : > { %3453 = vmatprep.subr.bf16.mxu1 %v4401_v40  ;;  %v959_v4 = vrot.slane %v957_v5, 1  ;;  %v849_v25 = vrot.slane %v4238_v49, 1  ;;  %v852_v5 = vrot.slane %v4291_v32, 1 }
  0x80   : > { %1258 = vmatmul.mubr.bf16.gmra.mrb[32].mxu0 %v3997_v38  ;;  %v4425_v51 = vsel %vm601_vm3, %v748_v9, %v752_v45  ;;  %v781_v9 = vshll.u32 %v4252_v21, 16  ;;  %v4445_v45 = vsel %vm601_vm3, %v772_v59, %v776_v36  ;;  %v955_v26 = vor.u32 %v954_v47, %v950_v33  ;;  %v3737_v47 = vld [vmem:[%s5019_s3 + $0x1d0] sm:$0xff]  }
  0x81   : > { %1692 = vmatmul.mubr.bf16.gmra.mrb[32].mxu1 %v4238_v49  ;;  %1265 = vmatprep.mubr.bf16.mxu0 %v4404_v15  ;;  %v841_v36 = vrot.slane %v3979_v18, 1  ;;  %v850_v33 = vrot.slane %v4225_v35, 1  ;;  %v3738_v35 = vld [vmem:[%s5019_s3 + $0x190] sm:$0xff]  }
  0x82   : > { %1699 = vmatprep.mubr.bf16.mxu1 %v4309_v34  ;;  %v783_v20 = vrot.slane %v781_v9, 1  ;;  %v4464_v59 = vsel %vm601_vm3, %v955_v26, %v959_v4  ;;  %v853_v26 = vrot.slane %v4282_v10, 1  ;;  %v3740_v10 = vld [vmem:[%s5019_s3 + $0x198] sm:$0xff]  }
  0x83   : > { %v4473_v9 = vsel %vm837_vm2, %v840_v43, %v841_v36  ;;  %v4510_v4 = vsel %vm837_vm2, %v849_v25, %v850_v33  ;;  %v3739_v43 = vld [vmem:[%s5019_s3 + $0x1d8] sm:$0xff]   ;;  %v861_v33 = vrot.slane %v4351_v41, 1 }
  0x84   : > { %v784_v23 = vor.u32 %v783_v20, %v779_v46  ;;  %v844_v46 = vrot.slane %v4025_v58, 1  ;;  %v843_v20 = vrot.slane %v4042_v3, 1  ;;  %v3735_v58 = vld [vmem:[%s5019_s3 + $0x1c8] sm:$0xff]   ;;  %v4519_v36 = vsel %vm837_vm2, %v852_v5, %v853_v26  ;;  %v3746_v5 = vld [vmem:[%s5019_s3 + $0x1f0] sm:$0xff]  }
  0x86   : > { %v4455_v0 = vsel %vm601_vm3, %v784_v23, %v788_v17  ;;  %v4484_v18 = vsel %vm837_vm2, %v843_v20, %v844_v46  ;;  %v3734_v23 = vld [vmem:[%s5019_s3 + $0x180] sm:$0xff]   ;;  %v4493_v17 = vsel %vm837_vm2, %v846_v44, %v847_v29  ;;  %v855_v46 = vrot.slane %v4315_v28, 1 }
  0x87   : > { %v856_v20 = vrot.slane %v4306_v12, 1  ;;  %v3742_v44 = vld [vmem:[%s5019_s3 + $0x1e0] sm:$0xff]   ;;  %v858_v29 = vrot.slane %v4333_v11, 1 }
  0x88   : > { %1266 = vmatmul.mubr.bf16.gmra.mrb[36].mxu0 %v4011_v48  ;;  %v3743_v12 = vld [vmem:[%s5019_s3 + $0x1a0] sm:$0xff]  }
  0x89   : > { %1700 = vmatmul.mubr.bf16.gmra.mrb[36].mxu1 %v4291_v32  ;;  %1273 = vmatprep.mubr.bf16.mxu0 %v4415_v31 }
  0x8a   : > { %1707 = vmatprep.mubr.bf16.mxu1 %v4345_v16 }
  0x90   : > { %1274 = vmatmul.mubr.bf16.gmra.mrb[40].mxu0 %v4071_v37 }
  0x91   : > { %1708 = vmatmul.mubr.bf16.gmra.mrb[40].mxu1 %v4315_v28  ;;  %1281 = vmatprep.mubr.bf16.mxu0 %v4425_v51 }
  0x92   : > { %1715 = vmatprep.mubr.bf16.mxu1 %v4361_v24 }
  0x98   : > { %1282 = vmatmul.mubr.bf16.gmra.mrb[44].mxu0 %v4124_v1 }
  0x99   : > { %1716 = vmatmul.mubr.bf16.gmra.mrb[44].mxu1 %v4333_v11  ;;  %1289 = vmatprep.mubr.bf16.mxu0 %v4435_v13 }
  0x9a   : > { %1723 = vmatprep.mubr.bf16.mxu1 %v4370_v22 }
  0xa0   : > { %1290 = vmatmul.mubr.bf16.gmra.mrb[48].mxu0 %v4167_v27 }
  0xa1   : > { %1724 = vmatmul.mubr.bf16.gmra.mrb[48].mxu1 %v4351_v41  ;;  %1297 = vmatprep.mubr.bf16.mxu0 %v4445_v45 }
  0xa2   : > { %1731 = vmatprep.mubr.bf16.mxu1 %v4386_v7 }
  0xa8   : > { %1298 = vmatmul.mubr.bf16.gmra.mrb[52].mxu0 %v4195_v60 }
  0xa9   : > { %1732 = vmatmul.mubr.bf16.gmra.mrb[52].mxu1 %v3997_v38  ;;  %1305 = vmatprep.mubr.bf16.mxu0 %v4455_v0 }
  0xaa   : > { %1739 = vmatprep.mubr.bf16.mxu1 %v4404_v15 }
  0xb0   : > { %1306 = vmatmul.mubr.bf16.gmra.mrb[56].mxu0 %v4252_v21 }
  0xb1   : > { %1740 = vmatmul.mubr.bf16.gmra.mrb[56].mxu1 %v4011_v48  ;;  %1313 = vmatprep.mubr.bf16.mxu0 %v4464_v59 }
  0xb2   : > { %1747 = vmatprep.mubr.bf16.mxu1 %v4415_v31 }
  0xb8   : > { %1314 = vmatmul.mubr.bf16.gmra.mrb[60].mxu0 %v4278_v6 }
  0xb9   : > { %1748 = vmatmul.mubr.bf16.gmra.mrb[60].mxu1 %v4071_v37  ;;  %3373 = vmatprep.mubr.bf16.mxu0 %v4473_v9 }
  0xba   : > { %1755 = vmatprep.mubr.bf16.mxu1 %v4425_v51 }
  0xc0   : > { %3374 = vmatmul.mubr.bf16.vlgmr.msra.gmra.mrb[64].mxu0 %v4484_v18 }
  0xc1   : > { %1756 = vmatmul.mubr.bf16.gmra.mrb[64].mxu1 %v4124_v1  ;;  %3222 = vmatpush3.bf16.msra.mxu0 %v3734_v23  ;;  %v859_v23 = vrot.slane %v4326_v54, 1  ;;  %v3745_v54 = vld [vmem:[%s5019_s3 + $0x1a8] sm:$0xff]  }
  0xc2   : > { %3223 = vmatprep.subr.bf16.mxu0 %v3735_v58  ;;  %3377 = vmatprep.mubr.bf16.mxu0 %v4493_v17  ;;  %v4536_v58 = vsel %vm837_vm2, %v855_v46, %v856_v20  ;;  %v3753_v46 = vld [vmem:[%s5019_s3 + $0x218] sm:$0xff]  }
  0xc3   : > { %1763 = vmatprep.mubr.bf16.mxu1 %v4435_v13  ;;  %v4545_v25 = vsel %vm837_vm2, %v858_v29, %v859_v23 }
  0xc5   : > { %3224 = vmatpush3.bf16.msra.mxu0 %v3736_v55  ;;  %v3744_v55 = vld [vmem:[%s5019_s3 + $0x1e8] sm:$0xff]  }
  0xc6   : > { %3225 = vmatprep.subr.bf16.mxu0 %v3737_v47  ;;  %v862_v47 = vrot.slane %v4342_v62, 1  ;;  %v3748_v62 = vld [vmem:[%s5019_s3 + $0x1f8] sm:$0xff]  }
  0xc8   : > { %3378 = vmatmul.mubr.bf16.gmra.mrb[68].mxu0 %v4510_v4  ;;  %v4560_v26 = vsel %vm837_vm2, %v861_v33, %v862_v47 }
  0xc9   : > { %1764 = vmatmul.mubr.bf16.gmra.mrb[68].mxu1 %v4167_v27  ;;  %3226 = vmatpush3.bf16.msra.mxu0 %v3738_v35  ;;  %v3747_v35 = vld [vmem:[%s5019_s3 + $0x1b0] sm:$0xff]  }
  0xca   : > { %3227 = vmatprep.subr.bf16.mxu0 %v3739_v43  ;;  %3381 = vmatprep.mubr.bf16.mxu0 %v4519_v36  ;;  %v3749_v43 = vld [vmem:[%s5019_s3 + $0x1b8] sm:$0xff]  }
  0xcb   : > { %1771 = vmatprep.mubr.bf16.mxu1 %v4445_v45 }
  0xcd   : > { %3228 = vmatpush3.bf16.msra.mxu0 %v3740_v10  ;;  %v3751_v10 = vld [vmem:[%s5019_s3 + $0x208] sm:$0xff]  }
  0xce   : > { %3229 = vmatprep.subr.bf16.mxu0 %v3742_v44 }
  0xd0   : > { %3382 = vmatmul.mubr.bf16.gmra.mrb[72].mxu0 %v4536_v58 }
  0xd1   : > { %1772 = vmatmul.mubr.bf16.gmra.mrb[72].mxu1 %v4195_v60  ;;  %3230 = vmatpush3.bf16.msra.mxu0 %v3743_v12 }
  0xd2   : > { %3231 = vmatprep.subr.bf16.mxu0 %v3744_v55  ;;  %3385 = vmatprep.mubr.bf16.mxu0 %v4545_v25 }
  0xd3   : > { %1779 = vmatprep.mubr.bf16.mxu1 %v4455_v0 }
  0xd5   : > { %3232 = vmatpush3.bf16.msra.mxu0 %v3745_v54 }
  0xd6   : > { %3233 = vmatprep.subr.bf16.mxu0 %v3746_v5 }
  0xd8   : > { %3386 = vmatmul.mubr.bf16.gmra.mrb[76].mxu0 %v4560_v26 }
  0xd9   : > { %1780 = vmatmul.mubr.bf16.gmra.mrb[76].mxu1 %v4252_v21  ;;  %3234 = vmatpush3.bf16.msra.mxu0 %v3747_v35 }
  0xda   : > { %3235 = vmatprep.subr.bf16.mxu0 %v3748_v62  ;;  %3421 = vmatprep.mubr.bf16.mxu1 %v4103_v14 }
  0xdb   : > { %2174 = vmatprep.mubr.bf16.mxu0 %v4086_v56  ;;  %v3752_v56 = vld [vmem:[%s5019_s3 + $0x210] sm:$0xff]  }
  0xdd   : > { %3236 = vmatpush3.bf16.msra.mxu0 %v3749_v43 }
  0xe0   : > { %2175 = vmatmul.mubr.bf16.vlgmr.msra.gmra.mrb[80].mxu0 %v4042_v3  ;;  %v3754_v3 = vld [vmem:[%s5019_s3 + $0x220] sm:$0xff]  }
  0xe1   : > { %3422 = vmatmul.mubr.bf16.vlgmr.msra.gmra.mrb[80].mxu1 %v4473_v9  ;;  %2182 = vmatprep.mubr.bf16.mxu0 %v4203_v2  ;;  %v3755_v2 = vld [vmem:[%s5019_s3 + $0x228] sm:$0xff]  }
  0xe2   : > { %3454 = vmatpush3.bf16.msra.mxu1 %v4401_v40  ;;  %3425 = vmatprep.mubr.bf16.mxu1 %v4484_v18 }
  0xe3   : > { %3455 = vmatprep.subr.bf16.mxu1 %v3751_v10 }
  0xe6   : > { %3456 = vmatpush3.bf16.msra.mxu1 %v3751_v10 }
  0xe7   : > { %3457 = vmatprep.subr.bf16.mxu1 %v3752_v56 }
  0xe8   : > { %2183 = vmatmul.mubr.bf16.gmra.mrb[84].mxu0 %v4160_v8  ;;  %v3756_v8 = vld [vmem:[%s5019_s3 + $0x230] sm:$0xff]  }
  0xe9   : > { %3426 = vmatmul.mubr.bf16.gmra.mrb[84].mxu1 %v4493_v17  ;;  %2190 = vmatprep.mubr.bf16.mxu0 %v4270_v61  ;;  %v3757_v61 = vld [vmem:[%s5019_s3 + $0x238] sm:$0xff]  }
  0xea   : > { %3429 = vmatprep.mubr.bf16.mxu1 %v4510_v4  ;;  %3458 = vmatpush3.bf16.msra.mxu1 %v3752_v56 }
  0xeb   : > { %3459 = vmatprep.subr.bf16.mxu1 %v3753_v46 }
  0xee   : > { %3460 = vmatpush3.bf16.msra.mxu1 %v3753_v46 }
  0xef   : > { %3461 = vmatprep.subr.bf16.mxu1 %v3754_v3 }
  0xf0   : > { %2191 = vmatmul.mubr.bf16.gmra.mrb[88].mxu0 %v4238_v49 }
  0xf1   : > { %3430 = vmatmul.mubr.bf16.gmra.mrb[88].mxu1 %v4519_v36  ;;  %2198 = vmatprep.mubr.bf16.mxu0 %v4309_v34 }
  0xf2   : > { %3433 = vmatprep.mubr.bf16.mxu1 %v4536_v58  ;;  %3462 = vmatpush3.bf16.msra.mxu1 %v3754_v3 }
  0xf3   : > { %3463 = vmatprep.subr.bf16.mxu1 %v3755_v2 }
  0xf6   : > { %3464 = vmatpush3.bf16.msra.mxu1 %v3755_v2 }
  0xf7   : > { %3465 = vmatprep.subr.bf16.mxu1 %v3756_v8 }
  0xf8   : > { %2199 = vmatmul.mubr.bf16.gmra.mrb[92].mxu0 %v4291_v32 }
  0xf9   : > { %3434 = vmatmul.mubr.bf16.gmra.mrb[92].mxu1 %v4545_v25  ;;  %2206 = vmatprep.mubr.bf16.mxu0 %v4345_v16 }
  0xfa   : > { %3437 = vmatprep.mubr.bf16.mxu1 %v4560_v26  ;;  %3466 = vmatpush3.bf16.msra.mxu1 %v3756_v8 }
  0xfb   : > { %3467 = vmatprep.subr.bf16.mxu1 %v3757_v61 }
  0xfe   : > { %3468 = vmatpush3.bf16.msra.mxu1 %v3757_v61 }
 0x100   : > { %2207 = vmatmul.mubr.bf16.gmra.mrb[96].mxu0 %v4315_v28 }
 0x101   : > { %3438 = vmatmul.mubr.bf16.gmra.mrb[0].mxu1 %v4015_v53  ;;  %2214 = vmatprep.mubr.bf16.mxu0 %v4361_v24 }
 0x102   : > { %3441 = vmatprep.mubr.bf16.mxu1 %v4032_v63 }
 0x107   : > { %v2965_v49 = vpop.f32.mrb[0].mxu0 }
 0x108   : > { %v2966_v34 = vpop.f32.mrb[1].mxu0  ;;  %2215 = vmatmul.mubr.bf16.gmra.mrb[100].mxu0 %v4333_v11 }
 0x109   : > { %v4617_v32 = vadd.f32 %v2966_v34, %v2965_v49  ;;  %v2968_v40 = vpop.f32.mrb[2].mxu0  ;;  %3442 = vmatmul.mubr.bf16.gmra.mrb[4].mxu1 %v4089_v57  ;;  %2222 = vmatprep.mubr.bf16.mxu0 %v4370_v22 }
 0x10a   : > { %v2969_v9 = vpop.f32.mrb[3].mxu0  ;;  %3445 = vmatprep.mubr.bf16.mxu1 %v4136_v52 }
 0x10b   : > { %v4620_v16 = vadd.f32 %v2969_v9, %v2968_v40 }
 0x10f   : > { %v2971_v28 = vpop.f32.mrb[4].mxu0 }
 0x110   : > { %v2972_v24 = vpop.f32.mrb[5].mxu0  ;;  %2223 = vmatmul.mubr.bf16.gmra.mrb[104].mxu0 %v4351_v41 }
 0x111   : > { %v4625_v20 = vadd.f32 %v2972_v24, %v2971_v28  ;;  %v2974_v44 = vpop.f32.mrb[6].mxu0  ;;  %3446 = vmatmul.mubr.bf16.gmra.mrb[8].mxu1 %v4183_v42  ;;  %2230 = vmatprep.mubr.bf16.mxu0 %v4386_v7 }
 0x112   : > { %v2975_v29 = vpop.f32.mrb[7].mxu0  ;;  %3449 = vmatprep.mubr.bf16.mxu1 %v4219_v30 }
 0x113   : > { %v4628_v23 = vadd.f32 %v2975_v29, %v2974_v44 }
 0x118   : > { %2231 = vmatmul.mubr.bf16.gmra.mrb[108].mxu0 %v3997_v38 }
 0x119   : > { %3450 = vmatmul.mubr.bf16.gmra.mrb[12].mxu1 %v4263_v50  ;;  %2238 = vmatprep.mubr.bf16.mxu0 %v4404_v15 }
 0x11a   : > { %3469 = vmatprep.mubr.bf16.mxu1 %v4484_v18 }
 0x11e   : > { %v2977_v11 = vpop.f32.mrb[8].mxu0 }
 0x11f   : > { %v2978_v22 = vpop.f32.mrb[9].mxu0 }
 0x120   : > { %v4637_v12 = vadd.f32 %v2978_v22, %v2977_v11  ;;  %v2980_v41 = vpop.f32.mrb[10].mxu0  ;;  %2239 = vmatmul.mubr.bf16.gmra.mrb[112].mxu0 %v4011_v48 }
 0x121   : > { %v2981_v55 = vpop.f32.mrb[11].mxu0  ;;  %3470 = vmatmul.mubr.bf16.vlgmr.msra.gmra.mrb[80].mxu1 %v4493_v17  ;;  %2246 = vmatprep.mubr.bf16.mxu0 %v4415_v31 }
 0x122   : > { %v4641_v7 = vadd.f32 %v2981_v55, %v2980_v41  ;;  %3473 = vmatprep.mubr.bf16.mxu1 %v4510_v4 }
 0x128   : > { %2247 = vmatmul.mubr.bf16.gmra.mrb[116].mxu0 %v4071_v37 }
 0x129   : > { %3474 = vmatmul.mubr.bf16.gmra.mrb[84].mxu1 %v4519_v36  ;;  %v2983_v38 = vpop.f32.mrb[12].mxu0  ;;  %2254 = vmatprep.mubr.bf16.mxu0 %v4425_v51 }
 0x12a   : > { %v2984_v15 = vpop.f32.mrb[13].mxu0  ;;  %3477 = vmatprep.mubr.bf16.mxu1 %v4536_v58 }
 0x12b   : > { %v4649_v48 = vadd.f32 %v2984_v15, %v2983_v38  ;;  %v2986_v18 = vpop.f32.mrb[14].mxu0 }
 0x12c   : > { %v2987_v17 = vpop.f32.mrb[15].mxu0 }
 0x12d   : > { %v4651_v54 = vadd.f32 %v2987_v17, %v2986_v18 }
 0x130   : > { %2255 = vmatmul.mubr.bf16.gmra.mrb[120].mxu0 %v4124_v1 }
 0x131   : > { %3478 = vmatmul.mubr.bf16.gmra.mrb[88].mxu1 %v4545_v25  ;;  %2262 = vmatprep.mubr.bf16.mxu0 %v4435_v13 }
 0x132   : > { %3481 = vmatprep.mubr.bf16.mxu1 %v4560_v26 }
 0x133   : > { %v2989_v37 = vpop.f32.mrb[16].mxu0 }
 0x134   : > { %v3101_v31 = vpop.f32.mrb[16].mxu1  ;;  %v2990_v51 = vpop.f32.mrb[17].mxu0 }
 0x135   : > { %v4657_v4 = vadd.f32 %v2990_v51, %v2989_v37  ;;  %v3102_v36 = vpop.f32.mrb[17].mxu1  ;;  %v2992_v58 = vpop.f32.mrb[18].mxu0 }
 0x136   : > { %v4659_v33 = vadd.f32 %v3102_v36, %v3101_v31  ;;  %v3104_v47 = vpop.f32.mrb[18].mxu1  ;;  %v2993_v5 = vpop.f32.mrb[19].mxu0 }
 0x137   : > { %v4661_v35 = vadd.f32 %v2993_v5, %v2992_v58  ;;  %v3105_v1 = vpop.f32.mrb[19].mxu1 }
 0x138   : > { %v4663_v62 = vadd.f32 %v3105_v1, %v3104_v47  ;;  %2263 = vmatmul.mubr.bf16.gmra.mrb[124].mxu0 %v4167_v27 }
 0x139   : > { %3482 = vmatmul.mubr.bf16.gmra.mrb[92].mxu1 %v4015_v53  ;;  %2270 = vmatprep.mubr.bf16.mxu0 %v4445_v45 }
 0x13a   : > { %3485 = vmatprep.mubr.bf16.mxu1 %v4032_v63 }
 0x13b   : > { %v2995_v13 = vpop.f32.mrb[20].mxu0 }
 0x13c   : > { %v3107_v25 = vpop.f32.mrb[20].mxu1  ;;  %v2996_v26 = vpop.f32.mrb[21].mxu0 }
 0x13d   : > { %v4669_v43 = vadd.f32 %v2996_v26, %v2995_v13  ;;  %v3108_v10 = vpop.f32.mrb[21].mxu1  ;;  %v2998_v56 = vpop.f32.mrb[22].mxu0 }
 0x13e   : > { %v4671_v46 = vadd.f32 %v3108_v10, %v3107_v25  ;;  %v3110_v3 = vpop.f32.mrb[22].mxu1  ;;  %v2999_v2 = vpop.f32.mrb[23].mxu0 }
 0x13f   : > { %v4673_v8 = vadd.f32 %v2999_v2, %v2998_v56  ;;  %v3111_v27 = vpop.f32.mrb[23].mxu1 }
 0x140   : > { %v4675_v61 = vadd.f32 %v3111_v27, %v3110_v3  ;;  %2271 = vmatmul.mubr.bf16.gmra.mrb[128].mxu0 %v4195_v60 }
 0x141   : > { %3486 = vmatmul.mubr.bf16.gmra.mrb[0].mxu1 %v4089_v57  ;;  %2278 = vmatprep.mubr.bf16.mxu0 %v4455_v0 }
 0x142   : > { %3489 = vmatprep.mubr.bf16.mxu1 %v4136_v52 }
 0x143   : > { %v3001_v53 = vpop.f32.mrb[24].mxu0 }
 0x144   : > { %v3113_v63 = vpop.f32.mrb[24].mxu1  ;;  %v3002_v45 = vpop.f32.mrb[25].mxu0 }
 0x145   : > { %v4681_v49 = vadd.f32 %v3002_v45, %v3001_v53  ;;  %v3114_v34 = vpop.f32.mrb[25].mxu1  ;;  %v3004_v40 = vpop.f32.mrb[26].mxu0 }
 0x146   : > { %v4683_v9 = vadd.f32 %v3114_v34, %v3113_v63  ;;  %v3116_v28 = vpop.f32.mrb[26].mxu1  ;;  %v3005_v24 = vpop.f32.mrb[27].mxu0 }
 0x147   : > { %v4685_v44 = vadd.f32 %v3005_v24, %v3004_v40  ;;  %v3117_v60 = vpop.f32.mrb[27].mxu1 }
 0x148   : > { %v4687_v29 = vadd.f32 %v3117_v60, %v3116_v28  ;;  %2279 = vmatmul.mubr.bf16.gmra.mrb[132].mxu0 %v4252_v21 }
 0x149   : > { %3490 = vmatmul.mubr.bf16.gmra.mrb[4].mxu1 %v4183_v42  ;;  %2286 = vmatprep.mubr.bf16.mxu0 %v4464_v59 }
 0x14a   : > { %3493 = vmatprep.mubr.bf16.mxu1 %v4219_v30 }
 0x14b   : > { %v3007_v57 = vpop.f32.mrb[28].mxu0 }
 0x14c   : > { %v3119_v52 = vpop.f32.mrb[28].mxu1  ;;  %v3008_v0 = vpop.f32.mrb[29].mxu0 }
 0x14d   : > { %v4693_v11 = vadd.f32 %v3008_v0, %v3007_v57  ;;  %v3120_v22 = vpop.f32.mrb[29].mxu1  ;;  %v3010_v41 = vpop.f32.mrb[30].mxu0 }
 0x14e   : > { %v4695_v55 = vadd.f32 %v3120_v22, %v3119_v52  ;;  %v3122_v38 = vpop.f32.mrb[30].mxu1  ;;  %v3011_v15 = vpop.f32.mrb[31].mxu0 }
 0x14f   : > { %v4697_v18 = vadd.f32 %v3011_v15, %v3010_v41  ;;  %v3123_v21 = vpop.f32.mrb[31].mxu1 }
 0x150   : > { %v4699_v17 = vadd.f32 %v3123_v21, %v3122_v38  ;;  %2287 = vmatmul.mubr.bf16.gmra.mrb[136].mxu0 %v4278_v6 }
 0x151   : > { %3494 = vmatmul.mubr.bf16.gmra.mrb[8].mxu1 %v4263_v50  ;;  %2294 = vmatprep.mubr.bf16.mxu0 %v4103_v14 }
 0x152   : > { %3497 = vmatprep.mubr.bf16.mxu1 %v4296_v39 }
 0x153   : > { %v3013_v42 = vpop.f32.mrb[32].mxu0 }
 0x154   : > { %v3125_v30 = vpop.f32.mrb[32].mxu1  ;;  %v3014_v59 = vpop.f32.mrb[33].mxu0 }
 0x155   : > { %v3015_v37 = vadd.f32 %v3014_v59, %v3013_v42  ;;  %v3126_v31 = vpop.f32.mrb[33].mxu1  ;;  %v3016_v51 = vpop.f32.mrb[34].mxu0 }
 0x156   : > { %v4705_v36 = vadd.f32 %v3126_v31, %v3125_v30  ;;  %v3128_v58 = vpop.f32.mrb[34].mxu1  ;;  %v3017_v47 = vpop.f32.mrb[35].mxu0 }
 0x157   : > { %v3018_v5 = vadd.f32 %v3017_v47, %v3016_v51  ;;  %v3129_v1 = vpop.f32.mrb[35].mxu1 }
 0x158   : > { %v4707_v13 = vadd.f32 %v3129_v1, %v3128_v58  ;;  %2295 = vmatmul.mubr.bf16.gmra.mrb[140].mxu0 %v5027_v19 }
 0x159   : > { %3498 = vmatmul.mubr.bf16.gmra.mrb[12].mxu1 %v4103_v14 }
 0x15b   : > { %v3019_v50 = vpop.f32.mrb[36].mxu0 }
 0x15c   : > { %v3131_v6 = vpop.f32.mrb[36].mxu1  ;;  %v3020_v39 = vpop.f32.mrb[37].mxu0 }
 0x15d   : > { %v3021_v25 = vadd.f32 %v3020_v39, %v3019_v50  ;;  %v3132_v26 = vpop.f32.mrb[37].mxu1  ;;  %v3022_v10 = vpop.f32.mrb[38].mxu0 }
 0x15e   : > { %v4711_v56 = vadd.f32 %v3132_v26, %v3131_v6  ;;  %v3134_v3 = vpop.f32.mrb[38].mxu1  ;;  %v3023_v2 = vpop.f32.mrb[39].mxu0 }
 0x15f   : > { %v3024_v27 = vadd.f32 %v3023_v2, %v3022_v10  ;;  %v3135_v53 = vpop.f32.mrb[39].mxu1 }
 0x160   : > { %v4713_v63 = vadd.f32 %v3135_v53, %v3134_v3 }
 0x163   : > { %v3025_v45 = vpop.f32.mrb[40].mxu0 }
 0x164   : > { %v3137_v34 = vpop.f32.mrb[40].mxu1  ;;  %v3026_v40 = vpop.f32.mrb[41].mxu0 }
 0x165   : > { %v3027_v19 = vadd.f32 %v3026_v40, %v3025_v45  ;;  %v3138_v28 = vpop.f32.mrb[41].mxu1  ;;  %v3028_v14 = vpop.f32.mrb[42].mxu0 }
 0x166   : > { %v4715_v24 = vadd.f32 %v3138_v28, %v3137_v34  ;;  %v3140_v60 = vpop.f32.mrb[42].mxu1  ;;  %v3029_v57 = vpop.f32.mrb[43].mxu0 }
 0x167   : > { %v3030_v52 = vadd.f32 %v3029_v57, %v3028_v14  ;;  %v3141_v0 = vpop.f32.mrb[43].mxu1 }
 0x168   : > { %v4717_v22 = vadd.f32 %v3141_v0, %v3140_v60 }
 0x16b   : > { %v3031_v41 = vpop.f32.mrb[44].mxu0 }
 0x16c   : > { %v3143_v38 = vpop.f32.mrb[44].mxu1  ;;  %v3032_v15 = vpop.f32.mrb[45].mxu0 }
 0x16d   : > { %v3033_v21 = vadd.f32 %v3032_v15, %v3031_v41  ;;  %v3144_v42 = vpop.f32.mrb[45].mxu1  ;;  %v3034_v30 = vpop.f32.mrb[46].mxu0 }
 0x16e   : > { %v4719_v59 = vadd.f32 %v3144_v42, %v3143_v38  ;;  %v3146_v31 = vpop.f32.mrb[46].mxu1  ;;  %v3035_v51 = vpop.f32.mrb[47].mxu0 }
 0x16f   : > { %v3036_v58 = vadd.f32 %v3035_v51, %v3034_v30  ;;  %v3147_v47 = vpop.f32.mrb[47].mxu1 }
 0x170   : > { %v4721_v1 = vadd.f32 %v3147_v47, %v3146_v31 }
 0x173   : > { %v3037_v50 = vpop.f32.mrb[48].mxu0 }
 0x174   : > { %v3149_v6 = vpop.f32.mrb[48].mxu1  ;;  %v3038_v39 = vpop.f32.mrb[49].mxu0 }
 0x175   : > { %v4723_v26 = vadd.f32 %v3038_v39, %v3037_v50  ;;  %v3150_v10 = vpop.f32.mrb[49].mxu1  ;;  %v3040_v3 = vpop.f32.mrb[50].mxu0 }
 0x176   : > { %v3151_v2 = vadd.f32 %v3150_v10, %v3149_v6  ;;  %v3152_v53 = vpop.f32.mrb[50].mxu1  ;;  %v3041_v45 = vpop.f32.mrb[51].mxu0 }
 0x177   : > { %v4725_v34 = vadd.f32 %v3041_v45, %v3040_v3  ;;  %v3153_v40 = vpop.f32.mrb[51].mxu1 }
 0x178   : > { %v4727_v28 = vadd.f32 %v3151_v2, %v3015_v37  ;;  %v3154_v14 = vadd.f32 %v3153_v40, %v3152_v53 }
 0x17a   : > { %v4729_v60 = vadd.f32 %v3154_v14, %v3018_v5 }
 0x17b   : > { %v3043_v57 = vpop.f32.mrb[52].mxu0 }
 0x17c   : > { %v3155_v0 = vpop.f32.mrb[52].mxu1  ;;  %v3044_v41 = vpop.f32.mrb[53].mxu0 }
 0x17d   : > { %v4731_v38 = vadd.f32 %v3044_v41, %v3043_v57  ;;  %v3156_v15 = vpop.f32.mrb[53].mxu1  ;;  %v3046_v42 = vpop.f32.mrb[54].mxu0 }
 0x17e   : > { %v3157_v30 = vadd.f32 %v3156_v15, %v3155_v0  ;;  %v3158_v31 = vpop.f32.mrb[54].mxu1  ;;  %v3047_v51 = vpop.f32.mrb[55].mxu0 }
 0x17f   : > { %v4733_v47 = vadd.f32 %v3047_v51, %v3046_v42  ;;  %v3159_v50 = vpop.f32.mrb[55].mxu1 }
 0x180   : > { %v4735_v6 = vadd.f32 %v3157_v30, %v3021_v25  ;;  %v3160_v37 = vadd.f32 %v3159_v50, %v3158_v31 }
 0x182   : > { %v4737_v39 = vadd.f32 %v3160_v37, %v3024_v27 }
 0x183   : > { %v3049_v5 = vpop.f32.mrb[56].mxu0 }
 0x184   : > { %v3161_v10 = vpop.f32.mrb[56].mxu1  ;;  %v3050_v3 = vpop.f32.mrb[57].mxu0 }
 0x185   : > { %v4739_v2 = vadd.f32 %v3050_v3, %v3049_v5  ;;  %v3162_v53 = vpop.f32.mrb[57].mxu1  ;;  %v3052_v45 = vpop.f32.mrb[58].mxu0 }
 0x186   : > { %v3163_v40 = vadd.f32 %v3162_v53, %v3161_v10  ;;  %v3164_v14 = vpop.f32.mrb[58].mxu1  ;;  %v3053_v57 = vpop.f32.mrb[59].mxu0 }
 0x187   : > { %v4741_v0 = vadd.f32 %v3053_v57, %v3052_v45  ;;  %v3165_v41 = vpop.f32.mrb[59].mxu1 }
 0x188   : > { %v4743_v15 = vadd.f32 %v3163_v40, %v3027_v19  ;;  %v3166_v25 = vadd.f32 %v3165_v41, %v3164_v14 }
 0x18a   : > { %v4745_v42 = vadd.f32 %v3166_v25, %v3030_v52 }
 0x18b   : > { %v3055_v27 = vpop.f32.mrb[60].mxu0 }
 0x18c   : > { %5028 = vst [vmem:[#allocation2_spill] sm:$0xff] %v4745_v42  ;;  %v3167_v30 = vpop.f32.mrb[60].mxu1  ;;  %v3056_v31 = vpop.f32.mrb[61].mxu0 }
 0x18d   : > { %v4747_v51 = vadd.f32 %v3056_v31, %v3055_v27  ;;  %v3168_v50 = vpop.f32.mrb[61].mxu1  ;;  %v3058_v37 = vpop.f32.mrb[62].mxu0 }
 0x18e   : > { %v3169_v5 = vadd.f32 %v3168_v50, %v3167_v30  ;;  %v3170_v3 = vpop.f32.mrb[62].mxu1  ;;  %v3059_v10 = vpop.f32.mrb[63].mxu0 }
 0x18f   : > { %v4749_v53 = vadd.f32 %v3059_v10, %v3058_v37  ;;  %v3171_v45 = vpop.f32.mrb[63].mxu1 }
 0x190   : > { %v4751_v57 = vadd.f32 %v3169_v5, %v3033_v21  ;;  %v3172_v19 = vadd.f32 %v3171_v45, %v3170_v3 }
 0x192   : > { %v4753_v40 = vadd.f32 %v3172_v19, %v3036_v58 }
 0x193   : > { %v3375_v52 = vpop.f32.mrb[64].mxu0 }
 0x194   : > { %v1365_v14 = vadd.f32 %v3375_v52, %v4625_v20  ;;  %v3173_v41 = vpop.f32.mrb[64].mxu1  ;;  %v1356_v25 = vpop.f32.mrb[65].mxu0 }
 0x195   : > { %v1357_v27 = vadd.f32 %v4617_v32, %v1356_v25  ;;  %v3174_v31 = vpop.f32.mrb[65].mxu1  ;;  %v3376_v42 = vpop.f32.mrb[66].mxu0 }
 0x196   : > { %v4758_v30 = vadd.f32 %v4671_v46, %v1365_v14  ;;  %v3175_v50 = vadd.f32 %v3174_v31, %v3173_v41  ;;  %v1368_v37 = vadd.f32 %v3376_v42, %v4628_v23  ;;  %v3176_v21 = vpop.f32.mrb[66].mxu1  ;;  %v1359_v5 = vpop.f32.mrb[67].mxu0 }
 0x197   : > { %v4762_v58 = vadd.f32 %v4659_v33, %v1357_v27  ;;  %v1360_v3 = vadd.f32 %v4620_v16, %v1359_v5  ;;  %v3177_v20 = vpop.f32.mrb[67].mxu1 }
 0x198   : > { %v4766_v10 = vadd.f32 %v3175_v50, %v4723_v26  ;;  %v4769_v32 = vadd.f32 %v4675_v61, %v1368_v37  ;;  %v3178_v45 = vadd.f32 %v3177_v20, %v3176_v21 }
 0x199   : > { %v4772_v46 = vadd.f32 %v4663_v62, %v1360_v3 }
 0x19a   : > { %v4775_v23 = vadd.f32 %v3178_v45, %v4725_v34 }
 0x19b   : > { %v3379_v42 = vpop.f32.mrb[68].mxu0 }
 0x19c   : > { %v1381_v33 = vadd.f32 %v3379_v42, %v4649_v48  ;;  %v3179_v19 = vpop.f32.mrb[68].mxu1  ;;  %v1372_v52 = vpop.f32.mrb[69].mxu0 }
 0x19d   : > { %v1373_v16 = vadd.f32 %v4637_v12, %v1372_v52  ;;  %v3180_v14 = vpop.f32.mrb[69].mxu1  ;;  %v3380_v26 = vpop.f32.mrb[70].mxu0 }
 0x19e   : > { %v4780_v41 = vadd.f32 %v4695_v55, %v1381_v33  ;;  %v3181_v61 = vadd.f32 %v3180_v14, %v3179_v19  ;;  %v1384_v25 = vadd.f32 %v3380_v26, %v4651_v54  ;;  %v3182_v62 = vpop.f32.mrb[70].mxu1  ;;  %v1375_v27 = vpop.f32.mrb[71].mxu0 }
 0x19f   : > { %v4784_v34 = vadd.f32 %v4683_v9, %v1373_v16  ;;  %v1376_v31 = vadd.f32 %v4641_v7, %v1375_v27  ;;  %v3183_v48 = vpop.f32.mrb[71].mxu1 }
 0x1a0   : > { %v4788_v50 = vadd.f32 %v3181_v61, %v4731_v38  ;;  %v4791_v12 = vadd.f32 %v4699_v17, %v1384_v25  ;;  %v3184_v37 = vadd.f32 %v3183_v48, %v3182_v62 }
 0x1a1   : > { %v4794_v55 = vadd.f32 %v4687_v29, %v1376_v31 }
 0x1a2   : > { %v4797_v54 = vadd.f32 %v3184_v37, %v4733_v47 }
 0x1a3   : > { %v3383_v21 = vpop.f32.mrb[72].mxu0 }
 0x1a4   : > { %v1397_v9 = vadd.f32 %v3383_v21, %v4669_v43  ;;  %v3185_v5 = vpop.f32.mrb[72].mxu1  ;;  %v1388_v3 = vpop.f32.mrb[73].mxu0 }
 0x1a5   : > { %v1389_v7 = vadd.f32 %v4657_v4, %v1388_v3  ;;  %v3186_v20 = vpop.f32.mrb[73].mxu1  ;;  %v3384_v38 = vpop.f32.mrb[74].mxu0 }
 0x1a6   : > { %v4802_v45 = vadd.f32 %v4711_v56, %v1397_v9  ;;  %v3187_v17 = vadd.f32 %v3186_v20, %v3185_v5  ;;  %v1400_v42 = vadd.f32 %v3384_v38, %v4673_v8  ;;  %v3188_v29 = vpop.f32.mrb[74].mxu1  ;;  %v1391_v33 = vpop.f32.mrb[75].mxu0 }
 0x1a7   : > { %v4806_v47 = vadd.f32 %v4705_v36, %v1389_v7  ;;  %v1392_v19 = vadd.f32 %v4661_v35, %v1391_v33  ;;  %v3189_v43 = vpop.f32.mrb[75].mxu1 }
 0x1a8   : > { %v4810_v52 = vadd.f32 %v3187_v17, %v4739_v2  ;;  %v4813_v4 = vadd.f32 %v4713_v63, %v1400_v42  ;;  %v3190_v16 = vadd.f32 %v3189_v43, %v3188_v29 }
 0x1a9   : > { %v1697_v56 = vadd.f32 %v4707_v13, %v1392_v19 }
 0x1aa   : > { %v4817_v14 = vadd.f32 %v3190_v16, %v4741_v0 }
 0x1ab   : > { %v3387_v8 = vpop.f32.mrb[76].mxu0 }
 0x1ac   : > { %v1413_v26 = vadd.f32 %v3387_v8, %v4693_v11  ;;  %v3191_v36 = vpop.f32.mrb[76].mxu1  ;;  %v1404_v61 = vpop.f32.mrb[77].mxu0 }
 0x1ad   : > { %v1405_v35 = vadd.f32 %v4681_v49, %v1404_v61  ;;  %v3192_v25 = vpop.f32.mrb[77].mxu1  ;;  %v3388_v62 = vpop.f32.mrb[78].mxu0 }
 0x1ae   : > { %v4822_v2 = vadd.f32 %v4719_v59, %v1413_v26  ;;  %v3193_v63 = vadd.f32 %v3192_v25, %v3191_v36  ;;  %v1416_v27 = vadd.f32 %v3388_v62, %v4697_v18  ;;  %v3194_v31 = vpop.f32.mrb[78].mxu1  ;;  %v1407_v13 = vpop.f32.mrb[79].mxu0 }
 0x1af   : > { %v1710_v0 = vadd.f32 %v4715_v24, %v1405_v35  ;;  %v1408_v48 = vadd.f32 %v4685_v44, %v1407_v13  ;;  %v3195_v37 = vpop.f32.mrb[79].mxu1 }
 0x1b0   : > { %v4828_v11 = vadd.f32 %v3193_v63, %v4747_v51  ;;  %v4831_v49 = vadd.f32 %v4721_v1, %v1416_v27  ;;  %v3196_v21 = vadd.f32 %v3195_v37, %v3194_v31 }
 0x1b1   : > { %v1713_v59 = vadd.f32 %v4717_v22, %v1408_v48 }
 0x1b2   : > { %v4835_v9 = vadd.f32 %v3196_v21, %v4749_v53 }
 0x1b3   : > { %v3237_v18 = vpop.f32.mrb[80].mxu0 }
 0x1b4   : > { %v3238_v5 = vpop.f32.mrb[81].mxu0 }
 0x1b5   : > { %v3239_v3 = vadd.f32 %v3238_v5, %v3237_v18  ;;  %v3240_v7 = vpop.f32.mrb[82].mxu0 }
 0x1b6   : > { %v3241_v24 = vpop.f32.mrb[83].mxu0 }
 0x1b7   : > { %v3242_v20 = vadd.f32 %v3241_v24, %v3240_v7  ;;  %v4838_v44 = vadd.f32 %v3239_v3, %v4762_v58 }
 0x1b9   : > { %v4841_v51 = vadd.f32 %v3242_v20, %v4772_v46 }
 0x1bb   : > { %v3243_v1 = vpop.f32.mrb[84].mxu0 }
 0x1bc   : > { %v3244_v38 = vpop.f32.mrb[85].mxu0 }
 0x1bd   : > { %v3245_v17 = vadd.f32 %v3244_v38, %v3243_v1  ;;  %v3246_v42 = vpop.f32.mrb[86].mxu0 }
 0x1be   : > { %v3247_v22 = vpop.f32.mrb[87].mxu0 }
 0x1bf   : > { %v3248_v29 = vadd.f32 %v3247_v22, %v3246_v42  ;;  %v3519_v53 = vadd.f32 %v3245_v17, %v4758_v30 }
 0x1c1   : > { %v3527_v33 = vadd.f32 %v3248_v29, %v4769_v32 }
 0x1c3   : > { %v3249_v19 = vpop.f32.mrb[88].mxu0 }
 0x1c4   : > { %v3250_v43 = vpop.f32.mrb[89].mxu0 }
 0x1c5   : > { %v3251_v16 = vadd.f32 %v3250_v43, %v3249_v19  ;;  %v3252_v8 = vpop.f32.mrb[90].mxu0 }
 0x1c6   : > { %v3253_v26 = vpop.f32.mrb[91].mxu0 }
 0x1c7   : > { %v3254_v58 = vadd.f32 %v3253_v26, %v3252_v8  ;;  %v4846_v36 = vadd.f32 %v3251_v16, %v4784_v34 }
 0x1c9   : > { %v4849_v46 = vadd.f32 %v3254_v58, %v4794_v55 }
 0x1cb   : > { %v3255_v61 = vpop.f32.mrb[92].mxu0 }
 0x1cc   : > { %v3256_v35 = vpop.f32.mrb[93].mxu0 }
 0x1cd   : > { %v3257_v25 = vadd.f32 %v3256_v35, %v3255_v61  ;;  %v3258_v62 = vpop.f32.mrb[94].mxu0 }
 0x1ce   : > { %v3259_v63 = vpop.f32.mrb[95].mxu0 }
 0x1cf   : > { %v3260_v30 = vadd.f32 %v3259_v63, %v3258_v62  ;;  %v4852_v32 = vadd.f32 %v3257_v25, %v4780_v41 }
 0x1d1   : > { %v4855_v27 = vadd.f32 %v3260_v30, %v4791_v12 }
 0x1d3   : > { %v3261_v31 = vpop.f32.mrb[96].mxu0 }
 0x1d4   : > { %v3262_v13 = vpop.f32.mrb[97].mxu0 }
 0x1d5   : > { %v3263_v48 = vadd.f32 %v3262_v13, %v3261_v31  ;;  %v3264_v34 = vpop.f32.mrb[98].mxu0 }
 0x1d6   : > { %v3265_v37 = vpop.f32.mrb[99].mxu0 }
 0x1d7   : > { %v3266_v21 = vadd.f32 %v3265_v37, %v3264_v34  ;;  %v4858_v55 = vadd.f32 %v3263_v48, %v4806_v47 }
 0x1d9   : > { %v4860_v18 = vadd.f32 %v3266_v21, %v1697_v56 }
 0x1db   : > { %v3267_v5 = vpop.f32.mrb[100].mxu0 }
 0x1dc   : > { %v3268_v3 = vpop.f32.mrb[101].mxu0 }
 0x1dd   : > { %v3269_v7 = vadd.f32 %v3268_v3, %v3267_v5  ;;  %v3270_v24 = vpop.f32.mrb[102].mxu0 }
 0x1de   : > { %v3271_v41 = vpop.f32.mrb[103].mxu0 }
 0x1df   : > { %v3272_v20 = vadd.f32 %v3271_v41, %v3270_v24  ;;  %v4863_v12 = vadd.f32 %v3269_v7, %v4802_v45 }
 0x1e1   : > { %v4866_v1 = vadd.f32 %v3272_v20, %v4813_v4 }
 0x1e3   : > { %v3273_v38 = vpop.f32.mrb[104].mxu0 }
 0x1e4   : > { %v3274_v17 = vpop.f32.mrb[105].mxu0 }
 0x1e5   : > { %v3275_v42 = vadd.f32 %v3274_v17, %v3273_v38  ;;  %v3276_v22 = vpop.f32.mrb[106].mxu0 }
 0x1e6   : > { %v3277_v47 = vpop.f32.mrb[107].mxu0 }
 0x1e7   : > { %v3278_v29 = vadd.f32 %v3277_v47, %v3276_v22  ;;  %v4868_v56 = vadd.f32 %v3275_v42, %v1710_v0  ;;  %v4881_v0 = vld [vmem:[%s5020_s4] ss:$0 sm:$0xff] }
 0x1e9   : > { %v4870_v19 = vadd.f32 %v3278_v29, %v1713_v59 }
 0x1eb   : > { %v3279_v43 = vpop.f32.mrb[108].mxu0 }
 0x1ec   : > { %v3280_v16 = vpop.f32.mrb[109].mxu0 }
 0x1ed   : > { %v3281_v8 = vadd.f32 %v3280_v16, %v3279_v43  ;;  %v3282_v26 = vpop.f32.mrb[110].mxu0 }
 0x1ee   : > { %v3283_v45 = vpop.f32.mrb[111].mxu0 }
 0x1ef   : > { %v3284_v58 = vadd.f32 %v3283_v45, %v3282_v26  ;;  %v4873_v4 = vadd.f32 %v3281_v8, %v4822_v2 }
 0x1f1   : > { %v4876_v61 = vadd.f32 %v3284_v58, %v4831_v49 }
 0x1f3   : > { %v3285_v35 = vpop.f32.mrb[112].mxu0 }
 0x1f4   : > { %v3471_v25 = vpop.f32.mrb[80].mxu1  ;;  %v3286_v59 = vpop.f32.mrb[113].mxu0 }
 0x1f5   : > { %v3520_v62 = vadd.f32 %v3519_v53, %v3471_v25  ;;  %v3287_v63 = vadd.f32 %v3286_v59, %v3285_v35  ;;  %v2337_v30 = vpop.f32.mrb[81].mxu1  ;;  %v3288_v31 = vpop.f32.mrb[114].mxu0 }
 0x1f6   : > { %v3524_v2 = vadd.f32 %v4838_v44, %v2337_v30  ;;  %v3472_v49 = vpop.f32.mrb[82].mxu1  ;;  %v3289_v13 = vpop.f32.mrb[115].mxu0 }
 0x1f7   : > { %v2505_v48 = vadd.f32 %v3520_v62, %v4881_v0  ;;  %v3528_v53 = vadd.f32 %v3527_v33, %v3472_v49  ;;  %v3290_v34 = vadd.f32 %v3289_v13, %v3288_v31  ;;  %v2340_v37 = vpop.f32.mrb[83].mxu1  ;;  %v4893_v21 = vadd.f32 %v4727_v28, %v3287_v63 }
 0x1f8   : > { %v2503_v5 = vadd.f32 %v3524_v2, %v4881_v0  ;;  %v3532_v3 = vadd.f32 %v4841_v51, %v2340_v37 }
 0x1f9   : > { %2537 = vst [vmem:[%s4888_s7 + $0x10] sm:$0xff] %v2505_v48  ;;  %v2506_v7 = vadd.f32 %v3528_v53, %v4881_v0  ;;  %v4900_v44 = vadd.f32 %v4729_v60, %v3290_v34  ;;  %v2606_v42 = vmul.f32 %v2505_v48, %v2505_v48 }
 0x1fa   : > { %2535 = vst [vmem:[%s4888_s7] sm:$0xff] %v2503_v5  ;;  %v2504_v24 = vadd.f32 %v3532_v3, %v4881_v0  ;;  %v2604_v41 = vmul.f32 %v2503_v5, %v2503_v5 }
 0x1fb   : > { %2538 = vst [vmem:[%s4888_s7 + $0x18] sm:$0xff] %v2506_v7  ;;  %v3291_v33 = vpop.f32.mrb[116].mxu0  ;;  %v2607_v60 = vmul.f32 %v2506_v7, %v2506_v7 }
 0x1fc   : > { %2536 = vst [vmem:[%s4888_s7 + $0x8] sm:$0xff] %v2504_v24  ;;  %v2567_v20 = vadd.f32 %v2504_v24, %v2503_v5  ;;  %v2605_v28 = vmul.f32 %v2504_v24, %v2504_v24  ;;  %v3475_v38 = vpop.f32.mrb[84].mxu1  ;;  %v3292_v17 = vpop.f32.mrb[117].mxu0 }
 0x1fd   : > { %v3536_v51 = vadd.f32 %v4852_v32, %v3475_v38  ;;  %v3293_v22 = vadd.f32 %v3292_v17, %v3291_v33  ;;  %v2353_v47 = vpop.f32.mrb[85].mxu1  ;;  %v3294_v29 = vpop.f32.mrb[118].mxu0 }
 0x1fe   : > { %v2568_v43 = vadd.f32 %v2567_v20, %v2505_v48  ;;  %v2636_v16 = vadd.f32 %v2605_v28, %v2604_v41  ;;  %v3540_v8 = vadd.f32 %v4846_v36, %v2353_v47  ;;  %v3476_v26 = vpop.f32.mrb[86].mxu1  ;;  %v3295_v45 = vpop.f32.mrb[119].mxu0 }
 0x1ff   : > { %v2509_v58 = vadd.f32 %v3536_v51, %v4881_v0  ;;  %v3544_v35 = vadd.f32 %v4855_v27, %v3476_v26  ;;  %v3296_v25 = vadd.f32 %v3295_v45, %v3294_v29  ;;  %v2356_v59 = vpop.f32.mrb[87].mxu1  ;;  %v4911_v32 = vadd.f32 %v4735_v6, %v3293_v22  ;;  %v5029_v26 = vld [vmem:[#allocation2_spill] sm:$0xff] }
 0x200   : > { %v2637_v62 = vadd.f32 %v2636_v16, %v2606_v42  ;;  %v2507_v63 = vadd.f32 %v3540_v8, %v4881_v0  ;;  %v2569_v30 = vadd.f32 %v2568_v43, %v2506_v7  ;;  %v3548_v31 = vadd.f32 %v4849_v46, %v2356_v59 }
 0x201   : > { %2541 = vst [vmem:[%s4888_s7 + $0x30] sm:$0xff] %v2509_v58  ;;  %v2510_v36 = vadd.f32 %v3544_v35, %v4881_v0  ;;  %v4918_v2 = vadd.f32 %v4737_v39, %v3296_v25  ;;  %v2610_v3 = vmul.f32 %v2509_v58, %v2509_v58 }
 0x202   : > { %2539 = vst [vmem:[%s4888_s7 + $0x20] sm:$0xff] %v2507_v63  ;;  %v2570_v27 = vadd.f32 %v2569_v30, %v2507_v63  ;;  %v2608_v49 = vmul.f32 %v2507_v63, %v2507_v63  ;;  %v2638_v13 = vadd.f32 %v2637_v62, %v2607_v60  ;;  %v2508_v6 = vadd.f32 %v3548_v31, %v4881_v0 }
 0x203   : > { %2542 = vst [vmem:[%s4888_s7 + $0x38] sm:$0xff] %v2510_v36  ;;  %v3297_v48 = vpop.f32.mrb[120].mxu0  ;;  %v2611_v41 = vmul.f32 %v2510_v36, %v2510_v36 }
 0x204   : > { %v2639_v53 = vadd.f32 %v2638_v13, %v2608_v49  ;;  %2540 = vst [vmem:[%s4888_s7 + $0x28] sm:$0xff] %v2508_v6  ;;  %v2571_v34 = vadd.f32 %v2570_v27, %v2508_v6  ;;  %v2609_v37 = vmul.f32 %v2508_v6, %v2508_v6  ;;  %v3479_v5 = vpop.f32.mrb[88].mxu1  ;;  %v3298_v46 = vpop.f32.mrb[121].mxu0 }
 0x205   : > { %v3552_v7 = vadd.f32 %v4863_v12, %v3479_v5  ;;  %v3299_v24 = vadd.f32 %v3298_v46, %v3297_v48  ;;  %v2369_v39 = vpop.f32.mrb[89].mxu1  ;;  %v3300_v33 = vpop.f32.mrb[122].mxu0 }
 0x206   : > { %v2572_v20 = vadd.f32 %v2571_v34, %v2509_v58  ;;  %v2640_v28 = vadd.f32 %v2639_v53, %v2609_v37  ;;  %v3556_v38 = vadd.f32 %v4858_v55, %v2369_v39  ;;  %v3480_v17 = vpop.f32.mrb[90].mxu1  ;;  %v3301_v42 = vpop.f32.mrb[123].mxu0 }
 0x207   : > { %v2513_v51 = vadd.f32 %v3552_v7, %v4881_v0  ;;  %v3560_v22 = vadd.f32 %v4866_v1, %v3480_v17  ;;  %v3302_v47 = vadd.f32 %v3301_v42, %v3300_v33  ;;  %v2372_v29 = vpop.f32.mrb[91].mxu1  ;;  %v4929_v12 = vadd.f32 %v4743_v15, %v3299_v24 }
 0x208   : > { %v2641_v60 = vadd.f32 %v2640_v28, %v2610_v3  ;;  %v2511_v43 = vadd.f32 %v3556_v38, %v4881_v0  ;;  %v2573_v16 = vadd.f32 %v2572_v20, %v2510_v36  ;;  %v3564_v8 = vadd.f32 %v4860_v18, %v2372_v29 }
 0x209   : > { %2545 = vst [vmem:[%s4888_s7 + $0x50] sm:$0xff] %v2513_v51  ;;  %v2514_v55 = vadd.f32 %v3560_v22, %v4881_v0  ;;  %v4936_v45 = vadd.f32 %v5029_v26, %v3302_v47  ;;  %v2614_v31 = vmul.f32 %v2513_v51, %v2513_v51 }
 0x20a   : > { %2543 = vst [vmem:[%s4888_s7 + $0x40] sm:$0xff] %v2511_v43  ;;  %v2574_v1 = vadd.f32 %v2573_v16, %v2511_v43  ;;  %v2612_v58 = vmul.f32 %v2511_v43, %v2511_v43  ;;  %v2642_v35 = vadd.f32 %v2641_v60, %v2611_v41  ;;  %v2512_v15 = vadd.f32 %v3564_v8, %v4881_v0 }
 0x20b   : > { %2546 = vst [vmem:[%s4888_s7 + $0x58] sm:$0xff] %v2514_v55  ;;  %v3303_v25 = vpop.f32.mrb[124].mxu0  ;;  %v2615_v6 = vmul.f32 %v2514_v55, %v2514_v55 }
 0x20c   : > { %v2643_v59 = vadd.f32 %v2642_v35, %v2612_v58  ;;  %2544 = vst [vmem:[%s4888_s7 + $0x48] sm:$0xff] %v2512_v15  ;;  %v2575_v62 = vadd.f32 %v2574_v1, %v2512_v15  ;;  %v2613_v63 = vmul.f32 %v2512_v15, %v2512_v15  ;;  %v3483_v30 = vpop.f32.mrb[92].mxu1  ;;  %v3304_v18 = vpop.f32.mrb[125].mxu0 }
 0x20d   : > { %v3568_v36 = vadd.f32 %v4873_v4, %v3483_v30  ;;  %v3305_v27 = vadd.f32 %v3304_v18, %v3303_v25  ;;  %v2385_v49 = vpop.f32.mrb[93].mxu1  ;;  %v3306_v13 = vpop.f32.mrb[126].mxu0 }
 0x20e   : > { %v2576_v48 = vadd.f32 %v2575_v62, %v2513_v51  ;;  %v2644_v53 = vadd.f32 %v2643_v59, %v2613_v63  ;;  %v3572_v34 = vadd.f32 %v4868_v56, %v2385_v49  ;;  %v3484_v37 = vpop.f32.mrb[94].mxu1  ;;  %v3307_v5 = vpop.f32.mrb[127].mxu0 }
 0x20f   : > { %v2517_v46 = vadd.f32 %v3568_v36, %v4881_v0  ;;  %v3576_v3 = vadd.f32 %v4876_v61, %v3484_v37  ;;  %v3308_v7 = vadd.f32 %v3307_v5, %v3306_v13  ;;  %v2388_v24 = vpop.f32.mrb[95].mxu1  ;;  %v3594_v4 = vadd.f32 %v4751_v57, %v3305_v27 }
 0x210   : > { %v2645_v39 = vadd.f32 %v2644_v53, %v2614_v31  ;;  %v2515_v33 = vadd.f32 %v3572_v34, %v4881_v0  ;;  %v2577_v41 = vadd.f32 %v2576_v48, %v2514_v55  ;;  %v3580_v20 = vadd.f32 %v4870_v19, %v2388_v24 }
 0x211   : > { %2549 = vst [vmem:[%s4888_s7 + $0x70] sm:$0xff] %v2517_v46  ;;  %v2518_v56 = vadd.f32 %v3576_v3, %v4881_v0  ;;  %v3600_v28 = vadd.f32 %v4753_v40, %v3308_v7  ;;  %v2618_v19 = vmul.f32 %v2517_v46, %v2517_v46 }
 0x212   : > { %2547 = vst [vmem:[%s4888_s7 + $0x60] sm:$0xff] %v2515_v33  ;;  %v2578_v38 = vadd.f32 %v2577_v41, %v2515_v33  ;;  %v2616_v61 = vmul.f32 %v2515_v33, %v2515_v33  ;;  %v2646_v17 = vadd.f32 %v2645_v39, %v2615_v6  ;;  %v2516_v42 = vadd.f32 %v3580_v20, %v4881_v0 }
 0x213   : > { %2550 = vst [vmem:[%s4888_s7 + $0x78] sm:$0xff] %v2518_v56  ;;  %v3309_v57 = vpop.f32.mrb[128].mxu0  ;;  %v2619_v55 = vmul.f32 %v2518_v56, %v2518_v56 }
 0x214   : > { %v2647_v51 = vadd.f32 %v2646_v17, %v2616_v61  ;;  %2548 = vst [vmem:[%s4888_s7 + $0x68] sm:$0xff] %v2516_v42  ;;  %v2579_v22 = vadd.f32 %v2578_v38, %v2516_v42  ;;  %v2617_v47 = vmul.f32 %v2516_v42, %v2516_v42  ;;  %v3487_v29 = vpop.f32.mrb[0].mxu1  ;;  %v3310_v60 = vpop.f32.mrb[129].mxu0 }
 0x215   : > { %v3583_v43 = vadd.f32 %v4911_v32, %v3487_v29  ;;  %v3311_v16 = vadd.f32 %v3310_v60, %v3309_v57  ;;  %v2401_v8 = vpop.f32.mrb[1].mxu1  ;;  %v3312_v40 = vpop.f32.mrb[130].mxu0 }
 0x216   : > { %v2580_v26 = vadd.f32 %v2579_v22, %v2517_v46  ;;  %v2648_v1 = vadd.f32 %v2647_v51, %v2617_v47  ;;  %v3586_v58 = vadd.f32 %v4893_v21, %v2401_v8  ;;  %v3488_v35 = vpop.f32.mrb[2].mxu1  ;;  %v3313_v15 = vpop.f32.mrb[131].mxu0 }
 0x217   : > { %v2521_v25 = vadd.f32 %v3583_v43, %v4881_v0  ;;  %v3589_v59 = vadd.f32 %v4918_v2, %v3488_v35  ;;  %v3314_v62 = vadd.f32 %v3313_v15, %v3312_v40  ;;  %v2404_v63 = vpop.f32.mrb[3].mxu1  ;;  %v4961_v32 = vadd.f32 %v4766_v10, %v3311_v16 }
 0x218   : > { %v2649_v30 = vadd.f32 %v2648_v1, %v2618_v19  ;;  %v2519_v18 = vadd.f32 %v3586_v58, %v4881_v0  ;;  %v2581_v31 = vadd.f32 %v2580_v26, %v2518_v56  ;;  %v3592_v36 = vadd.f32 %v4900_v44, %v2404_v63 }
 0x219   : > { %2553 = vst [vmem:[%s4888_s7 + $0x90] sm:$0xff] %v2521_v25  ;;  %v2522_v21 = vadd.f32 %v3589_v59, %v4881_v0  ;;  %v4968_v27 = vadd.f32 %v4775_v23, %v3314_v62  ;;  %v2622_v5 = vmul.f32 %v2521_v25, %v2521_v25 }
 0x21a   : > { %2551 = vst [vmem:[%s4888_s7 + $0x80] sm:$0xff] %v2519_v18  ;;  %v2582_v2 = vadd.f32 %v2581_v31, %v2519_v18  ;;  %v2620_v49 = vmul.f32 %v2519_v18, %v2519_v18  ;;  %v2650_v13 = vadd.f32 %v2649_v30, %v2619_v55  ;;  %v2520_v10 = vadd.f32 %v3592_v36, %v4881_v0 }
 0x21b   : > { %2554 = vst [vmem:[%s4888_s7 + $0x98] sm:$0xff] %v2522_v21  ;;  %v3315_v6 = vpop.f32.mrb[132].mxu0  ;;  %v2623_v24 = vmul.f32 %v2522_v21, %v2522_v21 }
 0x21c   : > { %v2651_v48 = vadd.f32 %v2650_v13, %v2620_v49  ;;  %2552 = vst [vmem:[%s4888_s7 + $0x88] sm:$0xff] %v2520_v10  ;;  %v2583_v53 = vadd.f32 %v2582_v2, %v2520_v10  ;;  %v2621_v34 = vmul.f32 %v2520_v10, %v2520_v10  ;;  %v3491_v37 = vpop.f32.mrb[4].mxu1  ;;  %v3316_v44 = vpop.f32.mrb[133].mxu0 }
 0x21d   : > { %v3595_v46 = vadd.f32 %v3594_v4, %v3491_v37  ;;  %v3317_v3 = vadd.f32 %v3316_v44, %v3315_v6  ;;  %v2417_v7 = vpop.f32.mrb[5].mxu1  ;;  %v3318_v23 = vpop.f32.mrb[134].mxu0 }
 0x21e   : > { %v2584_v39 = vadd.f32 %v2583_v53, %v2521_v25  ;;  %v2652_v33 = vadd.f32 %v2651_v48, %v2621_v34  ;;  %v3598_v41 = vadd.f32 %v4929_v12, %v2417_v7  ;;  %v3492_v20 = vpop.f32.mrb[6].mxu1  ;;  %v3319_v56 = vpop.f32.mrb[135].mxu0 }
 0x21f   : > { %v2525_v38 = vadd.f32 %v3595_v46, %v4881_v0  ;;  %v3601_v61 = vadd.f32 %v3600_v28, %v3492_v20  ;;  %v3320_v17 = vadd.f32 %v3319_v56, %v3318_v23  ;;  %v2420_v42 = vpop.f32.mrb[7].mxu1  ;;  %v3606_v4 = vadd.f32 %v4788_v50, %v3317_v3 }
 0x220   : > { %v2653_v57 = vadd.f32 %v2652_v33, %v2622_v5  ;;  %v2523_v51 = vadd.f32 %v3598_v41, %v4881_v0  ;;  %v2585_v22 = vadd.f32 %v2584_v39, %v2522_v21  ;;  %v3604_v47 = vadd.f32 %v4936_v45, %v2420_v42 }
 0x221   : > { %2557 = vst [vmem:[%s4888_s7 + $0xb0] sm:$0xff] %v2525_v38  ;;  %v2526_v12 = vadd.f32 %v3601_v61, %v4881_v0  ;;  %v3612_v29 = vadd.f32 %v4797_v54, %v3320_v17  ;;  %v2626_v45 = vmul.f32 %v2525_v38, %v2525_v38 }
 0x222   : > { %2555 = vst [vmem:[%s4888_s7 + $0xa0] sm:$0xff] %v2523_v51  ;;  %v2586_v60 = vadd.f32 %v2585_v22, %v2523_v51  ;;  %v2624_v28 = vmul.f32 %v2523_v51, %v2523_v51  ;;  %v2654_v19 = vadd.f32 %v2653_v57, %v2623_v24  ;;  %v2524_v43 = vadd.f32 %v3604_v47, %v4881_v0 }
 0x223   : > { %2558 = vst [vmem:[%s4888_s7 + $0xb8] sm:$0xff] %v2526_v12  ;;  %v3321_v50 = vpop.f32.mrb[136].mxu0  ;;  %v2627_v54 = vmul.f32 %v2526_v12, %v2526_v12 }
 0x224   : > { %v2655_v16 = vadd.f32 %v2654_v19, %v2624_v28  ;;  %2556 = vst [vmem:[%s4888_s7 + $0xa8] sm:$0xff] %v2524_v43  ;;  %v2587_v8 = vadd.f32 %v2586_v60, %v2524_v43  ;;  %v2625_v40 = vmul.f32 %v2524_v43, %v2524_v43  ;;  %v3495_v55 = vpop.f32.mrb[8].mxu1  ;;  %v3322_v26 = vpop.f32.mrb[137].mxu0 }
 0x225   : > { %v3607_v1 = vadd.f32 %v3606_v4, %v3495_v55  ;;  %v3323_v58 = vadd.f32 %v3322_v26, %v3321_v50  ;;  %v2433_v35 = vpop.f32.mrb[9].mxu1  ;;  %v3324_v15 = vpop.f32.mrb[138].mxu0 }
 0x226   : > { %v2588_v25 = vadd.f32 %v2587_v8, %v2525_v38  ;;  %v2656_v59 = vadd.f32 %v2655_v16, %v2625_v40  ;;  %v3610_v62 = vadd.f32 %v4961_v32, %v2433_v35  ;;  %v3496_v63 = vpop.f32.mrb[10].mxu1  ;;  %v3325_v30 = vpop.f32.mrb[139].mxu0 }
 0x227   : > { %v2529_v18 = vadd.f32 %v3607_v1, %v4881_v0  ;;  %v3613_v31 = vadd.f32 %v3612_v29, %v3496_v63  ;;  %v3326_v36 = vadd.f32 %v3325_v30, %v3324_v15  ;;  %v2436_v21 = vpop.f32.mrb[11].mxu1  ;;  %v3621_v2 = vadd.f32 %v4810_v52, %v3323_v58 }
 0x228   : > { %v2657_v49 = vadd.f32 %v2656_v59, %v2626_v45  ;;  %v2527_v13 = vadd.f32 %v3610_v62, %v4881_v0  ;;  %v2589_v10 = vadd.f32 %v2588_v25, %v2526_v12  ;;  %v3616_v6 = vadd.f32 %v4968_v27, %v2436_v21 }
 0x229   : > { %2561 = vst [vmem:[%s4888_s7 + $0xd0] sm:$0xff] %v2529_v18  ;;  %v2530_v32 = vadd.f32 %v3613_v31, %v4881_v0  ;;  %v3627_v48 = vadd.f32 %v4817_v14, %v3326_v36  ;;  %v2630_v33 = vmul.f32 %v2529_v18, %v2529_v18 }
 0x22a   : > { %2559 = vst [vmem:[%s4888_s7 + $0xc0] sm:$0xff] %v2527_v13  ;;  %v2590_v53 = vadd.f32 %v2589_v10, %v2527_v13  ;;  %v2628_v34 = vmul.f32 %v2527_v13, %v2527_v13  ;;  %v2658_v37 = vadd.f32 %v2657_v49, %v2627_v54  ;;  %v2528_v44 = vadd.f32 %v3616_v6, %v4881_v0 }
 0x22b   : > { %2562 = vst [vmem:[%s4888_s7 + $0xd8] sm:$0xff] %v2530_v32  ;;  %v3327_v52 = vpop.f32.mrb[140].mxu0  ;;  %v2631_v61 = vmul.f32 %v2530_v32, %v2530_v32 }
 0x22c   : > { %v2659_v5 = vadd.f32 %v2658_v37, %v2628_v34  ;;  %2560 = vst [vmem:[%s4888_s7 + $0xc8] sm:$0xff] %v2528_v44  ;;  %v2591_v46 = vadd.f32 %v2590_v53, %v2528_v44  ;;  %v2629_v3 = vmul.f32 %v2528_v44, %v2528_v44  ;;  %v3499_v7 = vpop.f32.mrb[12].mxu1  ;;  %v3328_v23 = vpop.f32.mrb[141].mxu0 }
 0x22d   : > { %v3329_v27 = vadd.f32 %v3328_v23, %v3327_v52  ;;  %v2449_v24 = vpop.f32.mrb[13].mxu1  ;;  %v3330_v39 = vpop.f32.mrb[142].mxu0 }
 0x22e   : > { %v2592_v14 = vadd.f32 %v2591_v46, %v2529_v18  ;;  %v2660_v41 = vadd.f32 %v2659_v5, %v2629_v3  ;;  %v3622_v20 = vadd.f32 %v3621_v2, %v2449_v24  ;;  %v3500_v56 = vpop.f32.mrb[14].mxu1  ;;  %v3331_v38 = vpop.f32.mrb[143].mxu0 }
 0x22f   : > { %v3618_v17 = vadd.f32 %v4828_v11, %v3329_v27  ;;  %v3332_v42 = vadd.f32 %v3331_v38, %v3330_v39  ;;  %v2452_v4 = vpop.f32.mrb[15].mxu1 }
 0x230   : > { %v2661_v57 = vadd.f32 %v2660_v41, %v2630_v33  ;;  %v2531_v51 = vadd.f32 %v3622_v20, %v4881_v0  ;;  %v2593_v22 = vadd.f32 %v2592_v14, %v2530_v32  ;;  %v3628_v47 = vadd.f32 %v3627_v48, %v2452_v4 }
 0x231   : > { %v3619_v12 = vadd.f32 %v3618_v17, %v3499_v7  ;;  %v3624_v29 = vadd.f32 %v4835_v9, %v3332_v42 }
 0x232   : > { %2563 = vst [vmem:[%s4888_s7 + $0xe0] sm:$0xff] %v2531_v51  ;;  %v2594_v60 = vadd.f32 %v2593_v22, %v2531_v51  ;;  %v2632_v28 = vmul.f32 %v2531_v51, %v2531_v51  ;;  %v2662_v19 = vadd.f32 %v2661_v57, %v2631_v61  ;;  %v2532_v43 = vadd.f32 %v3628_v47, %v4881_v0 }
 0x233   : > { %v2533_v11 = vadd.f32 %v3619_v12, %v4881_v0  ;;  %v3625_v50 = vadd.f32 %v3624_v29, %v3500_v56 }
 0x234   : > { %v2663_v16 = vadd.f32 %v2662_v19, %v2632_v28  ;;  %2564 = vst [vmem:[%s4888_s7 + $0xe8] sm:$0xff] %v2532_v43  ;;  %v2595_v8 = vadd.f32 %v2594_v60, %v2532_v43  ;;  %v2633_v40 = vmul.f32 %v2532_v43, %v2532_v43 }
 0x235   : > { %2565 = vst [vmem:[%s4888_s7 + $0xf0] sm:$0xff] %v2533_v11  ;;  %v2634_v55 = vmul.f32 %v2533_v11, %v2533_v11  ;;  %v2534_v26 = vadd.f32 %v3625_v50, %v4881_v0 }
 0x236   : > { %v2596_v45 = vadd.f32 %v2595_v8, %v2533_v11  ;;  %v2664_v9 = vadd.f32 %v2663_v16, %v2633_v40 }
 0x237   : > { %2566 = vst [vmem:[%s4888_s7 + $0xf8] sm:$0xff] %v2534_v26  ;;  %v2635_v1 = vmul.f32 %v2534_v26, %v2534_v26 }
 0x238   : > { %v2597_v58 = vadd.f32 %v2596_v45, %v2534_v26  ;;  %v2665_v35 = vadd.f32 %v2664_v9, %v2634_v55 }
 0x23a   : > { %v2598_v15 = vrot.slane %v2597_v58, 4  ;;  %v2666_v54 = vadd.f32 %v2665_v35, %v2635_v1 }
 0x23c   : > { %v2599_v25 = vadd.f32 %v2598_v15, %v2597_v58  ;;  %v2667_v59 = vrot.slane %v2666_v54, 4 }
 0x23e   : > { %v2600_v62 = vrot.slane %v2599_v25, 2  ;;  %v2668_v63 = vadd.f32 %v2667_v59, %v2666_v54 }
 0x240   : > { %v2601_v30 = vadd.f32 %v2600_v62, %v2599_v25  ;;  %v2669_v18 = vrot.slane %v2668_v63, 2 }
 0x242   : > { %v2602_v31 = vrot.slane %v2601_v30, 1  ;;  %v2670_v36 = vadd.f32 %v2669_v18, %v2668_v63 }
 0x244   : > { %v2671_v21 = vrot.slane %v2670_v36, 1  ;;  %v2603_v0 = vadd.f32 %v2602_v31, %v2601_v30 }
 0x246   : > { %v2672_v2 = vadd.f32 %v2671_v21, %v2670_v36 }
 0x248   : > { %v2674_v49 = vsel %vm566_vm0, %v2603_v0, %v2672_v2 }
 0x249   : > { %v2676_v13 = vsel %vm2675_vm5, %v2674_v49, 0.0 }
 0x24a   : > { %2677 = vst [vmem:[%s262_s10] sm:$0xff] %v2676_v13 }
 0x24b PF: > { %s17_s21 = sadd.s32 1, %s3764_s21  }
 0x24c   : > { %p14_p4 = scmp.ge.s32.totalorder %s17_s21, 4  }
 0x24e   :  { %16 = sbr.rel (!%p14_p4) target bundleno = 1 (0x1), region = 84 }

// kernel: double_conv.3
= control target key start
LH: loop header
LB: loop body
LE: loop exit
PB: predicated region body
PF: predicated region fallthrough
CT: control target
= control target key end

     0   :  { %s3681_s15 = smov 0   ;;  %s4770_s0 = inlined_call_operand.vmem [shape: bf16[2,18,18,128], index: 0, kind: input, shape index: {}]   ;;  %s4771_s1 = inlined_call_operand.vmem [shape: bf16[3,384,128], index: 1, kind: input, shape index: {}]   ;;  %s4772_s2 = inlined_call_operand.vmem [shape: f32[1,128], index: 2, kind: input, shape index: {}]   ;;  %s4773_s3 = inlined_call_operand.vmem [shape: f32[2,16,16,128], index: 3, kind: output, shape index: {0}]   ;;  %s4774_s4 = inlined_call_operand.vmem [shape: f32[2,8,128], index: 4, kind: output, shape index: {1}]  }
   0x1 LB: > { %s2578_s16 = sadd.s32 4294967295, %s3654_s15   ;;  %p2582_p0 = scmp.ge.s32.totalorder %s3654_s15, 1  ;;  %s3654_s15 = sphi %s3681_s15, %s15_s15  }
   0x2   : > { %p165_p1 = scmp.lt.s32.totalorder %s3654_s15, 3 }
   0x4   : > { %p166_p2 = pnand %p2582_p0, %p165_p1 }
   0x6   : > { %169 = sbr.rel (%p166_p2) target bundleno = 570 (0x23a), region = 32 }
   0xd   : > { %v3532_v0 = vld [vmem:[%s4771_s1 + $0x100] sm:$0xff]   ;;  %v3535_v3 = vld [vmem:[%s4771_s1 + $0x108] sm:$0xff]   ;;  %v3538_v6 = vld [vmem:[%s4771_s1 + $0x110] sm:$0xff]   ;;  %p195_p3 = scmp.lt.s32.totalorder %s2578_s16, 1  ;;  %vm617_vm0 = vcmask 1046528   ;;  %vm2487_vm2 = vcmask 1040384  }
   0xe   : > { %v3695_v1 = vld [vmem:[%s4771_s1 + $0x140] sm:$0xff]   ;;  %2795 = vmatprep.subr.bf16.mxu0 %v3532_v0  ;;  %v3708_v4 = vld [vmem:[%s4771_s1 + $0x148] sm:$0xff]   ;;  %v3720_v7 = vld [vmem:[%s4771_s1 + $0x150] sm:$0xff]   ;;  %vm408_vm1 = vsmask.f32 7424  ;;  %vm2489_vm3 = vcmask 1041408  }
   0xf   : > { %v3534_v2 = vld [vmem:[%s4771_s1 + $0xc0] sm:$0xff]   ;;  %3347 = vmatprep.subr.bf16.mxu1 %v3695_v1  ;;  %v3537_v5 = vld [vmem:[%s4771_s1 + $0xc8] sm:$0xff]   ;;  %v3540_v8 = vld [vmem:[%s4771_s1 + $0xd0] sm:$0xff]   ;;  %s4778_s16 = smov (!%p195_p3, %s2578_s16), 1 }
  0x10   : > { %2796 = vmatpush3.bf16.msra.mxu0 %v3534_v2  ;;  %3355 = vmatpush3.bf16.msra.mxu1 %v3695_v1  ;;  %v3541_v9 = vld [vmem:[%s4771_s1 + $0x118] sm:$0xff]   ;;  %v3544_v12 = vld [vmem:[%s4771_s1 + $0x120] sm:$0xff]   ;;  %v3547_v15 = vld [vmem:[%s4771_s1 + $0x128] sm:$0xff]   ;;  %s3523_s27 = smul.u32 216, %s4778_s16  ;;  %s2586_s30 = sshll.u32 %s4778_s16, 3 }
  0x11   : > { %2797 = vmatprep.subr.bf16.mxu0 %v3535_v3  ;;  %3348 = vmatprep.subr.bf16.mxu1 %v3708_v4  ;;  %v3733_v10 = vld [vmem:[%s4771_s1 + $0x158] sm:$0xff]   ;;  %v3748_v13 = vld [vmem:[%s4771_s1 + $0x160] sm:$0xff]   ;;  %v3765_v16 = vld [vmem:[%s4771_s1 + $0x168] sm:$0xff]   ;;  %s208_s7 = scalar_lea.vmem %s4774_s4, %s2586_s30 }
  0x12   : > { %v3543_v11 = vld [vmem:[%s4771_s1 + $0xd8] sm:$0xff]   ;;  %v3546_v14 = vld [vmem:[%s4771_s1 + $0xe0] sm:$0xff]   ;;  %v3549_v17 = vld [vmem:[%s4771_s1 + $0xe8] sm:$0xff]   ;;  %s3787_s12 = scalar_lea.vmem %s4770_s0, %s3523_s27 }
  0x13   : > { %v3550_v18 = vld [vmem:[%s4771_s1 + $0x130] sm:$0xff]   ;;  %v3553_v21 = vld [vmem:[%s4771_s1 + $0x138] sm:$0xff]   ;;  %v3562_v35 = vld [vmem:[%s4771_s1 + $0x40] sm:$0xff]  }
  0x14   : > { %2798 = vmatpush3.bf16.msra.mxu0 %v3537_v5  ;;  %3356 = vmatpush3.bf16.msra.mxu1 %v3708_v4  ;;  %v3779_v19 = vld [vmem:[%s4771_s1 + $0x170] sm:$0xff]   ;;  %v3795_v22 = vld [vmem:[%s4771_s1 + $0x178] sm:$0xff]   ;;  %v3828_v37 = vld [vmem:[%s3787_s12 + $0x80] ss:$0 sps:$4 sm:$0x11]  }
  0x15   : > { %2799 = vmatprep.subr.bf16.mxu0 %v3538_v6  ;;  %3349 = vmatprep.subr.bf16.mxu1 %v3720_v7  ;;  %v3552_v20 = vld [vmem:[%s4771_s1 + $0xf0] sm:$0xff]   ;;  %v3555_v25 = vld [vmem:[%s4771_s1 + $0xf8] sm:$0xff]   ;;  %v3563_v39 = vld [vmem:[%s4771_s1] sm:$0xff]   ;;  %v649_v42 = vrot.slane %v3828_v37, 1 }
  0x16   : > { %v3800_v23 = vld [vmem:[%s3787_s12 + $0xc] sm:$0xff]   ;;  %v3803_v24 = vld [vmem:[%s3787_s12 + $0x14] ss:$0 sps:$4 sm:$0x11]   ;;  %v3819_v31 = vld [vmem:[%s3787_s12 + $0x78] sm:$0xff]  }
  0x17   : > { %v422_v26 = vshrl.u32 %v3800_v23, 16  ;;  %v424_v27 = vshll.u32 %v3800_v23, 16  ;;  %v429_v28 = vshll.u32 %v3803_v24, 16  ;;  %v3812_v29 = vld [vmem:[%s3787_s12 + $0x6c] sm:$0xff]   ;;  %v648_v38 = vrot.slane %v3819_v31, 1  ;;  %v3857_v47 = vld [vmem:[%s3787_s12 + $0x18] sm:$0xff]  }
  0x18   : > { %2800 = vmatpush3.bf16.msra.mxu0 %v3540_v8  ;;  %3357 = vmatpush3.bf16.msra.mxu1 %v3720_v7  ;;  %v3816_v30 = vld [vmem:[%s3787_s12 + $0x74] ss:$0 sps:$4 sm:$0x11]   ;;  %v645_v34 = vrot.slane %v3812_v29, 1  ;;  %v3564_v43 = vld [vmem:[%s4771_s1 + $0x48] sm:$0xff]   ;;  %v434_v49 = vshrl.u32 %v3857_v47, 16 }
  0x19   : > { %2801 = vmatprep.subr.bf16.mxu0 %v3541_v9  ;;  %3350 = vmatprep.subr.bf16.mxu1 %v3733_v10  ;;  %v426_v32 = vrot.slane %v424_v27, 1  ;;  %v431_v33 = vrot.slane %v429_v28, 1  ;;  %v646_v36 = vrot.slane %v3816_v30, 1  ;;  %v3849_v45 = vsel %vm617_vm0, %v648_v38, %v649_v42  ;;  %v3565_v46 = vld [vmem:[%s4771_s1 + $0x8] sm:$0xff]   ;;  %v3874_v54 = vld [vmem:[%s3787_s12 + $0x90] sm:$0xff]   ;;  %v3574_v2 = vld [vmem:[%s4771_s1 + $0x58] sm:$0xff]  }
  0x1a   : > { %v3860_v48 = vld [vmem:[%s3787_s12 + $0x20] ss:$0 sps:$4 sm:$0x11]   ;;  %v436_v50 = vshll.u32 %v3857_v47, 16  ;;  %v3867_v52 = vld [vmem:[%s3787_s12 + $0x84] sm:$0xff]   ;;  %v3572_v58 = vld [vmem:[%s4771_s1 + $0x50] sm:$0xff]  }
  0x1b   : > { %v427_v40 = vor.u32 %v426_v32, %v422_v26  ;;  %v3836_v41 = vsel %vm617_vm0, %v645_v34, %v646_v36  ;;  %v441_v51 = vshll.u32 %v3860_v48, 16  ;;  %v3871_v53 = vld [vmem:[%s3787_s12 + $0x8c] ss:$0 sps:$4 sm:$0x11]   ;;  %v651_v57 = vrot.slane %v3867_v52, 1  ;;  %v3573_v62 = vld [vmem:[%s4771_s1 + $0x10] sm:$0xff]  }
  0x1c   : > { %2802 = vmatpush3.bf16.msra.mxu0 %v3543_v11  ;;  %3358 = vmatpush3.bf16.msra.mxu1 %v3733_v10  ;;  %v438_v55 = vrot.slane %v436_v50, 1  ;;  %v652_v59 = vrot.slane %v3871_v53, 1  ;;  %v3882_v60 = vld [vmem:[%s3787_s12 + $0x98] ss:$0 sps:$4 sm:$0x11]   ;;  %v654_v61 = vrot.slane %v3874_v54, 1 }
  0x1d   : > { %2803 = vmatprep.subr.bf16.mxu0 %v3544_v12  ;;  %3351 = vmatprep.subr.bf16.mxu1 %v3748_v13  ;;  %v3843_v44 = vsel %vm408_vm1, %v427_v40, %v431_v33  ;;  %v443_v56 = vrot.slane %v441_v51, 1  ;;  %v3575_v5 = vld [vmem:[%s4771_s1 + $0x18] sm:$0xff]   ;;  %v3911_v6 = vld [vmem:[%s3787_s12 + $0x24] sm:$0xff]   ;;  %v3914_v8 = vld [vmem:[%s3787_s12 + $0x2c] ss:$0 sps:$4 sm:$0x11]  }
  0x1e   : > { %3235 = vmatprep.mubr.bf16.mxu1 %v3836_v41  ;;  %981 = vmatprep.mubr.bf16.mxu0 %v3843_v44  ;;  %v439_v63 = vor.u32 %v438_v55, %v434_v49  ;;  %v3891_v0 = vsel %vm617_vm0, %v651_v57, %v652_v59  ;;  %v446_v9 = vshrl.u32 %v3911_v6, 16  ;;  %v448_v11 = vshll.u32 %v3911_v6, 16  ;;  %v3936_v26 = vld [vmem:[%s3787_s12 + $0xb0] ss:$0 sps:$4 sm:$0x11]   ;;  %v3583_v28 = vld [vmem:[%s4771_s1 + $0x20] sm:$0xff]  }
  0x1f   : > { %v453_v12 = vshll.u32 %v3914_v8, 16  ;;  %v661_v34 = vrot.slane %v3936_v26, 1  ;;  %v3585_v38 = vld [vmem:[%s4771_s1 + $0x28] sm:$0xff]   ;;  %v3968_v40 = vld [vmem:[%s3787_s12 + $0x38] ss:$0 sps:$4 sm:$0x11]  }
  0x20   : > { %2804 = vmatpush3.bf16.msra.mxu0 %v3546_v14  ;;  %3359 = vmatpush3.bf16.msra.mxu1 %v3748_v13  ;;  %v3898_v3 = vsel %vm408_vm1, %v439_v63, %v443_v56  ;;  %v3921_v14 = vld [vmem:[%s3787_s12 + $0x9c] sm:$0xff]   ;;  %v3975_v49 = vld [vmem:[%s3787_s12 + $0xb4] sm:$0xff]   ;;  %v3990_v59 = vld [vmem:[%s3787_s12 + $0xc8] ss:$0 sps:$4 sm:$0x11]  }
  0x21   : > { %2805 = vmatprep.subr.bf16.mxu0 %v3547_v15  ;;  %3352 = vmatprep.subr.bf16.mxu1 %v3765_v16  ;;  %v3925_v15 = vld [vmem:[%s3787_s12 + $0xa4] ss:$0 sps:$4 sm:$0x11]   ;;  %v3979_v50 = vld [vmem:[%s3787_s12 + $0xbc] ss:$0 sps:$4 sm:$0x11]  }
  0x22   : > { %v3982_v51 = vld [vmem:[%s3787_s12 + $0xc0] sm:$0xff]   ;;  %v663_v57 = vrot.slane %v3975_v49, 1 }
  0x24   : > { %2806 = vmatpush3.bf16.msra.mxu0 %v3549_v17  ;;  %3360 = vmatpush3.bf16.msra.mxu1 %v3765_v16  ;;  %v3928_v17 = vld [vmem:[%s3787_s12 + $0xa8] sm:$0xff]  }
  0x25   : > { %2807 = vmatprep.subr.bf16.mxu0 %v3550_v18  ;;  %3353 = vmatprep.subr.bf16.mxu1 %v3779_v19  ;;  %v450_v18 = vrot.slane %v448_v11, 1  ;;  %v660_v27 = vrot.slane %v3928_v17, 1  ;;  %v3595_v11 = vld [vmem:[%s4771_s1 + $0x38] sm:$0xff]  }
  0x27   : > { %v451_v32 = vor.u32 %v450_v18, %v446_v9  ;;  %v4022_v18 = vld [vmem:[%s3787_s12 + $0x44] ss:$0 sps:$4 sm:$0x11]  }
  0x28   : > { %2808 = vmatpush3.bf16.msra.mxu0 %v3552_v20  ;;  %3361 = vmatpush3.bf16.msra.mxu1 %v3779_v19  ;;  %v455_v20 = vrot.slane %v453_v12, 1  ;;  %v4019_v12 = vld [vmem:[%s3787_s12 + $0x3c] sm:$0xff]  }
  0x29   : > { %2809 = vmatprep.subr.bf16.mxu0 %v3553_v21  ;;  %3354 = vmatprep.subr.bf16.mxu1 %v3795_v22  ;;  %v657_v21 = vrot.slane %v3921_v14, 1 }
  0x2a   : > { %v3952_v36 = vsel %vm408_vm1, %v451_v32, %v455_v20  ;;  %v470_v20 = vshrl.u32 %v4019_v12, 16 }
  0x2c   : > { %2810 = vmatpush3.bf16.msra.mxu0 %v3555_v25  ;;  %3362 = vmatpush3.bf16.msra.mxu1 %v3795_v22  ;;  %v658_v25 = vrot.slane %v3925_v15, 1 }
  0x2d   : > { %3203 = vmatprep.subr.bf16.mxu0 %v3695_v1  ;;  %2931 = vmatprep.subr.bf16.mxu1 %v3562_v35  ;;  %v3584_v35 = vld [vmem:[%s4771_s1 + $0x68] sm:$0xff]  }
  0x2e   : > { %v3945_v33 = vsel %vm617_vm0, %v657_v21, %v658_v25  ;;  %v472_v21 = vshll.u32 %v4019_v12, 16  ;;  %v4029_v25 = vld [vmem:[%s3787_s12] sm:$0xff]  }
  0x2f   : > { %982 = vmatmul.mubr.bf16.vlgmr.msra.gmra.mrb[0].mxu0 %v3800_v23  ;;  %3236 = vmatmul.mubr.bf16.vlgmr.msra.gmra.mrb[0].mxu1 %v3849_v45 }
  0x30   : > { %3204 = vmatpush3.bf16.msra.mxu0 %v3695_v1  ;;  %2932 = vmatpush3.bf16.msra.mxu1 %v3563_v39  ;;  %v655_v1 = vrot.slane %v3882_v60, 1  ;;  %v3965_v39 = vld [vmem:[%s3787_s12 + $0x30] sm:$0xff]   ;;  %v474_v32 = vrot.slane %v472_v21, 1 }
  0x31   : > { %2933 = vmatprep.subr.bf16.mxu1 %v3564_v43  ;;  %3205 = vmatprep.subr.bf16.mxu0 %v3708_v4  ;;  %v458_v42 = vshrl.u32 %v3965_v39, 16  ;;  %v460_v43 = vshll.u32 %v3965_v39, 16 }
  0x32   : > { %3239 = vmatprep.mubr.bf16.mxu1 %v3891_v0  ;;  %989 = vmatprep.mubr.bf16.mxu0 %v3898_v3 }
  0x33   : > { %v462_v55 = vrot.slane %v460_v43, 1  ;;  %v475_v43 = vor.u32 %v474_v32, %v470_v20  ;;  %v3605_v20 = vld [vmem:[%s4771_s1 + $0x88] sm:$0xff]  }
  0x34   : > { %2934 = vmatpush3.bf16.msra.mxu1 %v3565_v46  ;;  %3206 = vmatpush3.bf16.msra.mxu0 %v3708_v4  ;;  %v3903_v4 = vsel %vm617_vm0, %v654_v61, %v655_v1  ;;  %v465_v46 = vshll.u32 %v3968_v40, 16  ;;  %v752_v61 = vrot.slane %v3982_v51, 1 }
  0x35   : > { %2935 = vmatprep.subr.bf16.mxu1 %v3572_v58  ;;  %3207 = vmatprep.subr.bf16.mxu0 %v3720_v7  ;;  %v664_v58 = vrot.slane %v3979_v50, 1  ;;  %v463_v63 = vor.u32 %v462_v55, %v458_v42  ;;  %v4042_v42 = vld [vmem:[%s3787_s12 + $0x48] sm:$0xff]   ;;  %v4046_v55 = vld [vmem:[%s3787_s12 + $0x50] ss:$0 sps:$4 sm:$0x11]  }
  0x36   : > { %v467_v56 = vrot.slane %v465_v46, 1 }
  0x37   : > { %990 = vmatmul.mubr.bf16.gmra.mrb[4].mxu0 %v3857_v47  ;;  %3240 = vmatmul.mubr.bf16.gmra.mrb[4].mxu1 %v3903_v4  ;;  %v3999_v1 = vsel %vm617_vm0, %v663_v57, %v664_v58  ;;  %v482_v57 = vshrl.u32 %v4042_v42, 16  ;;  %v4051_v58 = vld [vmem:[%s3787_s12 + $0x54] sm:$0xff]  }
  0x38   : > { %2936 = vmatpush3.bf16.msra.mxu1 %v3573_v62  ;;  %3208 = vmatpush3.bf16.msra.mxu0 %v3720_v7  ;;  %v3582_v7 = vld [vmem:[%s4771_s1 + $0x60] sm:$0xff]   ;;  %v3593_v62 = vld [vmem:[%s4771_s1 + $0x30] sm:$0xff]   ;;  %v4006_v9 = vsel %vm408_vm1, %v463_v63, %v467_v56  ;;  %v489_v63 = vshll.u32 %v4046_v55, 16 }
  0x39   : > { %2937 = vmatprep.subr.bf16.mxu1 %v3574_v2  ;;  %3209 = vmatprep.subr.bf16.mxu0 %v3733_v10  ;;  %v753_v2 = vrot.slane %v3990_v59, 1 }
  0x3a   : > { %3243 = vmatprep.mubr.bf16.mxu1 %v3945_v33  ;;  %997 = vmatprep.mubr.bf16.mxu0 %v3952_v36 }
  0x3c   : > { %2938 = vmatpush3.bf16.msra.mxu1 %v3575_v5  ;;  %3210 = vmatpush3.bf16.msra.mxu0 %v3733_v10  ;;  %v3957_v10 = vsel %vm617_vm0, %v660_v27, %v661_v34  ;;  %v3594_v5 = vld [vmem:[%s4771_s1 + $0x78] sm:$0xff]   ;;  %v4033_v27 = vld [vmem:[%s3787_s12 + $0x8] ss:$0 sps:$4 sm:$0x11]   ;;  %v410_v34 = vshrl.u32 %v4029_v25, 16 }
  0x3d   : > { %2939 = vmatprep.subr.bf16.mxu1 %v3582_v7  ;;  %3211 = vmatprep.subr.bf16.mxu0 %v3748_v13  ;;  %v477_v7 = vshll.u32 %v4022_v18, 16 }
  0x3f   : > { %998 = vmatmul.mubr.bf16.gmra.mrb[8].mxu0 %v3911_v6  ;;  %3244 = vmatmul.mubr.bf16.gmra.mrb[8].mxu1 %v3957_v10 }
  0x40   : > { %2940 = vmatpush3.bf16.msra.mxu1 %v3583_v28  ;;  %3212 = vmatpush3.bf16.msra.mxu0 %v3748_v13  ;;  %v3592_v13 = vld [vmem:[%s4771_s1 + $0x70] sm:$0xff]   ;;  %v3600_v28 = vld [vmem:[%s4771_s1 + $0x80] sm:$0xff]  }
  0x41   : > { %2941 = vmatprep.subr.bf16.mxu1 %v3584_v35  ;;  %3213 = vmatprep.subr.bf16.mxu0 %v3765_v16  ;;  %v412_v35 = vshll.u32 %v4029_v25, 16 }
  0x42   : > { %3247 = vmatprep.mubr.bf16.mxu1 %v3999_v1  ;;  %1005 = vmatprep.mubr.bf16.mxu0 %v4006_v9 }
  0x43   : > { %v414_v46 = vrot.slane %v412_v35, 1  ;;  %v4070_v35 = vld [vmem:[%s3787_s12 + $0x60] sm:$0xff]  }
  0x44   : > { %2942 = vmatpush3.bf16.msra.mxu1 %v3585_v38  ;;  %3214 = vmatpush3.bf16.msra.mxu0 %v3765_v16  ;;  %v4011_v16 = vsel %vm617_vm0, %v752_v61, %v753_v2  ;;  %v417_v38 = vshll.u32 %v4033_v27, 16  ;;  %v4058_v2 = vld [vmem:[%s3787_s12 + $0x5c] ss:$0 sps:$4 sm:$0x11]  }
  0x45   : > { %2943 = vmatprep.subr.bf16.mxu1 %v3592_v13  ;;  %3215 = vmatprep.subr.bf16.mxu0 %v3779_v19  ;;  %v484_v13 = vshll.u32 %v4042_v42, 16  ;;  %v501_v32 = vshll.u32 %v4058_v2, 16 }
  0x46   : > { %v419_v56 = vrot.slane %v417_v38, 1 }
  0x47   : > { %1006 = vmatmul.mubr.bf16.gmra.mrb[12].mxu0 %v3965_v39  ;;  %3248 = vmatmul.mubr.bf16.gmra.mrb[12].mxu1 %v4011_v16  ;;  %v503_v38 = vrot.slane %v501_v32, 1 }
  0x48   : > { %2944 = vmatpush3.bf16.msra.mxu1 %v3593_v62  ;;  %3216 = vmatpush3.bf16.msra.mxu0 %v3779_v19  ;;  %v479_v19 = vrot.slane %v477_v7, 1  ;;  %v415_v62 = vor.u32 %v414_v46, %v410_v34  ;;  %v491_v7 = vrot.slane %v489_v63, 1 }
  0x49   : > { %2945 = vmatprep.subr.bf16.mxu1 %v3594_v5  ;;  %3217 = vmatprep.subr.bf16.mxu0 %v3795_v22  ;;  %v494_v5 = vshrl.u32 %v4051_v58, 16 }
  0x4a   : > { %v4054_v61 = vsel %vm408_vm1, %v475_v43, %v479_v19  ;;  %v420_v21 = vsel %vm408_vm1, %v415_v62, %v419_v56  ;;  %v4074_v43 = vld [vmem:[%s3787_s12 + $0x68] ss:$0 sps:$4 sm:$0x11]  }
  0x4b   : > { %1013 = vmatprep.mubr.bf16.mxu0 %v4054_v61  ;;  %1447 = vmatprep.mubr.bf16.mxu1 %v420_v21 }
  0x4c   : > { %2946 = vmatpush3.bf16.msra.mxu1 %v3595_v11  ;;  %3218 = vmatpush3.bf16.msra.mxu0 %v3795_v22  ;;  %v486_v22 = vrot.slane %v484_v13, 1  ;;  %v496_v11 = vshll.u32 %v4051_v58, 16  ;;  %v508_v13 = vshll.u32 %v4070_v35, 16 }
  0x4d   : > { %3251 = vmatprep.subr.bf16.mxu1 %v3600_v28 }
  0x4e   : > { %v487_v19 = vor.u32 %v486_v22, %v482_v57  ;;  %v498_v34 = vrot.slane %v496_v11, 1  ;;  %v3608_v57 = vld [vmem:[%s4771_s1 + $0x90] sm:$0xff]   ;;  %v510_v63 = vrot.slane %v508_v13, 1  ;;  %v513_v22 = vshll.u32 %v4074_v43, 16 }
  0x4f   : > { %1014 = vmatmul.mubr.bf16.gmra.mrb[16].mxu0 %v4019_v12  ;;  %1448 = vmatmul.mubr.bf16.vlgmr.msra.gmra.mrb[16].mxu1 %v4029_v25  ;;  %v621_v13 = vrot.slane %v3800_v23, 1 }
  0x50   : > { %3252 = vmatpush3.bf16.msra.mxu1 %v3600_v28  ;;  %v4077_v46 = vsel %vm408_vm1, %v487_v19, %v491_v7  ;;  %1455 = vmatprep.mubr.bf16.mxu1 %v3843_v44  ;;  %v499_v56 = vor.u32 %v498_v34, %v494_v5  ;;  %v506_v28 = vshrl.u32 %v4070_v35, 16  ;;  %v3609_v44 = vld [vmem:[%s4771_s1 + $0x98] sm:$0xff]   ;;  %v3613_v5 = vld [vmem:[%s4771_s1 + $0x1c0] sm:$0xff]   ;;  %v515_v21 = vrot.slane %v513_v22, 1 }
  0x51   : > { %1021 = vmatprep.mubr.bf16.mxu0 %v4077_v46  ;;  %3253 = vmatprep.subr.bf16.mxu1 %v3605_v20  ;;  %v520_v7 = vshll.u32 %v3812_v29, 16  ;;  %v518_v19 = vshrl.u32 %v3812_v29, 16 }
  0x52   : > { %v4086_v62 = vsel %vm408_vm1, %v499_v56, %v503_v38  ;;  %v511_v11 = vor.u32 %v510_v63, %v506_v28  ;;  %3067 = vmatprep.subr.bf16.mxu0 %v3613_v5  ;;  %v525_v38 = vshll.u32 %v3816_v30, 16  ;;  %v3611_v56 = vld [vmem:[%s4771_s1 + $0xa8] sm:$0xff]   ;;  %v532_v30 = vshll.u32 %v3819_v31, 16 }
  0x53   : > { %v522_v34 = vrot.slane %v520_v7, 1 }
  0x54   : > { %3254 = vmatpush3.bf16.msra.mxu1 %v3605_v20  ;;  %v3610_v20 = vld [vmem:[%s4771_s1 + $0xa0] sm:$0xff]   ;;  %v4105_v32 = vsel %vm408_vm1, %v511_v11, %v515_v21  ;;  %v527_v63 = vrot.slane %v525_v38, 1  ;;  %v534_v5 = vrot.slane %v532_v30, 1  ;;  %v537_v11 = vshll.u32 %v3828_v37, 16  ;;  %v3621_v21 = vld [vmem:[%s4771_s1 + $0xb8] sm:$0xff]  }
  0x55   : > { %3255 = vmatprep.subr.bf16.mxu1 %v3608_v57  ;;  %v523_v28 = vor.u32 %v522_v34, %v518_v19  ;;  %v544_v19 = vshll.u32 %v3867_v52, 16  ;;  %v618_v37 = vrot.slane %v4029_v25, 1  ;;  %v619_v34 = vrot.slane %v4033_v27, 1  ;;  %v4153_v25 = vld [vmem:[%s4771_s1 + $0x200] sm:$0xff]  }
  0x56   : > { %v542_v38 = vshrl.u32 %v3867_v52, 16 }
  0x57   : > { %1022 = vmatmul.mubr.bf16.gmra.mrb[20].mxu0 %v4042_v42  ;;  %1456 = vmatmul.mubr.bf16.gmra.mrb[20].mxu1 %v3800_v23  ;;  %v3612_v23 = vld [vmem:[%s4771_s1 + $0xb0] sm:$0xff]  }
  0x58   : > { %1029 = vmatprep.mubr.bf16.mxu0 %v4086_v62  ;;  %1463 = vmatprep.mubr.bf16.mxu1 %v3898_v3 }
  0x59   : > { %3256 = vmatpush3.bf16.msra.mxu1 %v3608_v57  ;;  %v622_v57 = vrot.slane %v3803_v24, 1  ;;  %v530_v24 = vshrl.u32 %v3819_v31, 16 }
  0x5a   : > { %3257 = vmatprep.subr.bf16.mxu1 %v3609_v44 }
  0x5b   : > { %v4119_v22 = vsel %vm617_vm0, %v621_v13, %v622_v57  ;;  %v535_v7 = vor.u32 %v534_v5, %v530_v24  ;;  %v546_v13 = vrot.slane %v544_v19, 1  ;;  %v549_v57 = vshll.u32 %v3871_v53, 16 }
  0x5c   : > { %v554_v53 = vshrl.u32 %v3874_v54, 16  ;;  %v561_v24 = vshll.u32 %v3882_v60, 16  ;;  %v566_v60 = vshrl.u32 %v3921_v14, 16 }
  0x5d   : > { %3258 = vmatpush3.bf16.msra.mxu1 %v3609_v44  ;;  %v4127_v44 = vsel %vm408_vm1, %v523_v28, %v527_v63  ;;  %v4146_v28 = vsel %vm617_vm0, %v618_v37, %v619_v34  ;;  %v556_v63 = vshll.u32 %v3874_v54, 16  ;;  %v547_v27 = vor.u32 %v546_v13, %v542_v38 }
  0x5e   : > { %3259 = vmatprep.subr.bf16.mxu1 %v3610_v20  ;;  %v551_v30 = vrot.slane %v549_v57, 1  ;;  %v573_v37 = vshll.u32 %v3925_v15, 16  ;;  %v580_v13 = vshll.u32 %v3928_v17, 16  ;;  %v585_v15 = vshll.u32 %v3936_v26, 16 }
  0x5f   : > { %1030 = vmatmul.mubr.bf16.gmra.mrb[24].mxu0 %v4051_v58  ;;  %1464 = vmatmul.mubr.bf16.gmra.mrb[24].mxu1 %v3857_v47  ;;  %v597_v26 = vshll.u32 %v3979_v50, 16  ;;  %v747_v50 = vshll.u32 %v3990_v59, 16  ;;  %v625_v59 = vrot.slane %v3860_v48, 1 }
  0x60   : > { %1037 = vmatprep.mubr.bf16.mxu0 %v4105_v32  ;;  %1471 = vmatprep.mubr.bf16.mxu1 %v3952_v36  ;;  %v4162_v5 = vsel %vm408_vm1, %v547_v27, %v551_v30  ;;  %v575_v38 = vrot.slane %v573_v37, 1  ;;  %v582_v27 = vrot.slane %v580_v13, 1 }
  0x61   : > { %3260 = vmatpush3.bf16.msra.mxu1 %v3610_v20  ;;  %v539_v20 = vrot.slane %v537_v11, 1 }
  0x62   : > { %3261 = vmatprep.subr.bf16.mxu1 %v3611_v56 }
  0x65   : > { %3262 = vmatpush3.bf16.msra.mxu1 %v3611_v56  ;;  %v4142_v56 = vsel %vm408_vm1, %v535_v7, %v539_v20  ;;  %v568_v7 = vshll.u32 %v3921_v14, 16 }
  0x66   : > { %3263 = vmatprep.subr.bf16.mxu1 %v3612_v23 }
  0x67   : > { %1038 = vmatmul.mubr.bf16.gmra.mrb[28].mxu0 %v4070_v35  ;;  %1472 = vmatmul.mubr.bf16.gmra.mrb[28].mxu1 %v3911_v6  ;;  %v570_v19 = vrot.slane %v568_v7, 1 }
  0x68   : > { %1045 = vmatprep.mubr.bf16.mxu0 %v4127_v44  ;;  %1479 = vmatprep.mubr.bf16.mxu1 %v4006_v9 }
  0x69   : > { %3264 = vmatpush3.bf16.msra.mxu1 %v3612_v23  ;;  %v558_v23 = vrot.slane %v556_v63, 1  ;;  %v571_v34 = vor.u32 %v570_v19, %v566_v60  ;;  %v578_v63 = vshrl.u32 %v3928_v17, 16  ;;  %v599_v60 = vrot.slane %v597_v26, 1 }
  0x6a   : > { %3265 = vmatprep.subr.bf16.mxu1 %v3621_v21  ;;  %v742_v19 = vshll.u32 %v3982_v51, 16  ;;  %v634_v26 = vrot.slane %v4022_v18, 1  ;;  %v3620_v18 = vld [vmem:[%s4771_s1 + $0x198] sm:$0xff]  }
  0x6b   : > { %v559_v11 = vor.u32 %v558_v23, %v554_v53  ;;  %v4180_v57 = vsel %vm408_vm1, %v571_v34, %v575_v38  ;;  %v583_v30 = vor.u32 %v582_v27, %v578_v63  ;;  %v587_v53 = vrot.slane %v585_v15, 1 }
  0x6c   : > { %v592_v23 = vshll.u32 %v3975_v49, 16  ;;  %v740_v34 = vshrl.u32 %v3982_v51, 16  ;;  %v744_v38 = vrot.slane %v742_v19, 1  ;;  %v749_v63 = vrot.slane %v747_v50, 1 }
  0x6d   : > { %3266 = vmatpush3.bf16.msra.mxu1 %v3621_v21  ;;  %v563_v21 = vrot.slane %v561_v24, 1  ;;  %v4190_v24 = vsel %vm408_vm1, %v583_v30, %v587_v53  ;;  %v627_v15 = vrot.slane %v3911_v6, 1  ;;  %v628_v30 = vrot.slane %v3914_v8, 1  ;;  %v3615_v53 = vld [vmem:[%s4771_s1 + $0x1c8] sm:$0xff]  }
  0x6e   : > { %3299 = vmatprep.subr.bf16.mxu1 %v4153_v25  ;;  %v745_v13 = vor.u32 %v744_v38, %v740_v34  ;;  %v630_v8 = vrot.slane %v3965_v39, 1  ;;  %v636_v19 = vrot.slane %v4042_v42, 1  ;;  %v637_v34 = vrot.slane %v4046_v55, 1  ;;  %v3622_v38 = vld [vmem:[%s4771_s1 + $0x1e0] sm:$0xff]  }
  0x6f   : > { %1046 = vmatmul.mubr.bf16.gmra.mrb[32].mxu0 %v3812_v29  ;;  %1480 = vmatmul.mubr.bf16.gmra.mrb[32].mxu1 %v3965_v39  ;;  %v4170_v20 = vsel %vm408_vm1, %v559_v11, %v563_v21  ;;  %v590_v11 = vshrl.u32 %v3975_v49, 16  ;;  %v594_v21 = vrot.slane %v592_v23, 1  ;;  %v4233_v48 = vsel %vm617_vm0, %v627_v15, %v628_v30  ;;  %v3623_v55 = vld [vmem:[%s4771_s1 + $0x1a0] sm:$0xff]   ;;  %v3626_v30 = vld [vmem:[%s4771_s1 + $0x1f0] sm:$0xff]  }
  0x70   : > { %1053 = vmatprep.mubr.bf16.mxu0 %v4142_v56  ;;  %1487 = vmatprep.mubr.bf16.mxu1 %v4054_v61  ;;  %v4209_v27 = vsel %vm408_vm1, %v745_v13, %v749_v63  ;;  %v631_v23 = vrot.slane %v3968_v40, 1  ;;  %v3618_v40 = vld [vmem:[%s4771_s1 + $0x190] sm:$0xff]   ;;  %v639_v50 = vrot.slane %v4051_v58, 1  ;;  %v640_v13 = vrot.slane %v4058_v2, 1  ;;  %v3625_v2 = vld [vmem:[%s4771_s1 + $0x1a8] sm:$0xff]  }
  0x71   : > { %v595_v7 = vor.u32 %v594_v21, %v590_v11  ;;  %v3617_v11 = vld [vmem:[%s4771_s1 + $0x1d0] sm:$0xff]   ;;  %v633_v21 = vrot.slane %v4019_v12, 1  ;;  %v4276_v63 = vsel %vm617_vm0, %v636_v19, %v637_v34  ;;  %v643_v15 = vrot.slane %v4074_v43, 1  ;;  %v3629_v43 = vld [vmem:[%s4771_s1 + $0x1b8] sm:$0xff]  }
  0x73   : > { %v4200_v37 = vsel %vm408_vm1, %v595_v7, %v599_v60  ;;  %v4250_v7 = vsel %vm617_vm0, %v630_v8, %v631_v23  ;;  %v4259_v60 = vsel %vm617_vm0, %v633_v21, %v634_v26 }
  0x77   : > { %1054 = vmatmul.mubr.bf16.gmra.mrb[36].mxu0 %v3819_v31  ;;  %1488 = vmatmul.mubr.bf16.gmra.mrb[36].mxu1 %v4019_v12 }
  0x78   : > { %1061 = vmatprep.mubr.bf16.mxu0 %v4162_v5  ;;  %1495 = vmatprep.mubr.bf16.mxu1 %v4077_v46 }
  0x7f   : > { %1062 = vmatmul.mubr.bf16.gmra.mrb[40].mxu0 %v3867_v52  ;;  %1496 = vmatmul.mubr.bf16.gmra.mrb[40].mxu1 %v4042_v42 }
  0x80   : > { %1069 = vmatprep.mubr.bf16.mxu0 %v4170_v20  ;;  %1503 = vmatprep.mubr.bf16.mxu1 %v4086_v62 }
  0x87   : > { %1070 = vmatmul.mubr.bf16.gmra.mrb[44].mxu0 %v3874_v54  ;;  %1504 = vmatmul.mubr.bf16.gmra.mrb[44].mxu1 %v4051_v58 }
  0x88   : > { %1077 = vmatprep.mubr.bf16.mxu0 %v4180_v57  ;;  %1511 = vmatprep.mubr.bf16.mxu1 %v4105_v32 }
  0x8f   : > { %1078 = vmatmul.mubr.bf16.gmra.mrb[48].mxu0 %v3921_v14  ;;  %1512 = vmatmul.mubr.bf16.gmra.mrb[48].mxu1 %v4070_v35 }
  0x90   : > { %1085 = vmatprep.mubr.bf16.mxu0 %v4190_v24  ;;  %1519 = vmatprep.mubr.bf16.mxu1 %v4127_v44 }
  0x97   : > { %1086 = vmatmul.mubr.bf16.gmra.mrb[52].mxu0 %v3928_v17  ;;  %1520 = vmatmul.mubr.bf16.gmra.mrb[52].mxu1 %v3812_v29  ;;  %v624_v29 = vrot.slane %v3857_v47, 1 }
  0x98   : > { %1093 = vmatprep.mubr.bf16.mxu0 %v4200_v37  ;;  %1527 = vmatprep.mubr.bf16.mxu1 %v4142_v56 }
  0x9f   : > { %1094 = vmatmul.mubr.bf16.gmra.mrb[56].mxu0 %v3975_v49  ;;  %1528 = vmatmul.mubr.bf16.gmra.mrb[56].mxu1 %v3819_v31  ;;  %v4224_v31 = vsel %vm617_vm0, %v624_v29, %v625_v59  ;;  %v4285_v29 = vsel %vm617_vm0, %v639_v50, %v640_v13  ;;  %v642_v59 = vrot.slane %v4070_v35, 1 }
  0xa0   : > { %1101 = vmatprep.mubr.bf16.mxu0 %v4209_v27  ;;  %1535 = vmatprep.mubr.bf16.mxu1 %v4162_v5 }
  0xa7   : > { %1102 = vmatmul.mubr.bf16.gmra.mrb[60].mxu0 %v3982_v51  ;;  %1536 = vmatmul.mubr.bf16.gmra.mrb[60].mxu1 %v3867_v52  ;;  %v3614_v51 = vld [vmem:[%s4771_s1 + $0x180] sm:$0xff]   ;;  %v3616_v52 = vld [vmem:[%s4771_s1 + $0x188] sm:$0xff]  }
  0xa8   : > { %3219 = vmatprep.mubr.bf16.mxu0 %v4119_v22  ;;  %1543 = vmatprep.mubr.bf16.mxu1 %v4170_v20 }
  0xaf   : > { %3220 = vmatmul.mubr.bf16.vlgmr.msra.gmra.mrb[64].mxu0 %v4224_v31  ;;  %1544 = vmatmul.mubr.bf16.gmra.mrb[64].mxu1 %v3874_v54  ;;  %v3619_v54 = vld [vmem:[%s4771_s1 + $0x1d8] sm:$0xff]  }
  0xb0   : > { %3068 = vmatpush3.bf16.msra.mxu0 %v3614_v51  ;;  %3223 = vmatprep.mubr.bf16.mxu0 %v4233_v48  ;;  %v4300_v51 = vsel %vm617_vm0, %v642_v59, %v643_v15 }
  0xb1   : > { %3069 = vmatprep.subr.bf16.mxu0 %v3615_v53  ;;  %1551 = vmatprep.mubr.bf16.mxu1 %v4180_v57  ;;  %v3627_v53 = vld [vmem:[%s4771_s1 + $0x1b0] sm:$0xff]  }
  0xb4   : > { %3070 = vmatpush3.bf16.msra.mxu0 %v3616_v52  ;;  %v3631_v52 = vld [vmem:[%s4771_s1 + $0x208] sm:$0xff]  }
  0xb5   : > { %3071 = vmatprep.subr.bf16.mxu0 %v3617_v11 }
  0xb7   : > { %3224 = vmatmul.mubr.bf16.gmra.mrb[68].mxu0 %v4250_v7  ;;  %1552 = vmatmul.mubr.bf16.gmra.mrb[68].mxu1 %v3921_v14  ;;  %v3624_v14 = vld [vmem:[%s4771_s1 + $0x1e8] sm:$0xff]  }
  0xb8   : > { %3072 = vmatpush3.bf16.msra.mxu0 %v3618_v40  ;;  %3227 = vmatprep.mubr.bf16.mxu0 %v4259_v60 }
  0xb9   : > { %3073 = vmatprep.subr.bf16.mxu0 %v3619_v54  ;;  %1559 = vmatprep.mubr.bf16.mxu1 %v4190_v24 }
  0xbc   : > { %3074 = vmatpush3.bf16.msra.mxu0 %v3620_v18 }
  0xbd   : > { %3075 = vmatprep.subr.bf16.mxu0 %v3622_v38  ;;  %v3643_v38 = vld [vmem:[%s3787_s12 + $0x90] sm:$0xff]  }
  0xbf   : > { %3228 = vmatmul.mubr.bf16.gmra.mrb[72].mxu0 %v4276_v63  ;;  %1560 = vmatmul.mubr.bf16.gmra.mrb[72].mxu1 %v3928_v17  ;;  %v3628_v17 = vld [vmem:[%s4771_s1 + $0x1f8] sm:$0xff]  }
  0xc0   : > { %3076 = vmatpush3.bf16.msra.mxu0 %v3623_v55  ;;  %3231 = vmatprep.mubr.bf16.mxu0 %v4285_v29 }
  0xc1   : > { %3077 = vmatprep.subr.bf16.mxu0 %v3624_v14  ;;  %1567 = vmatprep.mubr.bf16.mxu1 %v4200_v37 }
  0xc4   : > { %3078 = vmatpush3.bf16.msra.mxu0 %v3625_v2 }
  0xc5   : > { %3079 = vmatprep.subr.bf16.mxu0 %v3626_v30 }
  0xc7   : > { %3232 = vmatmul.mubr.bf16.gmra.mrb[76].mxu0 %v4300_v51  ;;  %1568 = vmatmul.mubr.bf16.gmra.mrb[76].mxu1 %v3975_v49  ;;  %v3636_v49 = vld [vmem:[%s4771_s1 + $0x230] sm:$0xff]  }
  0xc8   : > { %3080 = vmatpush3.bf16.msra.mxu0 %v3627_v53  ;;  %1988 = vmatprep.mubr.bf16.mxu0 %v3898_v3  ;;  %v3632_v3 = vld [vmem:[%s4771_s1 + $0x210] sm:$0xff]  }
  0xc9   : > { %3081 = vmatprep.subr.bf16.mxu0 %v3628_v17  ;;  %3267 = vmatprep.mubr.bf16.mxu1 %v4146_v28 }
  0xcc   : > { %3082 = vmatpush3.bf16.msra.mxu0 %v3629_v43 }
  0xcf   : > { %1989 = vmatmul.mubr.bf16.vlgmr.msra.gmra.mrb[80].mxu0 %v3857_v47  ;;  %3268 = vmatmul.mubr.bf16.vlgmr.msra.gmra.mrb[80].mxu1 %v4119_v22  ;;  %v3633_v47 = vld [vmem:[%s4771_s1 + $0x218] sm:$0xff]  }
  0xd0   : > { %1996 = vmatprep.mubr.bf16.mxu0 %v3952_v36  ;;  %3300 = vmatpush3.bf16.msra.mxu1 %v4153_v25  ;;  %v3634_v36 = vld [vmem:[%s4771_s1 + $0x220] sm:$0xff]   ;;  %v3640_v25 = vld [vmem:[%s3787_s12 + $0x6c] sm:$0xff]  }
  0xd1   : > { %3271 = vmatprep.mubr.bf16.mxu1 %v4224_v31  ;;  %3301 = vmatprep.subr.bf16.mxu1 %v3631_v52 }
  0xd4   : > { %3302 = vmatpush3.bf16.msra.mxu1 %v3631_v52 }
  0xd5   : > { %3303 = vmatprep.subr.bf16.mxu1 %v3632_v3 }
  0xd7   : > { %1997 = vmatmul.mubr.bf16.gmra.mrb[84].mxu0 %v3911_v6  ;;  %3272 = vmatmul.mubr.bf16.gmra.mrb[84].mxu1 %v4233_v48  ;;  %v3635_v6 = vld [vmem:[%s4771_s1 + $0x228] sm:$0xff]  }
  0xd8   : > { %2004 = vmatprep.mubr.bf16.mxu0 %v4006_v9  ;;  %3275 = vmatprep.mubr.bf16.mxu1 %v4250_v7 }
  0xd9   : > { %3304 = vmatpush3.bf16.msra.mxu1 %v3632_v3 }
  0xda   : > { %3305 = vmatprep.subr.bf16.mxu1 %v3633_v47 }
  0xdd   : > { %3306 = vmatpush3.bf16.msra.mxu1 %v3633_v47  ;;  %v4412_v47 = vld [vmem:[%s3787_s12 + $0xcc] sm:$0xff]  }
  0xde   : > { %3307 = vmatprep.subr.bf16.mxu1 %v3634_v36 }
  0xdf   : > { %2005 = vmatmul.mubr.bf16.gmra.mrb[88].mxu0 %v3965_v39  ;;  %3276 = vmatmul.mubr.bf16.gmra.mrb[88].mxu1 %v4259_v60  ;;  %v3637_v39 = vld [vmem:[%s4771_s1 + $0x238] sm:$0xff]  }
  0xe0   : > { %2012 = vmatprep.mubr.bf16.mxu0 %v4054_v61  ;;  %3279 = vmatprep.mubr.bf16.mxu1 %v4276_v63 }
  0xe1   : > { %3308 = vmatpush3.bf16.msra.mxu1 %v3634_v36 }
  0xe2   : > { %3309 = vmatprep.subr.bf16.mxu1 %v3635_v6 }
  0xe5   : > { %3310 = vmatpush3.bf16.msra.mxu1 %v3635_v6 }
  0xe6   : > { %3311 = vmatprep.subr.bf16.mxu1 %v3636_v49 }
  0xe7   : > { %2013 = vmatmul.mubr.bf16.gmra.mrb[92].mxu0 %v4019_v12  ;;  %3280 = vmatmul.mubr.bf16.gmra.mrb[92].mxu1 %v4285_v29 }
  0xe8   : > { %2020 = vmatprep.mubr.bf16.mxu0 %v4077_v46  ;;  %3283 = vmatprep.mubr.bf16.mxu1 %v4300_v51 }
  0xe9   : > { %3312 = vmatpush3.bf16.msra.mxu1 %v3636_v49 }
  0xea   : > { %3313 = vmatprep.subr.bf16.mxu1 %v3637_v39 }
  0xed   : > { %3314 = vmatpush3.bf16.msra.mxu1 %v3637_v39 }
  0xef   : > { %2021 = vmatmul.mubr.bf16.gmra.mrb[96].mxu0 %v4042_v42  ;;  %3284 = vmatmul.mubr.bf16.gmra.mrb[0].mxu1 %v3836_v41 }
  0xf0   : > { %2028 = vmatprep.mubr.bf16.mxu0 %v4086_v62  ;;  %3287 = vmatprep.mubr.bf16.mxu1 %v3849_v45 }
  0xf7   : > { %2029 = vmatmul.mubr.bf16.gmra.mrb[100].mxu0 %v4051_v58  ;;  %3288 = vmatmul.mubr.bf16.gmra.mrb[4].mxu1 %v3891_v0 }
  0xf8   : > { %2036 = vmatprep.mubr.bf16.mxu0 %v4105_v32  ;;  %3291 = vmatprep.mubr.bf16.mxu1 %v3903_v4 }
  0xff   : > { %2037 = vmatmul.mubr.bf16.gmra.mrb[104].mxu0 %v4070_v35  ;;  %3292 = vmatmul.mubr.bf16.gmra.mrb[8].mxu1 %v3945_v33 }
 0x100   : > { %2044 = vmatprep.mubr.bf16.mxu0 %v4127_v44  ;;  %3295 = vmatprep.mubr.bf16.mxu1 %v3957_v10  ;;  %v3641_v44 = vld [vmem:[%s3787_s12 + $0x78] sm:$0xff]  }
 0x102   : > { %v2811_v9 = vpop.f32.mrb[0].mxu0 }
 0x103   : > { %v2812_v12 = vpop.f32.mrb[1].mxu0 }
 0x104   : > { %v4361_v61 = vadd.f32 %v2812_v12, %v2811_v9  ;;  %v2814_v42 = vpop.f32.mrb[2].mxu0  ;;  %v1749_v9 = vshll.u32 %v4412_v47, 16 }
 0x105   : > { %v2815_v46 = vpop.f32.mrb[3].mxu0 }
 0x106   : > { %v4363_v62 = vadd.f32 %v2815_v46, %v2814_v42 }
 0x107   : > { %2045 = vmatmul.mubr.bf16.gmra.mrb[108].mxu0 %v3640_v25  ;;  %3296 = vmatmul.mubr.bf16.gmra.mrb[12].mxu1 %v3999_v1 }
 0x108   : > { %2052 = vmatprep.mubr.bf16.mxu0 %v4142_v56  ;;  %3315 = vmatprep.mubr.bf16.mxu1 %v4224_v31  ;;  %v3642_v56 = vld [vmem:[%s3787_s12 + $0x84] sm:$0xff]  }
 0x10a   : > { %v2817_v58 = vpop.f32.mrb[4].mxu0 }
 0x10b   : > { %v2818_v32 = vpop.f32.mrb[5].mxu0 }
 0x10c   : > { %v4369_v22 = vadd.f32 %v2818_v32, %v2817_v58  ;;  %v2820_v28 = vpop.f32.mrb[6].mxu0 }
 0x10d   : > { %v2821_v8 = vpop.f32.mrb[7].mxu0 }
 0x10e   : > { %v4372_v23 = vadd.f32 %v2821_v8, %v2820_v28  ;;  %v1747_v8 = vshrl.u32 %v4412_v47, 16 }
 0x10f   : > { %2053 = vmatmul.mubr.bf16.gmra.mrb[112].mxu0 %v3641_v44  ;;  %3316 = vmatmul.mubr.bf16.vlgmr.msra.gmra.mrb[80].mxu1 %v4233_v48 }
 0x110   : > { %2060 = vmatprep.mubr.bf16.mxu0 %v4162_v5  ;;  %3319 = vmatprep.mubr.bf16.mxu1 %v4250_v7 }
 0x112   : > { %v2823_v35 = vpop.f32.mrb[8].mxu0 }
 0x113   : > { %v2824_v11 = vpop.f32.mrb[9].mxu0 }
 0x114   : > { %v4378_v21 = vadd.f32 %v2824_v11, %v2823_v35  ;;  %v2826_v26 = vpop.f32.mrb[10].mxu0  ;;  %v1751_v35 = vrot.slane %v1749_v9, 1 }
 0x115   : > { %v2827_v40 = vpop.f32.mrb[11].mxu0 }
 0x116   : > { %v4382_v54 = vadd.f32 %v2827_v40, %v2826_v26  ;;  %v3646_v40 = vld [vmem:[%s3787_s12 + $0xb4] sm:$0xff]  }
 0x117   : > { %2061 = vmatmul.mubr.bf16.gmra.mrb[116].mxu0 %v3642_v56  ;;  %3320 = vmatmul.mubr.bf16.gmra.mrb[84].mxu1 %v4259_v60  ;;  %v1752_v56 = vor.u32 %v1751_v35, %v1747_v8 }
 0x118   : > { %2068 = vmatprep.mubr.bf16.mxu0 %v4170_v20  ;;  %3323 = vmatprep.mubr.bf16.mxu1 %v4276_v63 }
 0x11a   : > { %v2829_v31 = vpop.f32.mrb[12].mxu0 }
 0x11b   : > { %v2830_v18 = vpop.f32.mrb[13].mxu0 }
 0x11c   : > { %v4388_v19 = vadd.f32 %v2830_v18, %v2829_v31  ;;  %v2832_v34 = vpop.f32.mrb[14].mxu0 }
 0x11d   : > { %v2833_v5 = vpop.f32.mrb[15].mxu0 }
 0x11e   : > { %v4391_v48 = vadd.f32 %v2833_v5, %v2832_v34 }
 0x11f   : > { %2069 = vmatmul.mubr.bf16.gmra.mrb[120].mxu0 %v3643_v38  ;;  %3324 = vmatmul.mubr.bf16.gmra.mrb[88].mxu1 %v4285_v29 }
 0x120   : > { %2076 = vmatprep.mubr.bf16.mxu0 %v4180_v57  ;;  %3327 = vmatprep.mubr.bf16.mxu1 %v4300_v51  ;;  %v3644_v57 = vld [vmem:[%s3787_s12 + $0x9c] sm:$0xff]  }
 0x122   : > { %v2835_v7 = vpop.f32.mrb[16].mxu0  ;;  %v2947_v60 = vpop.f32.mrb[16].mxu1 }
 0x123   : > { %v2836_v20 = vpop.f32.mrb[17].mxu0  ;;  %v2948_v55 = vpop.f32.mrb[17].mxu1 }
 0x124   : > { %v4397_v50 = vadd.f32 %v2836_v20, %v2835_v7  ;;  %v2838_v13 = vpop.f32.mrb[18].mxu0  ;;  %v4399_v14 = vadd.f32 %v2948_v55, %v2947_v60  ;;  %v2950_v2 = vpop.f32.mrb[18].mxu1 }
 0x125   : > { %v2839_v63 = vpop.f32.mrb[19].mxu0  ;;  %v2951_v15 = vpop.f32.mrb[19].mxu1 }
 0x126   : > { %v4401_v59 = vadd.f32 %v2839_v63, %v2838_v13  ;;  %v4404_v29 = vadd.f32 %v2951_v15, %v2950_v2  ;;  %v3647_v2 = vld [vmem:[%s3787_s12 + $0xc0] sm:$0xff]  }
 0x127   : > { %2077 = vmatmul.mubr.bf16.gmra.mrb[124].mxu0 %v3644_v57  ;;  %3328 = vmatmul.mubr.bf16.gmra.mrb[92].mxu1 %v3836_v41  ;;  %v3645_v41 = vld [vmem:[%s3787_s12 + $0xa8] sm:$0xff]   ;;  %v1759_v57 = vrot.slane %v4412_v47, 1 }
 0x128   : > { %2084 = vmatprep.mubr.bf16.mxu0 %v4190_v24  ;;  %3331 = vmatprep.mubr.bf16.mxu1 %v3849_v45  ;;  %v3639_v45 = vld [vmem:[%s3787_s12 + $0xd4] ss:$0 sps:$4 sm:$0x11]   ;;  %s2794_s12 = sshll.u32 %s4778_s16, 8 }
 0x129   : > { %s4639_s29 = scalar_lea.vmem %s4773_s3, %s2794_s12 }
 0x12a   : > { %v2841_v30 = vpop.f32.mrb[20].mxu0  ;;  %v2953_v53 = vpop.f32.mrb[20].mxu1 }
 0x12b   : > { %v2842_v51 = vpop.f32.mrb[21].mxu0  ;;  %v2954_v52 = vpop.f32.mrb[21].mxu1 }
 0x12c   : > { %v4409_v17 = vadd.f32 %v2842_v51, %v2841_v30  ;;  %v2844_v43 = vpop.f32.mrb[22].mxu0  ;;  %v4414_v36 = vadd.f32 %v2954_v52, %v2953_v53  ;;  %v2956_v6 = vpop.f32.mrb[22].mxu1  ;;  %v1760_v30 = vrot.slane %v3639_v45, 1 }
 0x12d   : > { %v2845_v3 = vpop.f32.mrb[23].mxu0  ;;  %v2957_v24 = vpop.f32.mrb[23].mxu1 }
 0x12e   : > { %v4416_v49 = vadd.f32 %v2845_v3, %v2844_v43  ;;  %v4419_v39 = vadd.f32 %v2957_v24, %v2956_v6 }
 0x12f   : > { %2085 = vmatmul.mubr.bf16.gmra.mrb[128].mxu0 %v3645_v41  ;;  %3332 = vmatmul.mubr.bf16.gmra.mrb[0].mxu1 %v3891_v0 }
 0x130   : > { %2092 = vmatprep.mubr.bf16.mxu0 %v4200_v37  ;;  %3335 = vmatprep.mubr.bf16.mxu1 %v3903_v4  ;;  %v1754_v37 = vshll.u32 %v3639_v45, 16 }
 0x132   : > { %v2847_v12 = vpop.f32.mrb[24].mxu0  ;;  %v2959_v46 = vpop.f32.mrb[24].mxu1  ;;  %v1756_v31 = vrot.slane %v1754_v37, 1 }
 0x133   : > { %v2848_v42 = vpop.f32.mrb[25].mxu0  ;;  %v2960_v28 = vpop.f32.mrb[25].mxu1 }
 0x134   : > { %v4426_v58 = vadd.f32 %v2848_v42, %v2847_v12  ;;  %v2850_v32 = vpop.f32.mrb[26].mxu0  ;;  %v4429_v44 = vadd.f32 %v2960_v28, %v2959_v46  ;;  %v2962_v0 = vpop.f32.mrb[26].mxu1  ;;  %v1757_v13 = vsel %vm408_vm1, %v1752_v56, %v1756_v31  ;;  %v1761_v12 = vsel %vm617_vm0, %v1759_v57, %v1760_v30 }
 0x135   : > { %v2851_v25 = vpop.f32.mrb[27].mxu0  ;;  %v2963_v26 = vpop.f32.mrb[27].mxu1 }
 0x136   : > { %v4431_v11 = vadd.f32 %v2851_v25, %v2850_v32  ;;  %v4434_v4 = vadd.f32 %v2963_v26, %v2962_v0 }
 0x137   : > { %2093 = vmatmul.mubr.bf16.gmra.mrb[132].mxu0 %v3646_v40  ;;  %3336 = vmatmul.mubr.bf16.gmra.mrb[4].mxu1 %v3945_v33 }
 0x138   : > { %2100 = vmatprep.mubr.bf16.mxu0 %v4209_v27  ;;  %3339 = vmatprep.mubr.bf16.mxu1 %v3957_v10 }
 0x13a   : > { %v2853_v18 = vpop.f32.mrb[28].mxu0  ;;  %v2965_v5 = vpop.f32.mrb[28].mxu1 }
 0x13b   : > { %v2854_v34 = vpop.f32.mrb[29].mxu0  ;;  %v2966_v20 = vpop.f32.mrb[29].mxu1 }
 0x13c   : > { %v4439_v38 = vadd.f32 %v2854_v34, %v2853_v18  ;;  %v2856_v7 = vpop.f32.mrb[30].mxu0  ;;  %v4442_v55 = vadd.f32 %v2966_v20, %v2965_v5  ;;  %v2968_v27 = vpop.f32.mrb[30].mxu1 }
 0x13d   : > { %v2857_v60 = vpop.f32.mrb[31].mxu0  ;;  %v2969_v33 = vpop.f32.mrb[31].mxu1 }
 0x13e   : > { %v4444_v63 = vadd.f32 %v2857_v60, %v2856_v7  ;;  %v4447_v15 = vadd.f32 %v2969_v33, %v2968_v27 }
 0x13f   : > { %2101 = vmatmul.mubr.bf16.gmra.mrb[136].mxu0 %v3647_v2  ;;  %3340 = vmatmul.mubr.bf16.gmra.mrb[8].mxu1 %v3999_v1 }
 0x140   : > { %2108 = vmatprep.mubr.bf16.mxu0 %v1757_v13  ;;  %3343 = vmatprep.mubr.bf16.mxu1 %v4011_v16 }
 0x142   : > { %v2859_v10 = vpop.f32.mrb[32].mxu0  ;;  %v2971_v53 = vpop.f32.mrb[32].mxu1 }
 0x143   : > { %v2860_v51 = vpop.f32.mrb[33].mxu0  ;;  %v2972_v3 = vpop.f32.mrb[33].mxu1 }
 0x144   : > { %v2861_v43 = vadd.f32 %v2860_v51, %v2859_v10  ;;  %v2862_v52 = vpop.f32.mrb[34].mxu0  ;;  %v4452_v24 = vadd.f32 %v2972_v3, %v2971_v53  ;;  %v2974_v41 = vpop.f32.mrb[34].mxu1 }
 0x145   : > { %v2863_v6 = vpop.f32.mrb[35].mxu0  ;;  %v2975_v42 = vpop.f32.mrb[35].mxu1 }
 0x146   : > { %v2864_v9 = vadd.f32 %v2863_v6, %v2862_v52  ;;  %v4456_v1 = vadd.f32 %v2975_v42, %v2974_v41 }
 0x147   : > { %2109 = vmatmul.mubr.bf16.gmra.mrb[140].mxu0 %v4412_v47  ;;  %3344 = vmatmul.mubr.bf16.gmra.mrb[12].mxu1 %v1761_v12 }
 0x14a   : > { %v2865_v16 = vpop.f32.mrb[36].mxu0  ;;  %v2977_v46 = vpop.f32.mrb[36].mxu1 }
 0x14b   : > { %v2866_v45 = vpop.f32.mrb[37].mxu0  ;;  %v2978_v25 = vpop.f32.mrb[37].mxu1 }
 0x14c   : > { %v2867_v32 = vadd.f32 %v2866_v45, %v2865_v16  ;;  %v2868_v28 = vpop.f32.mrb[38].mxu0  ;;  %v4458_v35 = vadd.f32 %v2978_v25, %v2977_v46  ;;  %v2980_v37 = vpop.f32.mrb[38].mxu1 }
 0x14d   : > { %v2869_v8 = vpop.f32.mrb[39].mxu0  ;;  %v2981_v26 = vpop.f32.mrb[39].mxu1 }
 0x14e   : > { %v2870_v0 = vadd.f32 %v2869_v8, %v2868_v28  ;;  %v4460_v40 = vadd.f32 %v2981_v26, %v2980_v37 }
 0x152   : > { %v2871_v56 = vpop.f32.mrb[40].mxu0  ;;  %v2983_v47 = vpop.f32.mrb[40].mxu1 }
 0x153   : > { %v2872_v31 = vpop.f32.mrb[41].mxu0  ;;  %v2984_v5 = vpop.f32.mrb[41].mxu1 }
 0x154   : > { %v2873_v18 = vadd.f32 %v2872_v31, %v2871_v56  ;;  %v2874_v34 = vpop.f32.mrb[42].mxu0  ;;  %v4462_v20 = vadd.f32 %v2984_v5, %v2983_v47  ;;  %v2986_v60 = vpop.f32.mrb[42].mxu1 }
 0x155   : > { %v2875_v7 = vpop.f32.mrb[43].mxu0  ;;  %v2987_v27 = vpop.f32.mrb[43].mxu1 }
 0x156   : > { %v2876_v13 = vadd.f32 %v2875_v7, %v2874_v34  ;;  %v4464_v33 = vadd.f32 %v2987_v27, %v2986_v60 }
 0x15a   : > { %v2877_v2 = vpop.f32.mrb[44].mxu0  ;;  %v2989_v57 = vpop.f32.mrb[44].mxu1 }
 0x15b   : > { %v2878_v10 = vpop.f32.mrb[45].mxu0  ;;  %v2990_v53 = vpop.f32.mrb[45].mxu1 }
 0x15c   : > { %v2879_v30 = vadd.f32 %v2878_v10, %v2877_v2  ;;  %v2880_v51 = vpop.f32.mrb[46].mxu0  ;;  %v4466_v3 = vadd.f32 %v2990_v53, %v2989_v57  ;;  %v2992_v6 = vpop.f32.mrb[46].mxu1 }
 0x15d   : > { %v2881_v52 = vpop.f32.mrb[47].mxu0  ;;  %v2993_v12 = vpop.f32.mrb[47].mxu1 }
 0x15e   : > { %v2882_v41 = vadd.f32 %v2881_v52, %v2880_v51  ;;  %v4468_v42 = vadd.f32 %v2993_v12, %v2992_v6 }
 0x162   : > { %v2883_v16 = vpop.f32.mrb[48].mxu0  ;;  %v2995_v46 = vpop.f32.mrb[48].mxu1 }
 0x163   : > { %v2884_v45 = vpop.f32.mrb[49].mxu0  ;;  %v2996_v8 = vpop.f32.mrb[49].mxu1 }
 0x164   : > { %v4470_v28 = vadd.f32 %v2884_v45, %v2883_v16  ;;  %v2886_v25 = vpop.f32.mrb[50].mxu0  ;;  %v2997_v26 = vadd.f32 %v2996_v8, %v2995_v46  ;;  %v2998_v56 = vpop.f32.mrb[50].mxu1 }
 0x165   : > { %v2887_v37 = vpop.f32.mrb[51].mxu0  ;;  %v2999_v47 = vpop.f32.mrb[51].mxu1 }
 0x166   : > { %v4472_v31 = vadd.f32 %v2887_v37, %v2886_v25  ;;  %v4474_v34 = vadd.f32 %v2997_v26, %v2861_v43  ;;  %v3000_v5 = vadd.f32 %v2999_v47, %v2998_v56 }
 0x168   : > { %v4476_v7 = vadd.f32 %v3000_v5, %v2864_v9 }
 0x16a   : > { %v2889_v60 = vpop.f32.mrb[52].mxu0  ;;  %v3001_v2 = vpop.f32.mrb[52].mxu1 }
 0x16b   : > { %v2890_v27 = vpop.f32.mrb[53].mxu0  ;;  %v3002_v51 = vpop.f32.mrb[53].mxu1 }
 0x16c   : > { %v4478_v10 = vadd.f32 %v2890_v27, %v2889_v60  ;;  %v2892_v57 = vpop.f32.mrb[54].mxu0  ;;  %v3003_v52 = vadd.f32 %v3002_v51, %v3001_v2  ;;  %v3004_v6 = vpop.f32.mrb[54].mxu1 }
 0x16d   : > { %v2893_v53 = vpop.f32.mrb[55].mxu0  ;;  %v3005_v16 = vpop.f32.mrb[55].mxu1 }
 0x16e   : > { %v4480_v12 = vadd.f32 %v2893_v53, %v2892_v57  ;;  %v4482_v45 = vadd.f32 %v3003_v52, %v2867_v32  ;;  %v3006_v43 = vadd.f32 %v3005_v16, %v3004_v6 }
 0x170   : > { %v4484_v46 = vadd.f32 %v3006_v43, %v2870_v0 }
 0x172   : > { %4775 = vst [vmem:[#allocation2_spill] sm:$0xff] %v4484_v46  ;;  %v2895_v9 = vpop.f32.mrb[56].mxu0  ;;  %v3007_v8 = vpop.f32.mrb[56].mxu1 }
 0x173   : > { %v2896_v25 = vpop.f32.mrb[57].mxu0  ;;  %v3008_v56 = vpop.f32.mrb[57].mxu1 }
 0x174   : > { %v4486_v37 = vadd.f32 %v2896_v25, %v2895_v9  ;;  %v2898_v26 = vpop.f32.mrb[58].mxu0  ;;  %v3009_v5 = vadd.f32 %v3008_v56, %v3007_v8  ;;  %v3010_v60 = vpop.f32.mrb[58].mxu1 }
 0x175   : > { %v2899_v47 = vpop.f32.mrb[59].mxu0  ;;  %v3011_v2 = vpop.f32.mrb[59].mxu1 }
 0x176   : > { %v4488_v27 = vadd.f32 %v2899_v47, %v2898_v26  ;;  %v4490_v57 = vadd.f32 %v3009_v5, %v2873_v18  ;;  %v3012_v32 = vadd.f32 %v3011_v2, %v3010_v60 }
 0x178   : > { %v4492_v51 = vadd.f32 %v3012_v32, %v2876_v13 }
 0x17a   : > { %v2901_v0 = vpop.f32.mrb[60].mxu0  ;;  %v3013_v52 = vpop.f32.mrb[60].mxu1 }
 0x17b   : > { %v2902_v53 = vpop.f32.mrb[61].mxu0  ;;  %v3014_v43 = vpop.f32.mrb[61].mxu1 }
 0x17c   : > { %v4494_v6 = vadd.f32 %v2902_v53, %v2901_v0  ;;  %v2904_v16 = vpop.f32.mrb[62].mxu0  ;;  %v3015_v25 = vadd.f32 %v3014_v43, %v3013_v52  ;;  %v3016_v46 = vpop.f32.mrb[62].mxu1 }
 0x17d   : > { %v2905_v9 = vpop.f32.mrb[63].mxu0  ;;  %v3017_v26 = vpop.f32.mrb[63].mxu1 }
 0x17e   : > { %v4496_v8 = vadd.f32 %v2905_v9, %v2904_v16  ;;  %v4498_v56 = vadd.f32 %v3015_v25, %v2879_v30  ;;  %v3018_v18 = vadd.f32 %v3017_v26, %v3016_v46 }
 0x180   : > { %v4500_v47 = vadd.f32 %v3018_v18, %v2882_v41 }
 0x182   : > { %v3221_v13 = vpop.f32.mrb[64].mxu0  ;;  %v3019_v2 = vpop.f32.mrb[64].mxu1 }
 0x183   : > { %v1153_v5 = vadd.f32 %v3221_v13, %v4369_v22  ;;  %v1144_v60 = vpop.f32.mrb[65].mxu0  ;;  %v3020_v52 = vpop.f32.mrb[65].mxu1 }
 0x184   : > { %v1145_v32 = vadd.f32 %v4361_v61, %v1144_v60  ;;  %v3222_v0 = vpop.f32.mrb[66].mxu0  ;;  %v3021_v41 = vadd.f32 %v3020_v52, %v3019_v2  ;;  %v3022_v46 = vpop.f32.mrb[66].mxu1 }
 0x185   : > { %v4505_v53 = vadd.f32 %v4414_v36, %v1153_v5  ;;  %v1156_v16 = vadd.f32 %v3222_v0, %v4372_v23  ;;  %v1147_v43 = vpop.f32.mrb[67].mxu0  ;;  %v3023_v25 = vpop.f32.mrb[67].mxu1 }
 0x186   : > { %v4509_v30 = vadd.f32 %v4399_v14, %v1145_v32  ;;  %v1148_v9 = vadd.f32 %v4363_v62, %v1147_v43  ;;  %v4516_v61 = vadd.f32 %v3021_v41, %v4470_v28  ;;  %v3024_v26 = vadd.f32 %v3023_v25, %v3022_v46 }
 0x187   : > { %v4513_v22 = vadd.f32 %v4419_v39, %v1156_v16 }
 0x188   : > { %v4519_v36 = vadd.f32 %v4404_v29, %v1148_v9  ;;  %v4522_v23 = vadd.f32 %v3024_v26, %v4472_v31 }
 0x18a   : > { %v3225_v14 = vpop.f32.mrb[68].mxu0  ;;  %v3025_v5 = vpop.f32.mrb[68].mxu1 }
 0x18b   : > { %v1169_v18 = vadd.f32 %v3225_v14, %v4388_v19  ;;  %v1160_v13 = vpop.f32.mrb[69].mxu0  ;;  %v3026_v28 = vpop.f32.mrb[69].mxu1 }
 0x18c   : > { %v1161_v62 = vadd.f32 %v4378_v21, %v1160_v13  ;;  %v3226_v39 = vpop.f32.mrb[70].mxu0  ;;  %v3027_v31 = vadd.f32 %v3026_v28, %v3025_v5  ;;  %v3028_v0 = vpop.f32.mrb[70].mxu1 }
 0x18d   : > { %v4527_v60 = vadd.f32 %v4442_v55, %v1169_v18  ;;  %v1172_v2 = vadd.f32 %v3226_v39, %v4391_v48  ;;  %v1163_v29 = vpop.f32.mrb[71].mxu0  ;;  %v3029_v16 = vpop.f32.mrb[71].mxu1 }
 0x18e   : > { %v4531_v32 = vadd.f32 %v4429_v44, %v1161_v62  ;;  %v1164_v52 = vadd.f32 %v4382_v54, %v1163_v29  ;;  %v4538_v21 = vadd.f32 %v3027_v31, %v4478_v10  ;;  %v3030_v43 = vadd.f32 %v3029_v16, %v3028_v0 }
 0x18f   : > { %v4535_v19 = vadd.f32 %v4447_v15, %v1172_v2 }
 0x190   : > { %v4541_v55 = vadd.f32 %v4434_v4, %v1164_v52  ;;  %v4544_v48 = vadd.f32 %v3030_v43, %v4480_v12 }
 0x192   : > { %v3229_v44 = vpop.f32.mrb[72].mxu0  ;;  %v3031_v9 = vpop.f32.mrb[72].mxu1 }
 0x193   : > { %v1185_v41 = vadd.f32 %v3229_v44, %v4409_v17  ;;  %v1176_v46 = vpop.f32.mrb[73].mxu0  ;;  %v3032_v10 = vpop.f32.mrb[73].mxu1 }
 0x194   : > { %v1177_v54 = vadd.f32 %v4397_v50, %v1176_v46  ;;  %v3230_v15 = vpop.f32.mrb[74].mxu0  ;;  %v3033_v12 = vadd.f32 %v3032_v10, %v3031_v9  ;;  %v3034_v18 = vpop.f32.mrb[74].mxu1 }
 0x195   : > { %v4549_v25 = vadd.f32 %v4458_v35, %v1185_v41  ;;  %v1188_v26 = vadd.f32 %v3230_v15, %v4416_v49  ;;  %v1179_v4 = vpop.f32.mrb[75].mxu0  ;;  %v3035_v5 = vpop.f32.mrb[75].mxu1 }
 0x196   : > { %v4553_v14 = vadd.f32 %v4452_v24, %v1177_v54  ;;  %v1180_v13 = vadd.f32 %v4401_v59, %v1179_v4  ;;  %v4560_v50 = vadd.f32 %v3033_v12, %v4486_v37  ;;  %v3036_v62 = vadd.f32 %v3035_v5, %v3034_v18 }
 0x197   : > { %v4557_v17 = vadd.f32 %v4460_v40, %v1188_v26 }
 0x198   : > { %v1485_v35 = vadd.f32 %v4456_v1, %v1180_v13  ;;  %v4564_v49 = vadd.f32 %v3036_v62, %v4488_v27 }
 0x19a   : > { %v3233_v39 = vpop.f32.mrb[76].mxu0  ;;  %v3037_v2 = vpop.f32.mrb[76].mxu1 }
 0x19b   : > { %v1201_v24 = vadd.f32 %v3233_v39, %v4439_v38  ;;  %v1192_v28 = vpop.f32.mrb[77].mxu0  ;;  %v3038_v31 = vpop.f32.mrb[77].mxu1 }
 0x19c   : > { %v1193_v59 = vadd.f32 %v4426_v58, %v1192_v28  ;;  %v3234_v29 = vpop.f32.mrb[78].mxu0  ;;  %v3039_v27 = vadd.f32 %v3038_v31, %v3037_v2  ;;  %v3040_v52 = vpop.f32.mrb[78].mxu1 }
 0x19d   : > { %v4569_v40 = vadd.f32 %v4466_v3, %v1201_v24  ;;  %v1204_v37 = vadd.f32 %v3234_v29, %v4444_v63  ;;  %v1195_v0 = vpop.f32.mrb[79].mxu0  ;;  %v3041_v43 = vpop.f32.mrb[79].mxu1 }
 0x19e   : > { %v4573_v1 = vadd.f32 %v4462_v20, %v1193_v59  ;;  %v1196_v16 = vadd.f32 %v4431_v11, %v1195_v0  ;;  %v4580_v58 = vadd.f32 %v3039_v27, %v4494_v6  ;;  %v3042_v44 = vadd.f32 %v3041_v43, %v3040_v52 }
 0x19f   : > { %v4577_v38 = vadd.f32 %v4468_v42, %v1204_v37 }
 0x1a0   : > { %v1501_v3 = vadd.f32 %v4464_v33, %v1196_v16  ;;  %v4584_v63 = vadd.f32 %v3042_v44, %v4496_v8 }
 0x1a2   : > { %v3083_v41 = vpop.f32.mrb[80].mxu0 }
 0x1a3   : > { %v3084_v20 = vpop.f32.mrb[81].mxu0 }
 0x1a4   : > { %v3085_v46 = vadd.f32 %v3084_v20, %v3083_v41  ;;  %v3086_v9 = vpop.f32.mrb[82].mxu0 }
 0x1a5   : > { %v3087_v54 = vpop.f32.mrb[83].mxu0 }
 0x1a6   : > { %v3088_v15 = vadd.f32 %v3087_v54, %v3086_v9  ;;  %v4587_v11 = vadd.f32 %v3085_v46, %v4509_v30 }
 0x1a8   : > { %v4590_v42 = vadd.f32 %v3088_v15, %v4519_v36 }
 0x1aa   : > { %v3089_v6 = vpop.f32.mrb[84].mxu0 }
 0x1ab   : > { %v3090_v10 = vpop.f32.mrb[85].mxu0 }
 0x1ac   : > { %v3091_v26 = vadd.f32 %v3090_v10, %v3089_v6  ;;  %v3092_v33 = vpop.f32.mrb[86].mxu0 }
 0x1ad   : > { %v3093_v4 = vpop.f32.mrb[87].mxu0 }
 0x1ae   : > { %v3094_v12 = vadd.f32 %v3093_v4, %v3092_v33  ;;  %v3365_v8 = vadd.f32 %v3091_v26, %v4505_v53 }
 0x1b0   : > { %v4594_v18 = vadd.f32 %v3094_v12, %v4513_v22 }
 0x1b2   : > { %v3095_v13 = vpop.f32.mrb[88].mxu0 }
 0x1b3   : > { %v3096_v5 = vpop.f32.mrb[89].mxu0 }
 0x1b4   : > { %v3097_v62 = vadd.f32 %v3096_v5, %v3095_v13  ;;  %v3098_v39 = vpop.f32.mrb[90].mxu0 }
 0x1b5   : > { %v3099_v30 = vpop.f32.mrb[91].mxu0 }
 0x1b6   : > { %v3100_v24 = vadd.f32 %v3099_v30, %v3098_v39  ;;  %v4597_v36 = vadd.f32 %v3097_v62, %v4531_v32 }
 0x1b8   : > { %v4600_v28 = vadd.f32 %v3100_v24, %v4541_v55 }
 0x1ba   : > { %v3101_v2 = vpop.f32.mrb[92].mxu0 }
 0x1bb   : > { %v3102_v59 = vpop.f32.mrb[93].mxu0 }
 0x1bc   : > { %v3103_v29 = vadd.f32 %v3102_v59, %v3101_v2  ;;  %v3104_v31 = vpop.f32.mrb[94].mxu0 }
 0x1bd   : > { %v3105_v53 = vpop.f32.mrb[95].mxu0 }
 0x1be   : > { %v3106_v37 = vadd.f32 %v3105_v53, %v3104_v31  ;;  %v4603_v22 = vadd.f32 %v3103_v29, %v4527_v60 }
 0x1c0   : > { %v4606_v0 = vadd.f32 %v3106_v37, %v4535_v19 }
 0x1c2   : > { %v3107_v27 = vpop.f32.mrb[96].mxu0 }
 0x1c3   : > { %v3108_v52 = vpop.f32.mrb[97].mxu0 }
 0x1c4   : > { %v3109_v16 = vadd.f32 %v3108_v52, %v3107_v27  ;;  %v3110_v32 = vpop.f32.mrb[98].mxu0 }
 0x1c5   : > { %v3111_v43 = vpop.f32.mrb[99].mxu0 }
 0x1c6   : > { %v3112_v44 = vadd.f32 %v3111_v43, %v3110_v32  ;;  %v4609_v55 = vadd.f32 %v3109_v16, %v4553_v14 }
 0x1c8   : > { %v4611_v41 = vadd.f32 %v3112_v44, %v1485_v35 }
 0x1ca   : > { %v3113_v20 = vpop.f32.mrb[100].mxu0 }
 0x1cb   : > { %v3114_v46 = vpop.f32.mrb[101].mxu0 }
 0x1cc   : > { %v3115_v9 = vadd.f32 %v3114_v46, %v3113_v20  ;;  %v3116_v54 = vpop.f32.mrb[102].mxu0 }
 0x1cd   : > { %v3117_v60 = vpop.f32.mrb[103].mxu0 }
 0x1ce   : > { %v3118_v15 = vadd.f32 %v3117_v60, %v3116_v54  ;;  %v4614_v19 = vadd.f32 %v3115_v9, %v4549_v25 }
 0x1d0   : > { %v4617_v6 = vadd.f32 %v3118_v15, %v4557_v17 }
 0x1d2   : > { %v3119_v10 = vpop.f32.mrb[104].mxu0 }
 0x1d3   : > { %v3120_v26 = vpop.f32.mrb[105].mxu0 }
 0x1d4   : > { %v3121_v33 = vadd.f32 %v3120_v26, %v3119_v10  ;;  %v3122_v14 = vpop.f32.mrb[106].mxu0 }
 0x1d5   : > { %v3123_v4 = vpop.f32.mrb[107].mxu0 }
 0x1d6   : > { %v3124_v35 = vadd.f32 %v3123_v4, %v3122_v14  ;;  %v4620_v12 = vadd.f32 %v3121_v33, %v4573_v1  ;;  %v4634_v1 = vld [vmem:[%s4772_s2] ss:$0 sm:$0xff] }
 0x1d8   : > { %v4622_v13 = vadd.f32 %v3124_v35, %v1501_v3 }
 0x1da   : > { %v3125_v5 = vpop.f32.mrb[108].mxu0 }
 0x1db   : > { %v3126_v62 = vpop.f32.mrb[109].mxu0 }
 0x1dc   : > { %v3127_v39 = vadd.f32 %v3126_v62, %v3125_v5  ;;  %v3128_v25 = vpop.f32.mrb[110].mxu0 }
 0x1dd   : > { %v3129_v30 = vpop.f32.mrb[111].mxu0 }
 0x1de   : > { %v3130_v24 = vadd.f32 %v3129_v30, %v3128_v25  ;;  %v4625_v17 = vadd.f32 %v3127_v39, %v4569_v40 }
 0x1e0   : > { %v4628_v2 = vadd.f32 %v3130_v24, %v4577_v38 }
 0x1e2   : > { %v3131_v59 = vpop.f32.mrb[112].mxu0  ;;  %v3317_v31 = vpop.f32.mrb[80].mxu1 }
 0x1e3   : > { %v3132_v29 = vpop.f32.mrb[113].mxu0  ;;  %v3366_v37 = vadd.f32 %v3365_v8, %v3317_v31  ;;  %v2151_v27 = vpop.f32.mrb[81].mxu1 }
 0x1e4   : > { %v3133_v3 = vadd.f32 %v3132_v29, %v3131_v59  ;;  %v3134_v53 = vpop.f32.mrb[114].mxu0  ;;  %v3370_v40 = vadd.f32 %v4587_v11, %v2151_v27  ;;  %v3318_v38 = vpop.f32.mrb[82].mxu1 }
 0x1e5   : > { %v3135_v52 = vpop.f32.mrb[115].mxu0  ;;  %v2319_v8 = vadd.f32 %v3366_v37, %v4634_v1  ;;  %v3374_v43 = vadd.f32 %v4594_v18, %v3318_v38  ;;  %v2154_v44 = vpop.f32.mrb[83].mxu1 }
 0x1e6   : > { %v3136_v16 = vadd.f32 %v3135_v52, %v3134_v53  ;;  %v4643_v32 = vadd.f32 %v4474_v34, %v3133_v3  ;;  %v2317_v20 = vadd.f32 %v3370_v40, %v4634_v1  ;;  %v3378_v46 = vadd.f32 %v4590_v42, %v2154_v44  ;;  %v4776_v52 = vld [vmem:[#allocation2_spill] sm:$0xff] }
 0x1e7   : > { %2351 = vst [vmem:[%s4639_s29 + $0x10] sm:$0xff] %v2319_v8  ;;  %v2320_v11 = vadd.f32 %v3374_v43, %v4634_v1  ;;  %v2420_v42 = vmul.f32 %v2319_v8, %v2319_v8 }
 0x1e8   : > { %v4650_v9 = vadd.f32 %v4476_v7, %v3136_v16  ;;  %2349 = vst [vmem:[%s4639_s29] sm:$0xff] %v2317_v20  ;;  %v2318_v54 = vadd.f32 %v3378_v46, %v4634_v1  ;;  %v2418_v15 = vmul.f32 %v2317_v20, %v2317_v20 }
 0x1e9   : > { %2352 = vst [vmem:[%s4639_s29 + $0x18] sm:$0xff] %v2320_v11  ;;  %v2421_v24 = vmul.f32 %v2320_v11, %v2320_v11 }
 0x1ea   : > { %v3137_v34 = vpop.f32.mrb[116].mxu0  ;;  %2350 = vst [vmem:[%s4639_s29 + $0x8] sm:$0xff] %v2318_v54  ;;  %v2381_v18 = vadd.f32 %v2318_v54, %v2317_v20  ;;  %v2419_v10 = vmul.f32 %v2318_v54, %v2318_v54  ;;  %v3321_v26 = vpop.f32.mrb[84].mxu1 }
 0x1eb   : > { %v3138_v60 = vpop.f32.mrb[117].mxu0  ;;  %v3382_v7 = vadd.f32 %v4603_v22, %v3321_v26  ;;  %v2167_v4 = vpop.f32.mrb[85].mxu1 }
 0x1ec   : > { %v3139_v33 = vadd.f32 %v3138_v60, %v3137_v34  ;;  %v3140_v14 = vpop.f32.mrb[118].mxu0  ;;  %v2382_v5 = vadd.f32 %v2381_v18, %v2319_v8  ;;  %v2450_v62 = vadd.f32 %v2419_v10, %v2418_v15  ;;  %v3386_v39 = vadd.f32 %v4597_v36, %v2167_v4  ;;  %v3322_v25 = vpop.f32.mrb[86].mxu1 }
 0x1ed   : > { %v3141_v35 = vpop.f32.mrb[119].mxu0  ;;  %v2323_v59 = vadd.f32 %v3382_v7, %v4634_v1  ;;  %v3390_v29 = vadd.f32 %v4606_v0, %v3322_v25  ;;  %v2170_v31 = vpop.f32.mrb[87].mxu1 }
 0x1ee   : > { %v3142_v30 = vadd.f32 %v3141_v35, %v3140_v14  ;;  %v4663_v3 = vadd.f32 %v4482_v45, %v3139_v33  ;;  %v2451_v22 = vadd.f32 %v2450_v62, %v2420_v42  ;;  %v2321_v53 = vadd.f32 %v3386_v39, %v4634_v1 }
 0x1ef   : > { %v2383_v37 = vadd.f32 %v2382_v5, %v2320_v11  ;;  %v3394_v27 = vadd.f32 %v4600_v28, %v2170_v31  ;;  %2355 = vst [vmem:[%s4639_s29 + $0x30] sm:$0xff] %v2323_v59  ;;  %v2324_v36 = vadd.f32 %v3390_v29, %v4634_v1  ;;  %v2424_v34 = vmul.f32 %v2323_v59, %v2323_v59 }
 0x1f0   : > { %v4670_v40 = vadd.f32 %v4776_v52, %v3142_v30  ;;  %2353 = vst [vmem:[%s4639_s29 + $0x20] sm:$0xff] %v2321_v53  ;;  %v2422_v38 = vmul.f32 %v2321_v53, %v2321_v53  ;;  %v2452_v16 = vadd.f32 %v2451_v22, %v2421_v24 }
 0x1f1   : > { %v2384_v0 = vadd.f32 %v2383_v37, %v2321_v53  ;;  %v2322_v45 = vadd.f32 %v3394_v27, %v4634_v1  ;;  %2356 = vst [vmem:[%s4639_s29 + $0x38] sm:$0xff] %v2324_v36  ;;  %v2425_v7 = vmul.f32 %v2324_v36, %v2324_v36 }
 0x1f2   : > { %v3143_v8 = vpop.f32.mrb[120].mxu0  ;;  %v2453_v44 = vadd.f32 %v2452_v16, %v2422_v38  ;;  %v3325_v28 = vpop.f32.mrb[88].mxu1 }
 0x1f3   : > { %v3144_v43 = vpop.f32.mrb[121].mxu0  ;;  %2354 = vst [vmem:[%s4639_s29 + $0x28] sm:$0xff] %v2322_v45  ;;  %v2385_v20 = vadd.f32 %v2384_v0, %v2322_v45  ;;  %v2423_v46 = vmul.f32 %v2322_v45, %v2322_v45  ;;  %v3398_v60 = vadd.f32 %v4614_v19, %v3325_v28  ;;  %v2183_v15 = vpop.f32.mrb[89].mxu1 }
 0x1f4   : > { %v3145_v11 = vadd.f32 %v3144_v43, %v3143_v8  ;;  %v3146_v54 = vpop.f32.mrb[122].mxu0  ;;  %v3402_v33 = vadd.f32 %v4609_v55, %v2183_v15  ;;  %v3326_v14 = vpop.f32.mrb[90].mxu1 }
 0x1f5   : > { %v3147_v18 = vpop.f32.mrb[123].mxu0  ;;  %v2386_v10 = vadd.f32 %v2385_v20, %v2323_v59  ;;  %v2454_v26 = vadd.f32 %v2453_v44, %v2423_v46  ;;  %v2327_v4 = vadd.f32 %v3398_v60, %v4634_v1  ;;  %v3406_v35 = vadd.f32 %v4617_v6, %v3326_v14  ;;  %v2186_v5 = vpop.f32.mrb[91].mxu1 }
 0x1f6   : > { %v3148_v42 = vadd.f32 %v3147_v18, %v3146_v54  ;;  %v4681_v62 = vadd.f32 %v4490_v57, %v3145_v11  ;;  %v2325_v39 = vadd.f32 %v3402_v33, %v4634_v1  ;;  %v3410_v30 = vadd.f32 %v4611_v41, %v2186_v5 }
 0x1f7   : > { %v2455_v19 = vadd.f32 %v2454_v26, %v2424_v34  ;;  %v2387_v25 = vadd.f32 %v2386_v10, %v2324_v36  ;;  %2359 = vst [vmem:[%s4639_s29 + $0x50] sm:$0xff] %v2327_v4  ;;  %v2328_v55 = vadd.f32 %v3406_v35, %v4634_v1  ;;  %v2428_v0 = vmul.f32 %v2327_v4, %v2327_v4 }
 0x1f8   : > { %v4688_v24 = vadd.f32 %v4492_v51, %v3148_v42  ;;  %2357 = vst [vmem:[%s4639_s29 + $0x40] sm:$0xff] %v2325_v39  ;;  %v2426_v59 = vmul.f32 %v2325_v39, %v2325_v39  ;;  %v2326_v57 = vadd.f32 %v3410_v30, %v4634_v1 }
 0x1f9   : > { %v2388_v6 = vadd.f32 %v2387_v25, %v2325_v39  ;;  %v2456_v29 = vadd.f32 %v2455_v19, %v2425_v7  ;;  %2360 = vst [vmem:[%s4639_s29 + $0x58] sm:$0xff] %v2328_v55  ;;  %v2429_v46 = vmul.f32 %v2328_v55, %v2328_v55 }
 0x1fa   : > { %v3149_v31 = vpop.f32.mrb[124].mxu0  ;;  %2358 = vst [vmem:[%s4639_s29 + $0x48] sm:$0xff] %v2326_v57  ;;  %v2427_v27 = vmul.f32 %v2326_v57, %v2326_v57  ;;  %v3329_v41 = vpop.f32.mrb[92].mxu1 }
 0x1fb   : > { %v3150_v22 = vpop.f32.mrb[125].mxu0  ;;  %v2457_v53 = vadd.f32 %v2456_v29, %v2426_v59  ;;  %v2389_v37 = vadd.f32 %v2388_v6, %v2326_v57  ;;  %v3414_v51 = vadd.f32 %v4625_v17, %v3329_v41  ;;  %v2199_v38 = vpop.f32.mrb[93].mxu1 }
 0x1fc   : > { %v3151_v36 = vadd.f32 %v3150_v22, %v3149_v31  ;;  %v3152_v52 = vpop.f32.mrb[126].mxu0  ;;  %v3418_v43 = vadd.f32 %v4620_v12, %v2199_v38  ;;  %v3330_v44 = vpop.f32.mrb[94].mxu1 }
 0x1fd   : > { %v3153_v16 = vpop.f32.mrb[127].mxu0  ;;  %v2390_v45 = vadd.f32 %v2389_v37, %v2327_v4  ;;  %v2458_v8 = vadd.f32 %v2457_v53, %v2427_v27  ;;  %v2331_v28 = vadd.f32 %v3414_v51, %v4634_v1  ;;  %v3422_v11 = vadd.f32 %v4628_v2, %v3330_v44  ;;  %v2202_v54 = vpop.f32.mrb[95].mxu1 }
 0x1fe   : > { %v3154_v20 = vadd.f32 %v3153_v16, %v3152_v52  ;;  %v3440_v34 = vadd.f32 %v4498_v56, %v3151_v36  ;;  %v2329_v60 = vadd.f32 %v3418_v43, %v4634_v1  ;;  %v3426_v18 = vadd.f32 %v4622_v13, %v2202_v54 }
 0x1ff   : > { %v2459_v17 = vadd.f32 %v2458_v8, %v2428_v0  ;;  %v2391_v15 = vadd.f32 %v2390_v45, %v2328_v55  ;;  %2363 = vst [vmem:[%s4639_s29 + $0x70] sm:$0xff] %v2331_v28  ;;  %v2332_v12 = vadd.f32 %v3422_v11, %v4634_v1  ;;  %v2432_v39 = vmul.f32 %v2331_v28, %v2331_v28 }
 0x200   : > { %v4704_v10 = vadd.f32 %v4500_v47, %v3154_v20  ;;  %2361 = vst [vmem:[%s4639_s29 + $0x60] sm:$0xff] %v2329_v60  ;;  %v2430_v2 = vmul.f32 %v2329_v60, %v2329_v60  ;;  %v2330_v14 = vadd.f32 %v3426_v18, %v4634_v1 }
 0x201   : > { %v2392_v26 = vadd.f32 %v2391_v15, %v2329_v60  ;;  %v2460_v33 = vadd.f32 %v2459_v17, %v2429_v46  ;;  %2364 = vst [vmem:[%s4639_s29 + $0x78] sm:$0xff] %v2332_v12  ;;  %v2433_v31 = vmul.f32 %v2332_v12, %v2332_v12 }
 0x202   : > { %v3155_v56 = vpop.f32.mrb[128].mxu0  ;;  %2362 = vst [vmem:[%s4639_s29 + $0x68] sm:$0xff] %v2330_v14  ;;  %v2431_v35 = vmul.f32 %v2330_v14, %v2330_v14  ;;  %v3333_v13 = vpop.f32.mrb[0].mxu1 }
 0x203   : > { %v3156_v42 = vpop.f32.mrb[129].mxu0  ;;  %v2461_v7 = vadd.f32 %v2460_v33, %v2430_v2  ;;  %v2393_v4 = vadd.f32 %v2392_v26, %v2330_v14  ;;  %v3429_v47 = vadd.f32 %v4663_v3, %v3333_v13  ;;  %v2215_v25 = vpop.f32.mrb[1].mxu1 }
 0x204   : > { %v3157_v5 = vadd.f32 %v3156_v42, %v3155_v56  ;;  %v3158_v19 = vpop.f32.mrb[130].mxu0  ;;  %v3432_v59 = vadd.f32 %v4643_v32, %v2215_v25  ;;  %v3334_v29 = vpop.f32.mrb[2].mxu1 }
 0x205   : > { %v3159_v30 = vpop.f32.mrb[131].mxu0  ;;  %v2394_v55 = vadd.f32 %v2393_v4, %v2331_v28  ;;  %v2462_v6 = vadd.f32 %v2461_v7, %v2431_v35  ;;  %v2335_v22 = vadd.f32 %v3429_v47, %v4634_v1  ;;  %v3435_v53 = vadd.f32 %v4670_v40, %v3334_v29  ;;  %v2218_v37 = vpop.f32.mrb[3].mxu1 }
 0x206   : > { %v3160_v57 = vadd.f32 %v3159_v30, %v3158_v19  ;;  %v4715_v27 = vadd.f32 %v4516_v61, %v3157_v5  ;;  %v2333_v41 = vadd.f32 %v3432_v59, %v4634_v1  ;;  %v3438_v52 = vadd.f32 %v4650_v9, %v2218_v37 }
 0x207   : > { %v2463_v3 = vadd.f32 %v2462_v6, %v2432_v39  ;;  %v2395_v36 = vadd.f32 %v2394_v55, %v2332_v12  ;;  %2367 = vst [vmem:[%s4639_s29 + $0x90] sm:$0xff] %v2335_v22  ;;  %v2336_v32 = vadd.f32 %v3435_v53, %v4634_v1  ;;  %v2436_v28 = vmul.f32 %v2335_v22, %v2335_v22 }
 0x208   : > { %v4722_v0 = vadd.f32 %v4522_v23, %v3160_v57  ;;  %2365 = vst [vmem:[%s4639_s29 + $0x80] sm:$0xff] %v2333_v41  ;;  %v2434_v51 = vmul.f32 %v2333_v41, %v2333_v41  ;;  %v2334_v61 = vadd.f32 %v3438_v52, %v4634_v1 }
 0x209   : > { %v2396_v40 = vadd.f32 %v2395_v36, %v2333_v41  ;;  %v2464_v38 = vadd.f32 %v2463_v3, %v2433_v31  ;;  %2368 = vst [vmem:[%s4639_s29 + $0x98] sm:$0xff] %v2336_v32  ;;  %v2437_v26 = vmul.f32 %v2336_v32, %v2336_v32 }
 0x20a   : > { %v3161_v16 = vpop.f32.mrb[132].mxu0  ;;  %2366 = vst [vmem:[%s4639_s29 + $0x88] sm:$0xff] %v2334_v61  ;;  %v2435_v44 = vmul.f32 %v2334_v61, %v2334_v61  ;;  %v3337_v9 = vpop.f32.mrb[4].mxu1 }
 0x20b   : > { %v3162_v45 = vpop.f32.mrb[133].mxu0  ;;  %v2465_v8 = vadd.f32 %v2464_v38, %v2434_v51  ;;  %v2397_v43 = vadd.f32 %v2396_v40, %v2334_v61  ;;  %v3441_v11 = vadd.f32 %v3440_v34, %v3337_v9  ;;  %v2231_v23 = vpop.f32.mrb[5].mxu1 }
 0x20c   : > { %v3163_v20 = vadd.f32 %v3162_v45, %v3161_v16  ;;  %v3164_v46 = vpop.f32.mrb[134].mxu0  ;;  %v3444_v15 = vadd.f32 %v4681_v62, %v2231_v23  ;;  %v3338_v18 = vpop.f32.mrb[6].mxu1 }
 0x20d   : > { %v3165_v54 = vpop.f32.mrb[135].mxu0  ;;  %v2398_v17 = vadd.f32 %v2397_v43, %v2335_v22  ;;  %v2466_v60 = vadd.f32 %v2465_v8, %v2435_v44  ;;  %v2339_v2 = vadd.f32 %v3441_v11, %v4634_v1  ;;  %v3447_v33 = vadd.f32 %v4704_v10, %v3338_v18  ;;  %v2234_v14 = vpop.f32.mrb[7].mxu1 }
 0x20e   : > { %v3166_v12 = vadd.f32 %v3165_v54, %v3164_v46  ;;  %v3452_v56 = vadd.f32 %v4538_v21, %v3163_v20  ;;  %v2337_v42 = vadd.f32 %v3444_v15, %v4634_v1  ;;  %v3450_v4 = vadd.f32 %v4688_v24, %v2234_v14 }
 0x20f   : > { %v2467_v34 = vadd.f32 %v2466_v60, %v2436_v28  ;;  %v2399_v7 = vadd.f32 %v2398_v17, %v2336_v32  ;;  %2371 = vst [vmem:[%s4639_s29 + $0xb0] sm:$0xff] %v2339_v2  ;;  %v2340_v62 = vadd.f32 %v3447_v33, %v4634_v1  ;;  %v2440_v59 = vmul.f32 %v2339_v2, %v2339_v2 }
 0x210   : > { %v3458_v35 = vadd.f32 %v4544_v48, %v3166_v12  ;;  %2369 = vst [vmem:[%s4639_s29 + $0xa0] sm:$0xff] %v2337_v42  ;;  %v2438_v5 = vmul.f32 %v2337_v42, %v2337_v42  ;;  %v2338_v19 = vadd.f32 %v3450_v4, %v4634_v1 }
 0x211   : > { %v2400_v13 = vadd.f32 %v2399_v7, %v2337_v42  ;;  %v2468_v10 = vadd.f32 %v2467_v34, %v2437_v26  ;;  %2372 = vst [vmem:[%s4639_s29 + $0xb8] sm:$0xff] %v2340_v62  ;;  %v2441_v41 = vmul.f32 %v2340_v62, %v2340_v62 }
 0x212   : > { %v3167_v39 = vpop.f32.mrb[136].mxu0  ;;  %2370 = vst [vmem:[%s4639_s29 + $0xa8] sm:$0xff] %v2338_v19  ;;  %v2439_v30 = vmul.f32 %v2338_v19, %v2338_v19  ;;  %v3341_v55 = vpop.f32.mrb[8].mxu1 }
 0x213   : > { %v3168_v21 = vpop.f32.mrb[137].mxu0  ;;  %v2469_v47 = vadd.f32 %v2468_v10, %v2438_v5  ;;  %v2401_v25 = vadd.f32 %v2400_v13, %v2338_v19  ;;  %v3453_v29 = vadd.f32 %v3452_v56, %v3341_v55  ;;  %v2247_v57 = vpop.f32.mrb[9].mxu1 }
 0x214   : > { %v3169_v24 = vadd.f32 %v3168_v21, %v3167_v39  ;;  %v3170_v6 = vpop.f32.mrb[138].mxu0  ;;  %v3456_v53 = vadd.f32 %v4715_v27, %v2247_v57  ;;  %v3342_v37 = vpop.f32.mrb[10].mxu1 }
 0x215   : > { %v3171_v48 = vpop.f32.mrb[139].mxu0  ;;  %v2402_v31 = vadd.f32 %v2401_v25, %v2339_v2  ;;  %v2470_v22 = vadd.f32 %v2469_v47, %v2439_v30  ;;  %v2343_v36 = vadd.f32 %v3453_v29, %v4634_v1  ;;  %v3459_v52 = vadd.f32 %v3458_v35, %v3342_v37  ;;  %v2250_v32 = vpop.f32.mrb[11].mxu1 }
 0x216   : > { %v3172_v3 = vadd.f32 %v3171_v48, %v3170_v6  ;;  %v3467_v40 = vadd.f32 %v4560_v50, %v3169_v24  ;;  %v2341_v38 = vadd.f32 %v3456_v53, %v4634_v1  ;;  %v3462_v16 = vadd.f32 %v4722_v0, %v2250_v32 }
 0x217   : > { %v2471_v51 = vadd.f32 %v2470_v22, %v2440_v59  ;;  %v2403_v61 = vadd.f32 %v2402_v31, %v2340_v62  ;;  %2375 = vst [vmem:[%s4639_s29 + $0xd0] sm:$0xff] %v2343_v36  ;;  %v2344_v27 = vadd.f32 %v3459_v52, %v4634_v1  ;;  %v2444_v17 = vmul.f32 %v2343_v36, %v2343_v36 }
 0x218   : > { %v3473_v45 = vadd.f32 %v4564_v49, %v3172_v3  ;;  %2373 = vst [vmem:[%s4639_s29 + $0xc0] sm:$0xff] %v2341_v38  ;;  %v2442_v43 = vmul.f32 %v2341_v38, %v2341_v38  ;;  %v2342_v9 = vadd.f32 %v3462_v16, %v4634_v1 }
 0x219   : > { %v2404_v8 = vadd.f32 %v2403_v61, %v2341_v38  ;;  %v2472_v44 = vadd.f32 %v2471_v51, %v2441_v41  ;;  %2376 = vst [vmem:[%s4639_s29 + $0xd8] sm:$0xff] %v2344_v27  ;;  %v2445_v33 = vmul.f32 %v2344_v27, %v2344_v27 }
 0x21a   : > { %v3173_v20 = vpop.f32.mrb[140].mxu0  ;;  %2374 = vst [vmem:[%s4639_s29 + $0xc8] sm:$0xff] %v2342_v9  ;;  %v2443_v11 = vmul.f32 %v2342_v9, %v2342_v9  ;;  %v3345_v23 = vpop.f32.mrb[12].mxu1 }
 0x21b   : > { %v3174_v50 = vpop.f32.mrb[141].mxu0  ;;  %v2473_v46 = vadd.f32 %v2472_v44, %v2442_v43  ;;  %v2405_v28 = vadd.f32 %v2404_v8, %v2342_v9  ;;  %v2263_v60 = vpop.f32.mrb[13].mxu1 }
 0x21c   : > { %v3175_v0 = vadd.f32 %v3174_v50, %v3173_v20  ;;  %v3176_v54 = vpop.f32.mrb[142].mxu0  ;;  %v3468_v26 = vadd.f32 %v3467_v40, %v2263_v60  ;;  %v3346_v2 = vpop.f32.mrb[14].mxu1 }
 0x21d   : > { %v3177_v15 = vpop.f32.mrb[143].mxu0  ;;  %v2406_v49 = vadd.f32 %v2405_v28, %v2343_v36  ;;  %v2474_v18 = vadd.f32 %v2473_v46, %v2443_v11  ;;  %v2266_v56 = vpop.f32.mrb[15].mxu1 }
 0x21e   : > { %v3464_v12 = vadd.f32 %v4580_v58, %v3175_v0  ;;  %v3178_v14 = vadd.f32 %v3177_v15, %v3176_v54  ;;  %v2345_v7 = vadd.f32 %v3468_v26, %v4634_v1  ;;  %v3474_v35 = vadd.f32 %v3473_v45, %v2266_v56 }
 0x21f   : > { %v2475_v34 = vadd.f32 %v2474_v18, %v2444_v17  ;;  %v2407_v4 = vadd.f32 %v2406_v49, %v2344_v27 }
 0x220   : > { %v3465_v42 = vadd.f32 %v3464_v12, %v3345_v23  ;;  %v3470_v62 = vadd.f32 %v4584_v63, %v3178_v14  ;;  %2377 = vst [vmem:[%s4639_s29 + $0xe0] sm:$0xff] %v2345_v7  ;;  %v2446_v5 = vmul.f32 %v2345_v7, %v2345_v7  ;;  %v2346_v39 = vadd.f32 %v3474_v35, %v4634_v1 }
 0x221   : > { %v2408_v58 = vadd.f32 %v2407_v4, %v2345_v7  ;;  %v2476_v10 = vadd.f32 %v2475_v34, %v2445_v33 }
 0x222   : > { %v2347_v13 = vadd.f32 %v3465_v42, %v4634_v1  ;;  %v3471_v19 = vadd.f32 %v3470_v62, %v3346_v2  ;;  %2378 = vst [vmem:[%s4639_s29 + $0xe8] sm:$0xff] %v2346_v39  ;;  %v2447_v55 = vmul.f32 %v2346_v39, %v2346_v39 }
 0x223   : > { %v2477_v21 = vadd.f32 %v2476_v10, %v2446_v5  ;;  %v2409_v30 = vadd.f32 %v2408_v58, %v2346_v39 }
 0x224   : > { %2379 = vst [vmem:[%s4639_s29 + $0xf0] sm:$0xff] %v2347_v13  ;;  %v2448_v47 = vmul.f32 %v2347_v13, %v2347_v13  ;;  %v2348_v25 = vadd.f32 %v3471_v19, %v4634_v1 }
 0x225   : > { %v2410_v24 = vadd.f32 %v2409_v30, %v2347_v13  ;;  %v2478_v6 = vadd.f32 %v2477_v21, %v2447_v55 }
 0x226   : > { %2380 = vst [vmem:[%s4639_s29 + $0xf8] sm:$0xff] %v2348_v25  ;;  %v2449_v63 = vmul.f32 %v2348_v25, %v2348_v25 }
 0x227   : > { %v2411_v59 = vadd.f32 %v2410_v24, %v2348_v25  ;;  %v2479_v29 = vadd.f32 %v2478_v6, %v2448_v47 }
 0x229   : > { %v2412_v57 = vrot.slane %v2411_v59, 4  ;;  %v2480_v48 = vadd.f32 %v2479_v29, %v2449_v63 }
 0x22b   : > { %v2413_v31 = vadd.f32 %v2412_v57, %v2411_v59  ;;  %v2481_v22 = vrot.slane %v2480_v48, 4 }
 0x22d   : > { %v2414_v53 = vrot.slane %v2413_v31, 2  ;;  %v2482_v37 = vadd.f32 %v2481_v22, %v2480_v48 }
 0x22f   : > { %v2415_v3 = vadd.f32 %v2414_v53, %v2413_v31  ;;  %v2483_v41 = vrot.slane %v2482_v37, 2 }
 0x231   : > { %v2416_v36 = vrot.slane %v2415_v3, 1  ;;  %v2484_v1 = vadd.f32 %v2483_v41, %v2482_v37 }
 0x233   : > { %v2485_v52 = vrot.slane %v2484_v1, 1  ;;  %v2417_v32 = vadd.f32 %v2416_v36, %v2415_v3 }
 0x235   : > { %v2486_v40 = vadd.f32 %v2485_v52, %v2484_v1 }
 0x237   : > { %v2488_v51 = vsel %vm2487_vm2, %v2417_v32, %v2486_v40 }
 0x238   : > { %v2490_v38 = vsel %vm2489_vm3, %v2488_v51, 0.0 }
 0x239   : > { %2491 = vst [vmem:[%s208_s7] sm:$0xff] %v2490_v38 }
 0x23a PF: > { %s15_s15 = sadd.s32 1, %s3654_s15  }
 0x23b   : > { %p12_p4 = scmp.ge.s32.totalorder %s15_s15, 4  }
 0x23d   :  { %14 = sbr.rel (!%p12_p4) target bundleno = 1 (0x1), region = 76 }

</bundles_post_ra>
